<compile_context>
chip_gen: v7x
topology: tpu7x:2x2x1
jax: 0.10.0
libtpu: 0.0.40
codegen_flags: <defaults>
</compile_context>

<pallas_src>
import functools

import jax
import jax.numpy as jnp
from jax import lax
from jax.experimental import pallas as pl
from jax.experimental.pallas import tpu as pltpu


# ---------------------------------------------------------------------------
# Fused kernel: conv1 + pool1 + conv2 + (pool2 ∘ adaptive-max) + MLP head.
# ---------------------------------------------------------------------------
def _netcov_kernel(p_ref, w1_ref, b1_ref, w2_ref, b2_ref,
                   w3_ref, b3_ref, w4_ref, b4_ref, o_ref,
                   *, cells, pool_w, cov_h, cov_w, bt):
    # p_ref : (4*cells, bt, 9)  conv1 quadrant-im2col patches; leading index is
    #         q*cells + (py*pool_w + px)  (quadrant-major, then pool position),
    #         images are the fastest-varying axis -> every slice below lands on
    #         a multiple of bt (bt % 8 == 0) rows: all 8-aligned, all static.
    # w1_ref: (9, 32)        b1_ref: (1, 32)
    # w2_ref: (25, 32, 64)   per-tap conv2 weights, tap = ki*5 + kj
    # b2_ref: (1, 64)  w3_ref: (64, 32)  b3_ref: (1, 32)
    # w4_ref: (32, 10) b4_ref: (1, 10)   o_ref: (bt, 10)
    k1 = p_ref.shape[-1]
    rows = p_ref.shape[0] * p_ref.shape[1]            # 4 * cells * bt
    r = cells * bt

    # --- Conv2d(1,32,3) + MaxPool2d(2,2): ONE matmul + quadrant max tree. ----
    p = p_ref[...].reshape(rows, k1)                  # layout-free (bt % 8 == 0)
    y = jnp.dot(p, w1_ref[...], preferred_element_type=jnp.float32)
    m = jnp.maximum(jnp.maximum(y[0 * r:1 * r], y[1 * r:2 * r]),
                    jnp.maximum(y[2 * r:3 * r], y[3 * r:4 * r]))
    # Bias is constant across the pool window -> added once, after the max.
    # pool1 rows, ordered (pool position, image); cast for the bf16 path.
    m = (m + b1_ref[...]).astype(w2_ref.dtype)

    # --- Conv2d(32,64,5) on the pool-covered output positions ---------------
    # In-kernel im2col: 25 accumulating (P*bt, 32) @ (32, 64) matmuls; each
    # tap's LHS is cov_h static, bt-aligned row bands of pool1 concatenated
    # along rows (never any HBM patch tensor / lane-dim shuffles).  A further
    # MXU-push saving would group taps by kernel row into K=160/800 dots via
    # lane-dim concats; skipped to keep lowering trivially safe.
    n_cov = cov_h * cov_w
    cout2 = w2_ref.shape[-1]
    acc = jnp.zeros((n_cov * bt, cout2), jnp.float32)
    for ki in range(5):
        for kj in range(5):
            parts = [
                m[((oi + ki) * pool_w + kj) * bt:
                  ((oi + ki) * pool_w + kj) * bt + cov_w * bt]
                for oi in range(cov_h)
            ]
            lhs = parts[0] if cov_h == 1 else jnp.concatenate(parts, axis=0)
            acc = acc + jnp.dot(lhs, w2_ref[ki * 5 + kj],
                                preferred_element_type=jnp.float32)

    # --- MaxPool2d(2,2) + AdaptiveMaxPool2d((1,1)) fold into one global max
    #     over the pool-covered conv2 positions; Dropout2d(0.5) is identity
    #     in eval mode. ------------------------------------------------------
    g = jnp.max(acc.reshape(n_cov, bt, cout2), axis=0)        # (bt, 64)
    g = g + b2_ref[...]

    # --- Flatten + Linear(64,32) + ReLU + Linear(32,10) ----------------------
    h = jnp.maximum(
        jnp.dot(g, w3_ref[...], preferred_element_type=jnp.float32)
        + b3_ref[...], 0.0)
    o_ref[...] = (jnp.dot(h, w4_ref[...], preferred_element_type=jnp.float32)
                  + b4_ref[...]).astype(o_ref.dtype)


# ---------------------------------------------------------------------------
# Host-side glue (cheap, small tensors only).
# ---------------------------------------------------------------------------
def _im2col_nhwc(x, kh, kw):
    # x: (N, H, W, C), valid conv, stride 1; feature order = (kh, kw, cin).
    n, h, w, c = x.shape
    oh, ow = h - kh + 1, w - kw + 1
    cols = [x[:, i:i + oh, j:j + ow, :] for i in range(kh) for j in range(kw)]
    return jnp.concatenate(cols, axis=-1), oh, ow


def _quadrant_position_major(p, oh, ow):
    # (N, OH, OW, K) -> (4*cells, N, K), leading index = q*cells + py*PW + px
    # with q = dy*2 + dx, so an elementwise max over the 4 quadrant row-blocks
    # implements MaxPool2d(2,2) (floor semantics) and all downstream slices
    # are image-tile aligned.  This is the only host transpose left and it
    # acts on the small conv1 patch tensor.
    n, _, _, k = p.shape
    ph, pw = oh // 2, ow // 2
    p = p[:, :2 * ph, :2 * pw, :].reshape(n, ph, 2, pw, 2, k)
    p = jnp.transpose(p, (2, 4, 1, 3, 0, 5))          # (dy, dx, py, px, n, k)
    return p.reshape(4 * ph * pw, n, k), ph, pw


def _round_up(x, m):
    return ((x + m - 1) // m) * m


def _pick_batch_tile(n, bt_max=32):
    # Tile grows with the batch (multiple of 8) up to bt_max; the batch is
    # padded so the grid always has >= 2 steps (v7x megacore).  bt_max=32 keeps
    # the lane-padded (…, bt, 9) patch block + intermediates inside the VMEM
    # budget at MNIST scale in f32; the bf16 path comfortably supports 64.
    bt = min(bt_max, _round_up(max((n + 1) // 2, 1), 8))
    n_pad = max(_round_up(n, bt), 2 * bt)
    return bt, n_pad


def netcov_forward(x_nchw, params, *, compute_dtype=jnp.float32):
    n = x_nchw.shape[0]
    x = jnp.transpose(x_nchw, (0, 2, 3, 1))           # NCHW -> NHWC

    p1, oh1, ow1 = _im2col_nhwc(x, 3, 3)              # conv1 patches (small)
    p1, ph, pw = _quadrant_position_major(p1, oh1, ow1)
    cells = ph * pw
    oh2, ow2 = ph - 4, pw - 4                         # conv2 output size
    cov_h, cov_w = 2 * (oh2 // 2), 2 * (ow2 // 2)     # pool-covered region

    bt, n_pad = _pick_batch_tile(n)
    if n_pad > n:
        p1 = jnp.pad(p1, ((0, 0), (0, n_pad - n), (0, 0)))
    p1 = p1.astype(compute_dtype)

    w1 = params["w1m"].astype(compute_dtype)
    w2 = params["w2t"].astype(compute_dtype)
    b1, b2 = params["b1"], params["b2"]
    w3, b3 = params["w3t"], params["b3"]
    w4, b4 = params["w4t"], params["b4"]

    kernel = functools.partial(_netcov_kernel, cells=cells, pool_w=pw,
                               cov_h=cov_h, cov_w=cov_w, bt=bt)

    def const(shape):
        return pl.BlockSpec(shape, lambda i, _r=len(shape): (0,) * _r)

    logits = pl.pallas_call(
        kernel,
        out_shape=jax.ShapeDtypeStruct((n_pad, w4.shape[1]), jnp.float32),
        grid=(n_pad // bt,),
        in_specs=[
            pl.BlockSpec((4 * cells, bt, p1.shape[-1]), lambda i: (0, i, 0)),
            const(w1.shape), const(b1.shape),
            const(w2.shape), const(b2.shape),
            const(w3.shape), const(b3.shape),
            const(w4.shape), const(b4.shape),
        ],
        out_specs=pl.BlockSpec((bt, w4.shape[1]), lambda i: (i, 0)),
        compiler_params=pltpu.CompilerParams(
            dimension_semantics=("parallel",),
            vmem_limit_bytes=48 * 1024 * 1024),
    )(p1, w1, b1, w2, b2, w3, b3, w4, b4)
    return logits[:n]


# ---------------------------------------------------------------------------
# Parameters (PyTorch layouts) and a pure-JAX reference.
# ---------------------------------------------------------------------------
def init_params(key):
    ks = jax.random.split(key, 8)
    w1 = jax.random.normal(ks[0], (32, 1, 3, 3), jnp.float32) * 0.1
    b1 = jax.random.normal(ks[1], (32,), jnp.float32) * 0.1
    w2 = jax.random.normal(ks[2], (64, 32, 5, 5), jnp.float32) * 0.05
    b2 = jax.random.normal(ks[3], (64,), jnp.float32) * 0.1
    w3 = jax.random.normal(ks[4], (32, 64), jnp.float32) * 0.1
    b3 = jax.random.normal(ks[5], (32,), jnp.float32) * 0.1
    w4 = jax.random.normal(ks[6], (10, 32), jnp.float32) * 0.1
    b4 = jax.random.normal(ks[7], (10,), jnp.float32) * 0.1
    params = {
        # (KH, KW, Cin, Cout) flattening matches the im2col feature order.
        "w1m": jnp.transpose(w1, (2, 3, 1, 0)).reshape(3 * 3 * 1, 32),
        "b1": b1.reshape(1, 32),
        # conv2 as 25 per-tap (Cin, Cout) matrices, tap index = ki*5 + kj.
        "w2t": jnp.transpose(w2, (2, 3, 1, 0)).reshape(25, 32, 64),
        "b2": b2.reshape(1, 64),
        "w3t": w3.T, "b3": b3.reshape(1, 32),
        "w4t": w4.T, "b4": b4.reshape(1, 10),
    }
    raw = {"w1": w1, "b1": b1, "w2": w2, "b2": b2,
           "w3": w3, "b3": b3, "w4": w4, "b4": b4}
    return params, raw


def reference_forward(x_nchw, raw):
    # Pure-JAX reference with PyTorch semantics (lax.conv + reduce_window).
    hp = lax.Precision.HIGHEST
    x = lax.conv_general_dilated(
        x_nchw, raw["w1"], (1, 1), "VALID",
        dimension_numbers=("NCHW", "OIHW", "NCHW"),
        precision=hp) + raw["b1"][None, :, None, None]
    x = lax.reduce_window(x, -jnp.inf, lax.max, (1, 1, 2, 2), (1, 1, 2, 2),
                          "VALID")
    x = lax.conv_general_dilated(
        x, raw["w2"], (1, 1), "VALID",
        dimension_numbers=("NCHW", "OIHW", "NCHW"),
        precision=hp) + raw["b2"][None, :, None, None]
    x = lax.reduce_window(x, -jnp.inf, lax.max, (1, 1, 2, 2), (1, 1, 2, 2),
                          "VALID")
    x = jnp.max(x, axis=(2, 3))                       # AdaptiveMaxPool + Flatten
    x = jnp.maximum(jnp.dot(x, raw["w3"].T, precision=hp) + raw["b3"], 0.0)
    return jnp.dot(x, raw["w4"].T, precision=hp) + raw["b4"]


if __name__ == "__main__":
    key = jax.random.PRNGKey(0)
    kp, kx = jax.random.split(key)
    params, raw = init_params(kp)
    # NCHW input (PyTorch convention): batch=2, 1 channel, 16x16 spatial.
    x = jax.random.normal(kx, (2, 1, 16, 16), jnp.float32)

    fwd = jax.jit(netcov_forward, static_argnames=("compute_dtype",))
    ref = jax.block_until_ready(reference_forward(x, raw))

    # f32 path (default): matches the reference to MXU default precision.
    logits = jax.block_until_ready(fwd(x, params, compute_dtype=jnp.float32))
    assert logits.shape == (2, 10) and logits.dtype == jnp.float32
    err = float(jnp.max(jnp.abs(logits - ref)))
    assert jnp.allclose(logits, ref, rtol=2e-3, atol=2e-3), err

    # bf16 patch/weight path (review: v5e/v6e) -- f32 accumulation, looser tol.
    logits16 = jax.block_until_ready(fwd(x, params, compute_dtype=jnp.bfloat16))
    err16 = float(jnp.max(jnp.abs(logits16 - ref)))
    assert jnp.allclose(logits16, ref, rtol=3e-2, atol=3e-2), err16

    print("KERNEL_OK")
</pallas_src>

<mosaic_0001>
module attributes {stable_mosaic.version = 11 : i64} {
  func.func @_netcov_kernel(%arg0: i32, %arg1: memref<196x8x9xf32, #tpu.memory_space<vmem>>, %arg2: memref<9x32xf32, #tpu.memory_space<vmem>>, %arg3: memref<1x32xf32, #tpu.memory_space<vmem>>, %arg4: memref<25x32x64xf32, #tpu.memory_space<vmem>>, %arg5: memref<1x64xf32, #tpu.memory_space<vmem>>, %arg6: memref<64x32xf32, #tpu.memory_space<vmem>>, %arg7: memref<1x32xf32, #tpu.memory_space<vmem>>, %arg8: memref<32x10xf32, #tpu.memory_space<vmem>>, %arg9: memref<1x10xf32, #tpu.memory_space<vmem>>, %arg10: memref<8x10xf32, #tpu.memory_space<vmem>>) attributes {dimension_semantics = [#tpu.dimension_semantics<parallel>], iteration_bounds = array<i64: 2>, scalar_prefetch = 0 : i64, scratch_operands = 0 : i64, tpu.core_type = #tpu.core_type<tc>, window_params = [{transform_indices = @transform_0, window_bounds = array<i64: 196, 8, 9>}, {pipeline_mode = #tpu.pipeline_mode<synchronous>, transform_indices = @transform_1, window_bounds = array<i64: 9, 32>}, {pipeline_mode = #tpu.pipeline_mode<synchronous>, transform_indices = @transform_2, window_bounds = array<i64: 1, 32>}, {pipeline_mode = #tpu.pipeline_mode<synchronous>, transform_indices = @transform_3, window_bounds = array<i64: 25, 32, 64>}, {pipeline_mode = #tpu.pipeline_mode<synchronous>, transform_indices = @transform_4, window_bounds = array<i64: 1, 64>}, {pipeline_mode = #tpu.pipeline_mode<synchronous>, transform_indices = @transform_5, window_bounds = array<i64: 64, 32>}, {pipeline_mode = #tpu.pipeline_mode<synchronous>, transform_indices = @transform_6, window_bounds = array<i64: 1, 32>}, {pipeline_mode = #tpu.pipeline_mode<synchronous>, transform_indices = @transform_7, window_bounds = array<i64: 32, 10>}, {pipeline_mode = #tpu.pipeline_mode<synchronous>, transform_indices = @transform_8, window_bounds = array<i64: 1, 10>}, {transform_indices = @transform_9, window_bounds = array<i64: 8, 10>}]} {
    %c0 = arith.constant 0 : index
    %c0_0 = arith.constant 0 : index
    %c0_1 = arith.constant 0 : index
    %0 = vector.load %arg1[%c0, %c0_0, %c0_1] : memref<196x8x9xf32, #tpu.memory_space<vmem>>, vector<196x8x9xf32>
    %1 = vector.shape_cast %0 : vector<196x8x9xf32> to vector<1568x9xf32>
    %c0_2 = arith.constant 0 : index
    %c0_3 = arith.constant 0 : index
    %2 = vector.load %arg2[%c0_2, %c0_3] : memref<9x32xf32, #tpu.memory_space<vmem>>, vector<9x32xf32>
    %cst = arith.constant dense<0.000000e+00> : vector<1568x32xf32>
    %3 = tpu.matmul %1, %2, %cst {dimension_numbers = #tpu.dot_dimension_numbers<[1], [0], [0], [1], [0, 0, 1, 1], [], []>} : vector<1568x9xf32>, vector<9x32xf32>, vector<1568x32xf32> -> vector<1568x32xf32>
    %4 = vector.extract_strided_slice %3 {offsets = [0, 0], sizes = [392, 32], strides = [1, 1]} : vector<1568x32xf32> to vector<392x32xf32>
    %5 = vector.extract_strided_slice %3 {offsets = [392, 0], sizes = [392, 32], strides = [1, 1]} : vector<1568x32xf32> to vector<392x32xf32>
    %6 = arith.maximumf %4, %5 : vector<392x32xf32>
    %7 = vector.extract_strided_slice %3 {offsets = [784, 0], sizes = [392, 32], strides = [1, 1]} : vector<1568x32xf32> to vector<392x32xf32>
    %8 = vector.extract_strided_slice %3 {offsets = [1176, 0], sizes = [392, 32], strides = [1, 1]} : vector<1568x32xf32> to vector<392x32xf32>
    %9 = arith.maximumf %7, %8 : vector<392x32xf32>
    %10 = arith.maximumf %6, %9 : vector<392x32xf32>
    %c0_4 = arith.constant 0 : index
    %c0_5 = arith.constant 0 : index
    %11 = vector.load %arg3[%c0_4, %c0_5] : memref<1x32xf32, #tpu.memory_space<vmem>>, vector<1x32xf32>
    %12 = vector.broadcast %11 : vector<1x32xf32> to vector<392x32xf32>
    %13 = arith.addf %10, %12 : vector<392x32xf32>
    %cst_6 = arith.constant 0.000000e+00 : f32
    %14 = vector.broadcast %cst_6 : f32 to vector<32x64xf32>
    %15 = vector.extract_strided_slice %13 {offsets = [0, 0], sizes = [16, 32], strides = [1, 1]} : vector<392x32xf32> to vector<16x32xf32>
    %16 = vector.extract_strided_slice %13 {offsets = [56, 0], sizes = [16, 32], strides = [1, 1]} : vector<392x32xf32> to vector<16x32xf32>
    %17 = tpu.concatenate %15, %16 in 0 : vector<16x32xf32>, vector<16x32xf32> -> vector<32x32xf32>
    %c0_7 = arith.constant 0 : index
    %c0_8 = arith.constant 0 : index
    %c0_9 = arith.constant 0 : index
    %18 = vector.load %arg4[%c0_7, %c0_8, %c0_9] : memref<25x32x64xf32, #tpu.memory_space<vmem>>, vector<1x32x64xf32>
    %19 = vector.shape_cast %18 : vector<1x32x64xf32> to vector<32x64xf32>
    %cst_10 = arith.constant dense<0.000000e+00> : vector<32x64xf32>
    %20 = tpu.matmul %17, %19, %cst_10 {dimension_numbers = #tpu.dot_dimension_numbers<[1], [0], [0], [1], [0, 0, 1, 1], [], []>} : vector<32x32xf32>, vector<32x64xf32>, vector<32x64xf32> -> vector<32x64xf32>
    %21 = arith.addf %14, %20 : vector<32x64xf32>
    %22 = vector.extract_strided_slice %13 {offsets = [8, 0], sizes = [16, 32], strides = [1, 1]} : vector<392x32xf32> to vector<16x32xf32>
    %23 = vector.extract_strided_slice %13 {offsets = [64, 0], sizes = [16, 32], strides = [1, 1]} : vector<392x32xf32> to vector<16x32xf32>
    %24 = tpu.concatenate %22, %23 in 0 : vector<16x32xf32>, vector<16x32xf32> -> vector<32x32xf32>
    %c1 = arith.constant 1 : index
    %c0_11 = arith.constant 0 : index
    %c0_12 = arith.constant 0 : index
    %25 = vector.load %arg4[%c1, %c0_11, %c0_12] : memref<25x32x64xf32, #tpu.memory_space<vmem>>, vector<1x32x64xf32>
    %26 = vector.shape_cast %25 : vector<1x32x64xf32> to vector<32x64xf32>
    %cst_13 = arith.constant dense<0.000000e+00> : vector<32x64xf32>
    %27 = tpu.matmul %24, %26, %cst_13 {dimension_numbers = #tpu.dot_dimension_numbers<[1], [0], [0], [1], [0, 0, 1, 1], [], []>} : vector<32x32xf32>, vector<32x64xf32>, vector<32x64xf32> -> vector<32x64xf32>
    %28 = arith.addf %21, %27 : vector<32x64xf32>
    %29 = vector.extract_strided_slice %13 {offsets = [16, 0], sizes = [16, 32], strides = [1, 1]} : vector<392x32xf32> to vector<16x32xf32>
    %30 = vector.extract_strided_slice %13 {offsets = [72, 0], sizes = [16, 32], strides = [1, 1]} : vector<392x32xf32> to vector<16x32xf32>
    %31 = tpu.concatenate %29, %30 in 0 : vector<16x32xf32>, vector<16x32xf32> -> vector<32x32xf32>
    %c2 = arith.constant 2 : index
    %c0_14 = arith.constant 0 : index
    %c0_15 = arith.constant 0 : index
    %32 = vector.load %arg4[%c2, %c0_14, %c0_15] : memref<25x32x64xf32, #tpu.memory_space<vmem>>, vector<1x32x64xf32>
    %33 = vector.shape_cast %32 : vector<1x32x64xf32> to vector<32x64xf32>
    %cst_16 = arith.constant dense<0.000000e+00> : vector<32x64xf32>
    %34 = tpu.matmul %31, %33, %cst_16 {dimension_numbers = #tpu.dot_dimension_numbers<[1], [0], [0], [1], [0, 0, 1, 1], [], []>} : vector<32x32xf32>, vector<32x64xf32>, vector<32x64xf32> -> vector<32x64xf32>
    %35 = arith.addf %28, %34 : vector<32x64xf32>
    %36 = vector.extract_strided_slice %13 {offsets = [24, 0], sizes = [16, 32], strides = [1, 1]} : vector<392x32xf32> to vector<16x32xf32>
    %37 = vector.extract_strided_slice %13 {offsets = [80, 0], sizes = [16, 32], strides = [1, 1]} : vector<392x32xf32> to vector<16x32xf32>
    %38 = tpu.concatenate %36, %37 in 0 : vector<16x32xf32>, vector<16x32xf32> -> vector<32x32xf32>
    %c3 = arith.constant 3 : index
    %c0_17 = arith.constant 0 : index
    %c0_18 = arith.constant 0 : index
    %39 = vector.load %arg4[%c3, %c0_17, %c0_18] : memref<25x32x64xf32, #tpu.memory_space<vmem>>, vector<1x32x64xf32>
    %40 = vector.shape_cast %39 : vector<1x32x64xf32> to vector<32x64xf32>
    %cst_19 = arith.constant dense<0.000000e+00> : vector<32x64xf32>
    %41 = tpu.matmul %38, %40, %cst_19 {dimension_numbers = #tpu.dot_dimension_numbers<[1], [0], [0], [1], [0, 0, 1, 1], [], []>} : vector<32x32xf32>, vector<32x64xf32>, vector<32x64xf32> -> vector<32x64xf32>
    %42 = arith.addf %35, %41 : vector<32x64xf32>
    %43 = vector.extract_strided_slice %13 {offsets = [32, 0], sizes = [16, 32], strides = [1, 1]} : vector<392x32xf32> to vector<16x32xf32>
    %44 = vector.extract_strided_slice %13 {offsets = [88, 0], sizes = [16, 32], strides = [1, 1]} : vector<392x32xf32> to vector<16x32xf32>
    %45 = tpu.concatenate %43, %44 in 0 : vector<16x32xf32>, vector<16x32xf32> -> vector<32x32xf32>
    %c4 = arith.constant 4 : index
    %c0_20 = arith.constant 0 : index
    %c0_21 = arith.constant 0 : index
    %46 = vector.load %arg4[%c4, %c0_20, %c0_21] : memref<25x32x64xf32, #tpu.memory_space<vmem>>, vector<1x32x64xf32>
    %47 = vector.shape_cast %46 : vector<1x32x64xf32> to vector<32x64xf32>
    %cst_22 = arith.constant dense<0.000000e+00> : vector<32x64xf32>
    %48 = tpu.matmul %45, %47, %cst_22 {dimension_numbers = #tpu.dot_dimension_numbers<[1], [0], [0], [1], [0, 0, 1, 1], [], []>} : vector<32x32xf32>, vector<32x64xf32>, vector<32x64xf32> -> vector<32x64xf32>
    %49 = arith.addf %42, %48 : vector<32x64xf32>
    %50 = vector.extract_strided_slice %13 {offsets = [56, 0], sizes = [16, 32], strides = [1, 1]} : vector<392x32xf32> to vector<16x32xf32>
    %51 = vector.extract_strided_slice %13 {offsets = [112, 0], sizes = [16, 32], strides = [1, 1]} : vector<392x32xf32> to vector<16x32xf32>
    %52 = tpu.concatenate %50, %51 in 0 : vector<16x32xf32>, vector<16x32xf32> -> vector<32x32xf32>
    %c5 = arith.constant 5 : index
    %c0_23 = arith.constant 0 : index
    %c0_24 = arith.constant 0 : index
    %53 = vector.load %arg4[%c5, %c0_23, %c0_24] : memref<25x32x64xf32, #tpu.memory_space<vmem>>, vector<1x32x64xf32>
    %54 = vector.shape_cast %53 : vector<1x32x64xf32> to vector<32x64xf32>
    %cst_25 = arith.constant dense<0.000000e+00> : vector<32x64xf32>
    %55 = tpu.matmul %52, %54, %cst_25 {dimension_numbers = #tpu.dot_dimension_numbers<[1], [0], [0], [1], [0, 0, 1, 1], [], []>} : vector<32x32xf32>, vector<32x64xf32>, vector<32x64xf32> -> vector<32x64xf32>
    %56 = arith.addf %49, %55 : vector<32x64xf32>
    %57 = vector.extract_strided_slice %13 {offsets = [64, 0], sizes = [16, 32], strides = [1, 1]} : vector<392x32xf32> to vector<16x32xf32>
    %58 = vector.extract_strided_slice %13 {offsets = [120, 0], sizes = [16, 32], strides = [1, 1]} : vector<392x32xf32> to vector<16x32xf32>
    %59 = tpu.concatenate %57, %58 in 0 : vector<16x32xf32>, vector<16x32xf32> -> vector<32x32xf32>
    %c6 = arith.constant 6 : index
    %c0_26 = arith.constant 0 : index
    %c0_27 = arith.constant 0 : index
    %60 = vector.load %arg4[%c6, %c0_26, %c0_27] : memref<25x32x64xf32, #tpu.memory_space<vmem>>, vector<1x32x64xf32>
    %61 = vector.shape_cast %60 : vector<1x32x64xf32> to vector<32x64xf32>
    %cst_28 = arith.constant dense<0.000000e+00> : vector<32x64xf32>
    %62 = tpu.matmul %59, %61, %cst_28 {dimension_numbers = #tpu.dot_dimension_numbers<[1], [0], [0], [1], [0, 0, 1, 1], [], []>} : vector<32x32xf32>, vector<32x64xf32>, vector<32x64xf32> -> vector<32x64xf32>
    %63 = arith.addf %56, %62 : vector<32x64xf32>
    %64 = vector.extract_strided_slice %13 {offsets = [72, 0], sizes = [16, 32], strides = [1, 1]} : vector<392x32xf32> to vector<16x32xf32>
    %65 = vector.extract_strided_slice %13 {offsets = [128, 0], sizes = [16, 32], strides = [1, 1]} : vector<392x32xf32> to vector<16x32xf32>
    %66 = tpu.concatenate %64, %65 in 0 : vector<16x32xf32>, vector<16x32xf32> -> vector<32x32xf32>
    %c7 = arith.constant 7 : index
    %c0_29 = arith.constant 0 : index
    %c0_30 = arith.constant 0 : index
    %67 = vector.load %arg4[%c7, %c0_29, %c0_30] : memref<25x32x64xf32, #tpu.memory_space<vmem>>, vector<1x32x64xf32>
    %68 = vector.shape_cast %67 : vector<1x32x64xf32> to vector<32x64xf32>
    %cst_31 = arith.constant dense<0.000000e+00> : vector<32x64xf32>
    %69 = tpu.matmul %66, %68, %cst_31 {dimension_numbers = #tpu.dot_dimension_numbers<[1], [0], [0], [1], [0, 0, 1, 1], [], []>} : vector<32x32xf32>, vector<32x64xf32>, vector<32x64xf32> -> vector<32x64xf32>
    %70 = arith.addf %63, %69 : vector<32x64xf32>
    %71 = vector.extract_strided_slice %13 {offsets = [80, 0], sizes = [16, 32], strides = [1, 1]} : vector<392x32xf32> to vector<16x32xf32>
    %72 = vector.extract_strided_slice %13 {offsets = [136, 0], sizes = [16, 32], strides = [1, 1]} : vector<392x32xf32> to vector<16x32xf32>
    %73 = tpu.concatenate %71, %72 in 0 : vector<16x32xf32>, vector<16x32xf32> -> vector<32x32xf32>
    %c8 = arith.constant 8 : index
    %c0_32 = arith.constant 0 : index
    %c0_33 = arith.constant 0 : index
    %74 = vector.load %arg4[%c8, %c0_32, %c0_33] : memref<25x32x64xf32, #tpu.memory_space<vmem>>, vector<1x32x64xf32>
    %75 = vector.shape_cast %74 : vector<1x32x64xf32> to vector<32x64xf32>
    %cst_34 = arith.constant dense<0.000000e+00> : vector<32x64xf32>
    %76 = tpu.matmul %73, %75, %cst_34 {dimension_numbers = #tpu.dot_dimension_numbers<[1], [0], [0], [1], [0, 0, 1, 1], [], []>} : vector<32x32xf32>, vector<32x64xf32>, vector<32x64xf32> -> vector<32x64xf32>
    %77 = arith.addf %70, %76 : vector<32x64xf32>
    %78 = vector.extract_strided_slice %13 {offsets = [88, 0], sizes = [16, 32], strides = [1, 1]} : vector<392x32xf32> to vector<16x32xf32>
    %79 = vector.extract_strided_slice %13 {offsets = [144, 0], sizes = [16, 32], strides = [1, 1]} : vector<392x32xf32> to vector<16x32xf32>
    %80 = tpu.concatenate %78, %79 in 0 : vector<16x32xf32>, vector<16x32xf32> -> vector<32x32xf32>
    %c9 = arith.constant 9 : index
    %c0_35 = arith.constant 0 : index
    %c0_36 = arith.constant 0 : index
    %81 = vector.load %arg4[%c9, %c0_35, %c0_36] : memref<25x32x64xf32, #tpu.memory_space<vmem>>, vector<1x32x64xf32>
    %82 = vector.shape_cast %81 : vector<1x32x64xf32> to vector<32x64xf32>
    %cst_37 = arith.constant dense<0.000000e+00> : vector<32x64xf32>
    %83 = tpu.matmul %80, %82, %cst_37 {dimension_numbers = #tpu.dot_dimension_numbers<[1], [0], [0], [1], [0, 0, 1, 1], [], []>} : vector<32x32xf32>, vector<32x64xf32>, vector<32x64xf32> -> vector<32x64xf32>
    %84 = arith.addf %77, %83 : vector<32x64xf32>
    %85 = vector.extract_strided_slice %13 {offsets = [112, 0], sizes = [16, 32], strides = [1, 1]} : vector<392x32xf32> to vector<16x32xf32>
    %86 = vector.extract_strided_slice %13 {offsets = [168, 0], sizes = [16, 32], strides = [1, 1]} : vector<392x32xf32> to vector<16x32xf32>
    %87 = tpu.concatenate %85, %86 in 0 : vector<16x32xf32>, vector<16x32xf32> -> vector<32x32xf32>
    %c10 = arith.constant 10 : index
    %c0_38 = arith.constant 0 : index
    %c0_39 = arith.constant 0 : index
    %88 = vector.load %arg4[%c10, %c0_38, %c0_39] : memref<25x32x64xf32, #tpu.memory_space<vmem>>, vector<1x32x64xf32>
    %89 = vector.shape_cast %88 : vector<1x32x64xf32> to vector<32x64xf32>
    %cst_40 = arith.constant dense<0.000000e+00> : vector<32x64xf32>
    %90 = tpu.matmul %87, %89, %cst_40 {dimension_numbers = #tpu.dot_dimension_numbers<[1], [0], [0], [1], [0, 0, 1, 1], [], []>} : vector<32x32xf32>, vector<32x64xf32>, vector<32x64xf32> -> vector<32x64xf32>
    %91 = arith.addf %84, %90 : vector<32x64xf32>
    %92 = vector.extract_strided_slice %13 {offsets = [120, 0], sizes = [16, 32], strides = [1, 1]} : vector<392x32xf32> to vector<16x32xf32>
    %93 = vector.extract_strided_slice %13 {offsets = [176, 0], sizes = [16, 32], strides = [1, 1]} : vector<392x32xf32> to vector<16x32xf32>
    %94 = tpu.concatenate %92, %93 in 0 : vector<16x32xf32>, vector<16x32xf32> -> vector<32x32xf32>
    %c11 = arith.constant 11 : index
    %c0_41 = arith.constant 0 : index
    %c0_42 = arith.constant 0 : index
    %95 = vector.load %arg4[%c11, %c0_41, %c0_42] : memref<25x32x64xf32, #tpu.memory_space<vmem>>, vector<1x32x64xf32>
    %96 = vector.shape_cast %95 : vector<1x32x64xf32> to vector<32x64xf32>
    %cst_43 = arith.constant dense<0.000000e+00> : vector<32x64xf32>
    %97 = tpu.matmul %94, %96, %cst_43 {dimension_numbers = #tpu.dot_dimension_numbers<[1], [0], [0], [1], [0, 0, 1, 1], [], []>} : vector<32x32xf32>, vector<32x64xf32>, vector<32x64xf32> -> vector<32x64xf32>
    %98 = arith.addf %91, %97 : vector<32x64xf32>
    %99 = vector.extract_strided_slice %13 {offsets = [128, 0], sizes = [16, 32], strides = [1, 1]} : vector<392x32xf32> to vector<16x32xf32>
    %100 = vector.extract_strided_slice %13 {offsets = [184, 0], sizes = [16, 32], strides = [1, 1]} : vector<392x32xf32> to vector<16x32xf32>
    %101 = tpu.concatenate %99, %100 in 0 : vector<16x32xf32>, vector<16x32xf32> -> vector<32x32xf32>
    %c12 = arith.constant 12 : index
    %c0_44 = arith.constant 0 : index
    %c0_45 = arith.constant 0 : index
    %102 = vector.load %arg4[%c12, %c0_44, %c0_45] : memref<25x32x64xf32, #tpu.memory_space<vmem>>, vector<1x32x64xf32>
    %103 = vector.shape_cast %102 : vector<1x32x64xf32> to vector<32x64xf32>
    %cst_46 = arith.constant dense<0.000000e+00> : vector<32x64xf32>
    %104 = tpu.matmul %101, %103, %cst_46 {dimension_numbers = #tpu.dot_dimension_numbers<[1], [0], [0], [1], [0, 0, 1, 1], [], []>} : vector<32x32xf32>, vector<32x64xf32>, vector<32x64xf32> -> vector<32x64xf32>
    %105 = arith.addf %98, %104 : vector<32x64xf32>
    %106 = vector.extract_strided_slice %13 {offsets = [136, 0], sizes = [16, 32], strides = [1, 1]} : vector<392x32xf32> to vector<16x32xf32>
    %107 = vector.extract_strided_slice %13 {offsets = [192, 0], sizes = [16, 32], strides = [1, 1]} : vector<392x32xf32> to vector<16x32xf32>
    %108 = tpu.concatenate %106, %107 in 0 : vector<16x32xf32>, vector<16x32xf32> -> vector<32x32xf32>
    %c13 = arith.constant 13 : index
    %c0_47 = arith.constant 0 : index
    %c0_48 = arith.constant 0 : index
    %109 = vector.load %arg4[%c13, %c0_47, %c0_48] : memref<25x32x64xf32, #tpu.memory_space<vmem>>, vector<1x32x64xf32>
    %110 = vector.shape_cast %109 : vector<1x32x64xf32> to vector<32x64xf32>
    %cst_49 = arith.constant dense<0.000000e+00> : vector<32x64xf32>
    %111 = tpu.matmul %108, %110, %cst_49 {dimension_numbers = #tpu.dot_dimension_numbers<[1], [0], [0], [1], [0, 0, 1, 1], [], []>} : vector<32x32xf32>, vector<32x64xf32>, vector<32x64xf32> -> vector<32x64xf32>
    %112 = arith.addf %105, %111 : vector<32x64xf32>
    %113 = vector.extract_strided_slice %13 {offsets = [144, 0], sizes = [16, 32], strides = [1, 1]} : vector<392x32xf32> to vector<16x32xf32>
    %114 = vector.extract_strided_slice %13 {offsets = [200, 0], sizes = [16, 32], strides = [1, 1]} : vector<392x32xf32> to vector<16x32xf32>
    %115 = tpu.concatenate %113, %114 in 0 : vector<16x32xf32>, vector<16x32xf32> -> vector<32x32xf32>
    %c14 = arith.constant 14 : index
    %c0_50 = arith.constant 0 : index
    %c0_51 = arith.constant 0 : index
    %116 = vector.load %arg4[%c14, %c0_50, %c0_51] : memref<25x32x64xf32, #tpu.memory_space<vmem>>, vector<1x32x64xf32>
    %117 = vector.shape_cast %116 : vector<1x32x64xf32> to vector<32x64xf32>
    %cst_52 = arith.constant dense<0.000000e+00> : vector<32x64xf32>
    %118 = tpu.matmul %115, %117, %cst_52 {dimension_numbers = #tpu.dot_dimension_numbers<[1], [0], [0], [1], [0, 0, 1, 1], [], []>} : vector<32x32xf32>, vector<32x64xf32>, vector<32x64xf32> -> vector<32x64xf32>
    %119 = arith.addf %112, %118 : vector<32x64xf32>
    %120 = vector.extract_strided_slice %13 {offsets = [168, 0], sizes = [16, 32], strides = [1, 1]} : vector<392x32xf32> to vector<16x32xf32>
    %121 = vector.extract_strided_slice %13 {offsets = [224, 0], sizes = [16, 32], strides = [1, 1]} : vector<392x32xf32> to vector<16x32xf32>
    %122 = tpu.concatenate %120, %121 in 0 : vector<16x32xf32>, vector<16x32xf32> -> vector<32x32xf32>
    %c15 = arith.constant 15 : index
    %c0_53 = arith.constant 0 : index
    %c0_54 = arith.constant 0 : index
    %123 = vector.load %arg4[%c15, %c0_53, %c0_54] : memref<25x32x64xf32, #tpu.memory_space<vmem>>, vector<1x32x64xf32>
    %124 = vector.shape_cast %123 : vector<1x32x64xf32> to vector<32x64xf32>
    %cst_55 = arith.constant dense<0.000000e+00> : vector<32x64xf32>
    %125 = tpu.matmul %122, %124, %cst_55 {dimension_numbers = #tpu.dot_dimension_numbers<[1], [0], [0], [1], [0, 0, 1, 1], [], []>} : vector<32x32xf32>, vector<32x64xf32>, vector<32x64xf32> -> vector<32x64xf32>
    %126 = arith.addf %119, %125 : vector<32x64xf32>
    %127 = vector.extract_strided_slice %13 {offsets = [176, 0], sizes = [16, 32], strides = [1, 1]} : vector<392x32xf32> to vector<16x32xf32>
    %128 = vector.extract_strided_slice %13 {offsets = [232, 0], sizes = [16, 32], strides = [1, 1]} : vector<392x32xf32> to vector<16x32xf32>
    %129 = tpu.concatenate %127, %128 in 0 : vector<16x32xf32>, vector<16x32xf32> -> vector<32x32xf32>
    %c16 = arith.constant 16 : index
    %c0_56 = arith.constant 0 : index
    %c0_57 = arith.constant 0 : index
    %130 = vector.load %arg4[%c16, %c0_56, %c0_57] : memref<25x32x64xf32, #tpu.memory_space<vmem>>, vector<1x32x64xf32>
    %131 = vector.shape_cast %130 : vector<1x32x64xf32> to vector<32x64xf32>
    %cst_58 = arith.constant dense<0.000000e+00> : vector<32x64xf32>
    %132 = tpu.matmul %129, %131, %cst_58 {dimension_numbers = #tpu.dot_dimension_numbers<[1], [0], [0], [1], [0, 0, 1, 1], [], []>} : vector<32x32xf32>, vector<32x64xf32>, vector<32x64xf32> -> vector<32x64xf32>
    %133 = arith.addf %126, %132 : vector<32x64xf32>
    %134 = vector.extract_strided_slice %13 {offsets = [184, 0], sizes = [16, 32], strides = [1, 1]} : vector<392x32xf32> to vector<16x32xf32>
    %135 = vector.extract_strided_slice %13 {offsets = [240, 0], sizes = [16, 32], strides = [1, 1]} : vector<392x32xf32> to vector<16x32xf32>
    %136 = tpu.concatenate %134, %135 in 0 : vector<16x32xf32>, vector<16x32xf32> -> vector<32x32xf32>
    %c17 = arith.constant 17 : index
    %c0_59 = arith.constant 0 : index
    %c0_60 = arith.constant 0 : index
    %137 = vector.load %arg4[%c17, %c0_59, %c0_60] : memref<25x32x64xf32, #tpu.memory_space<vmem>>, vector<1x32x64xf32>
    %138 = vector.shape_cast %137 : vector<1x32x64xf32> to vector<32x64xf32>
    %cst_61 = arith.constant dense<0.000000e+00> : vector<32x64xf32>
    %139 = tpu.matmul %136, %138, %cst_61 {dimension_numbers = #tpu.dot_dimension_numbers<[1], [0], [0], [1], [0, 0, 1, 1], [], []>} : vector<32x32xf32>, vector<32x64xf32>, vector<32x64xf32> -> vector<32x64xf32>
    %140 = arith.addf %133, %139 : vector<32x64xf32>
    %141 = vector.extract_strided_slice %13 {offsets = [192, 0], sizes = [16, 32], strides = [1, 1]} : vector<392x32xf32> to vector<16x32xf32>
    %142 = vector.extract_strided_slice %13 {offsets = [248, 0], sizes = [16, 32], strides = [1, 1]} : vector<392x32xf32> to vector<16x32xf32>
    %143 = tpu.concatenate %141, %142 in 0 : vector<16x32xf32>, vector<16x32xf32> -> vector<32x32xf32>
    %c18 = arith.constant 18 : index
    %c0_62 = arith.constant 0 : index
    %c0_63 = arith.constant 0 : index
    %144 = vector.load %arg4[%c18, %c0_62, %c0_63] : memref<25x32x64xf32, #tpu.memory_space<vmem>>, vector<1x32x64xf32>
    %145 = vector.shape_cast %144 : vector<1x32x64xf32> to vector<32x64xf32>
    %cst_64 = arith.constant dense<0.000000e+00> : vector<32x64xf32>
    %146 = tpu.matmul %143, %145, %cst_64 {dimension_numbers = #tpu.dot_dimension_numbers<[1], [0], [0], [1], [0, 0, 1, 1], [], []>} : vector<32x32xf32>, vector<32x64xf32>, vector<32x64xf32> -> vector<32x64xf32>
    %147 = arith.addf %140, %146 : vector<32x64xf32>
    %148 = vector.extract_strided_slice %13 {offsets = [200, 0], sizes = [16, 32], strides = [1, 1]} : vector<392x32xf32> to vector<16x32xf32>
    %149 = vector.extract_strided_slice %13 {offsets = [256, 0], sizes = [16, 32], strides = [1, 1]} : vector<392x32xf32> to vector<16x32xf32>
    %150 = tpu.concatenate %148, %149 in 0 : vector<16x32xf32>, vector<16x32xf32> -> vector<32x32xf32>
    %c19 = arith.constant 19 : index
    %c0_65 = arith.constant 0 : index
    %c0_66 = arith.constant 0 : index
    %151 = vector.load %arg4[%c19, %c0_65, %c0_66] : memref<25x32x64xf32, #tpu.memory_space<vmem>>, vector<1x32x64xf32>
    %152 = vector.shape_cast %151 : vector<1x32x64xf32> to vector<32x64xf32>
    %cst_67 = arith.constant dense<0.000000e+00> : vector<32x64xf32>
    %153 = tpu.matmul %150, %152, %cst_67 {dimension_numbers = #tpu.dot_dimension_numbers<[1], [0], [0], [1], [0, 0, 1, 1], [], []>} : vector<32x32xf32>, vector<32x64xf32>, vector<32x64xf32> -> vector<32x64xf32>
    %154 = arith.addf %147, %153 : vector<32x64xf32>
    %155 = vector.extract_strided_slice %13 {offsets = [224, 0], sizes = [16, 32], strides = [1, 1]} : vector<392x32xf32> to vector<16x32xf32>
    %156 = vector.extract_strided_slice %13 {offsets = [280, 0], sizes = [16, 32], strides = [1, 1]} : vector<392x32xf32> to vector<16x32xf32>
    %157 = tpu.concatenate %155, %156 in 0 : vector<16x32xf32>, vector<16x32xf32> -> vector<32x32xf32>
    %c20 = arith.constant 20 : index
    %c0_68 = arith.constant 0 : index
    %c0_69 = arith.constant 0 : index
    %158 = vector.load %arg4[%c20, %c0_68, %c0_69] : memref<25x32x64xf32, #tpu.memory_space<vmem>>, vector<1x32x64xf32>
    %159 = vector.shape_cast %158 : vector<1x32x64xf32> to vector<32x64xf32>
    %cst_70 = arith.constant dense<0.000000e+00> : vector<32x64xf32>
    %160 = tpu.matmul %157, %159, %cst_70 {dimension_numbers = #tpu.dot_dimension_numbers<[1], [0], [0], [1], [0, 0, 1, 1], [], []>} : vector<32x32xf32>, vector<32x64xf32>, vector<32x64xf32> -> vector<32x64xf32>
    %161 = arith.addf %154, %160 : vector<32x64xf32>
    %162 = vector.extract_strided_slice %13 {offsets = [232, 0], sizes = [16, 32], strides = [1, 1]} : vector<392x32xf32> to vector<16x32xf32>
    %163 = vector.extract_strided_slice %13 {offsets = [288, 0], sizes = [16, 32], strides = [1, 1]} : vector<392x32xf32> to vector<16x32xf32>
    %164 = tpu.concatenate %162, %163 in 0 : vector<16x32xf32>, vector<16x32xf32> -> vector<32x32xf32>
    %c21 = arith.constant 21 : index
    %c0_71 = arith.constant 0 : index
    %c0_72 = arith.constant 0 : index
    %165 = vector.load %arg4[%c21, %c0_71, %c0_72] : memref<25x32x64xf32, #tpu.memory_space<vmem>>, vector<1x32x64xf32>
    %166 = vector.shape_cast %165 : vector<1x32x64xf32> to vector<32x64xf32>
    %cst_73 = arith.constant dense<0.000000e+00> : vector<32x64xf32>
    %167 = tpu.matmul %164, %166, %cst_73 {dimension_numbers = #tpu.dot_dimension_numbers<[1], [0], [0], [1], [0, 0, 1, 1], [], []>} : vector<32x32xf32>, vector<32x64xf32>, vector<32x64xf32> -> vector<32x64xf32>
    %168 = arith.addf %161, %167 : vector<32x64xf32>
    %169 = vector.extract_strided_slice %13 {offsets = [240, 0], sizes = [16, 32], strides = [1, 1]} : vector<392x32xf32> to vector<16x32xf32>
    %170 = vector.extract_strided_slice %13 {offsets = [296, 0], sizes = [16, 32], strides = [1, 1]} : vector<392x32xf32> to vector<16x32xf32>
    %171 = tpu.concatenate %169, %170 in 0 : vector<16x32xf32>, vector<16x32xf32> -> vector<32x32xf32>
    %c22 = arith.constant 22 : index
    %c0_74 = arith.constant 0 : index
    %c0_75 = arith.constant 0 : index
    %172 = vector.load %arg4[%c22, %c0_74, %c0_75] : memref<25x32x64xf32, #tpu.memory_space<vmem>>, vector<1x32x64xf32>
    %173 = vector.shape_cast %172 : vector<1x32x64xf32> to vector<32x64xf32>
    %cst_76 = arith.constant dense<0.000000e+00> : vector<32x64xf32>
    %174 = tpu.matmul %171, %173, %cst_76 {dimension_numbers = #tpu.dot_dimension_numbers<[1], [0], [0], [1], [0, 0, 1, 1], [], []>} : vector<32x32xf32>, vector<32x64xf32>, vector<32x64xf32> -> vector<32x64xf32>
    %175 = arith.addf %168, %174 : vector<32x64xf32>
    %176 = vector.extract_strided_slice %13 {offsets = [248, 0], sizes = [16, 32], strides = [1, 1]} : vector<392x32xf32> to vector<16x32xf32>
    %177 = vector.extract_strided_slice %13 {offsets = [304, 0], sizes = [16, 32], strides = [1, 1]} : vector<392x32xf32> to vector<16x32xf32>
    %178 = tpu.concatenate %176, %177 in 0 : vector<16x32xf32>, vector<16x32xf32> -> vector<32x32xf32>
    %c23 = arith.constant 23 : index
    %c0_77 = arith.constant 0 : index
    %c0_78 = arith.constant 0 : index
    %179 = vector.load %arg4[%c23, %c0_77, %c0_78] : memref<25x32x64xf32, #tpu.memory_space<vmem>>, vector<1x32x64xf32>
    %180 = vector.shape_cast %179 : vector<1x32x64xf32> to vector<32x64xf32>
    %cst_79 = arith.constant dense<0.000000e+00> : vector<32x64xf32>
    %181 = tpu.matmul %178, %180, %cst_79 {dimension_numbers = #tpu.dot_dimension_numbers<[1], [0], [0], [1], [0, 0, 1, 1], [], []>} : vector<32x32xf32>, vector<32x64xf32>, vector<32x64xf32> -> vector<32x64xf32>
    %182 = arith.addf %175, %181 : vector<32x64xf32>
    %183 = vector.extract_strided_slice %13 {offsets = [256, 0], sizes = [16, 32], strides = [1, 1]} : vector<392x32xf32> to vector<16x32xf32>
    %184 = vector.extract_strided_slice %13 {offsets = [312, 0], sizes = [16, 32], strides = [1, 1]} : vector<392x32xf32> to vector<16x32xf32>
    %185 = tpu.concatenate %183, %184 in 0 : vector<16x32xf32>, vector<16x32xf32> -> vector<32x32xf32>
    %c24 = arith.constant 24 : index
    %c0_80 = arith.constant 0 : index
    %c0_81 = arith.constant 0 : index
    %186 = vector.load %arg4[%c24, %c0_80, %c0_81] : memref<25x32x64xf32, #tpu.memory_space<vmem>>, vector<1x32x64xf32>
    %187 = vector.shape_cast %186 : vector<1x32x64xf32> to vector<32x64xf32>
    %cst_82 = arith.constant dense<0.000000e+00> : vector<32x64xf32>
    %188 = tpu.matmul %185, %187, %cst_82 {dimension_numbers = #tpu.dot_dimension_numbers<[1], [0], [0], [1], [0, 0, 1, 1], [], []>} : vector<32x32xf32>, vector<32x64xf32>, vector<32x64xf32> -> vector<32x64xf32>
    %189 = arith.addf %182, %188 : vector<32x64xf32>
    %190 = vector.shape_cast %189 : vector<32x64xf32> to vector<4x8x64xf32>
    %cst_83 = arith.constant dense<0xFF800000> : vector<8x64xf32>
    %191 = vector.multi_reduction <maximumf>, %190, %cst_83 [0] : vector<4x8x64xf32> to vector<8x64xf32>
    %c0_84 = arith.constant 0 : index
    %c0_85 = arith.constant 0 : index
    %192 = vector.load %arg5[%c0_84, %c0_85] : memref<1x64xf32, #tpu.memory_space<vmem>>, vector<1x64xf32>
    %193 = vector.broadcast %192 : vector<1x64xf32> to vector<8x64xf32>
    %194 = arith.addf %191, %193 : vector<8x64xf32>
    %c0_86 = arith.constant 0 : index
    %c0_87 = arith.constant 0 : index
    %195 = vector.load %arg6[%c0_86, %c0_87] : memref<64x32xf32, #tpu.memory_space<vmem>>, vector<64x32xf32>
    %cst_88 = arith.constant dense<0.000000e+00> : vector<8x32xf32>
    %196 = tpu.matmul %194, %195, %cst_88 {dimension_numbers = #tpu.dot_dimension_numbers<[1], [0], [0], [1], [0, 0, 1, 1], [], []>} : vector<8x64xf32>, vector<64x32xf32>, vector<8x32xf32> -> vector<8x32xf32>
    %c0_89 = arith.constant 0 : index
    %c0_90 = arith.constant 0 : index
    %197 = vector.load %arg7[%c0_89, %c0_90] : memref<1x32xf32, #tpu.memory_space<vmem>>, vector<1x32xf32>
    %198 = vector.broadcast %197 : vector<1x32xf32> to vector<8x32xf32>
    %199 = arith.addf %196, %198 : vector<8x32xf32>
    %cst_91 = arith.constant 0.000000e+00 : f32
    %200 = vector.broadcast %cst_91 : f32 to vector<8x32xf32>
    %201 = arith.maximumf %199, %200 : vector<8x32xf32>
    %c0_92 = arith.constant 0 : index
    %c0_93 = arith.constant 0 : index
    %202 = vector.load %arg8[%c0_92, %c0_93] : memref<32x10xf32, #tpu.memory_space<vmem>>, vector<32x10xf32>
    %cst_94 = arith.constant dense<0.000000e+00> : vector<8x10xf32>
    %203 = tpu.matmul %201, %202, %cst_94 {dimension_numbers = #tpu.dot_dimension_numbers<[1], [0], [0], [1], [0, 0, 1, 1], [], []>} : vector<8x32xf32>, vector<32x10xf32>, vector<8x10xf32> -> vector<8x10xf32>
    %c0_95 = arith.constant 0 : index
    %c0_96 = arith.constant 0 : index
    %204 = vector.load %arg9[%c0_95, %c0_96] : memref<1x10xf32, #tpu.memory_space<vmem>>, vector<1x10xf32>
    %205 = vector.broadcast %204 : vector<1x10xf32> to vector<8x10xf32>
    %206 = arith.addf %203, %205 : vector<8x10xf32>
    %c0_97 = arith.constant 0 : index
    %c0_98 = arith.constant 0 : index
    %207 = vector.load %arg10[%c0_97, %c0_98] : memref<8x10xf32, #tpu.memory_space<vmem>>, vector<8x10xf32>
    tpu.vector_store %arg10[%c0_97, %c0_98], %206 {strides = array<i32>} : memref<8x10xf32, #tpu.memory_space<vmem>>, vector<8x10xf32>,
    return
  }
  func.func @transform_0(%arg0: i32) -> (i32, i32, i32) {
    %c0_i32 = arith.constant 0 : i32
    %c0_i32_0 = arith.constant 0 : i32
    %c0_i32_1 = arith.constant 0 : i32
    return %c0_i32, %arg0, %c0_i32_0 : i32, i32, i32
  }
  func.func @transform_1(%arg0: i32) -> (i32, i32) {
    %c0_i32 = arith.constant 0 : i32
    %c0_i32_0 = arith.constant 0 : i32
    %c0_i32_1 = arith.constant 0 : i32
    return %c0_i32, %c0_i32_0 : i32, i32
  }
  func.func @transform_2(%arg0: i32) -> (i32, i32) {
    %c0_i32 = arith.constant 0 : i32
    %c0_i32_0 = arith.constant 0 : i32
    %c0_i32_1 = arith.constant 0 : i32
    return %c0_i32, %c0_i32_0 : i32, i32
  }
  func.func @transform_3(%arg0: i32) -> (i32, i32, i32) {
    %c0_i32 = arith.constant 0 : i32
    %c0_i32_0 = arith.constant 0 : i32
    %c0_i32_1 = arith.constant 0 : i32
    %c0_i32_2 = arith.constant 0 : i32
    return %c0_i32, %c0_i32_0, %c0_i32_1 : i32, i32, i32
  }
  func.func @transform_4(%arg0: i32) -> (i32, i32) {
    %c0_i32 = arith.constant 0 : i32
    %c0_i32_0 = arith.constant 0 : i32
    %c0_i32_1 = arith.constant 0 : i32
    return %c0_i32, %c0_i32_0 : i32, i32
  }
  func.func @transform_5(%arg0: i32) -> (i32, i32) {
    %c0_i32 = arith.constant 0 : i32
    %c0_i32_0 = arith.constant 0 : i32
    %c0_i32_1 = arith.constant 0 : i32
    return %c0_i32, %c0_i32_0 : i32, i32
  }
  func.func @transform_6(%arg0: i32) -> (i32, i32) {
    %c0_i32 = arith.constant 0 : i32
    %c0_i32_0 = arith.constant 0 : i32
    %c0_i32_1 = arith.constant 0 : i32
    return %c0_i32, %c0_i32_0 : i32, i32
  }
  func.func @transform_7(%arg0: i32) -> (i32, i32) {
    %c0_i32 = arith.constant 0 : i32
    %c0_i32_0 = arith.constant 0 : i32
    %c0_i32_1 = arith.constant 0 : i32
    return %c0_i32, %c0_i32_0 : i32, i32
  }
  func.func @transform_8(%arg0: i32) -> (i32, i32) {
    %c0_i32 = arith.constant 0 : i32
    %c0_i32_0 = arith.constant 0 : i32
    %c0_i32_1 = arith.constant 0 : i32
    return %c0_i32, %c0_i32_0 : i32, i32
  }
  func.func @transform_9(%arg0: i32) -> (i32, i32) {
    %c0_i32 = arith.constant 0 : i32
    %c0_i32_0 = arith.constant 0 : i32
    return %arg0, %c0_i32 : i32, i32
  }
}

</mosaic_0001>

<bundles_post_ra>
// kernel: netcov_forward.1
= control target key start
LH: loop header
LB: loop body
LE: loop exit
PB: predicated region body
PF: predicated region fallthrough
CT: control target
= control target key end

     0   :  { %s7708_s30 = smov 0   ;;  %s7710_s10 = smov 0   ;;  %s9702_s0 = inlined_call_operand.vmem [shape: f32[196,16,9], index: 0, kind: input, shape index: {}]   ;;  %s9703_s1 = inlined_call_operand.vmem [shape: f32[9,32], index: 1, kind: input, shape index: {}]   ;;  %s9704_s2 = inlined_call_operand.vmem [shape: f32[1,32], index: 2, kind: input, shape index: {}]   ;;  %s9705_s3 = inlined_call_operand.vmem [shape: f32[25,32,64], index: 3, kind: input, shape index: {}]   ;;  %s9706_s4 = inlined_call_operand.vmem [shape: f32[1,64], index: 4, kind: input, shape index: {}]   ;;  %s9707_s5 = inlined_call_operand.vmem [shape: f32[64,32], index: 5, kind: input, shape index: {}]   ;;  %s9708_s6 = inlined_call_operand.vmem [shape: f32[1,32], index: 6, kind: input, shape index: {}]   ;;  %s9709_s7 = inlined_call_operand.vmem [shape: f32[32,10], index: 7, kind: input, shape index: {}]   ;;  %s9710_s8 = inlined_call_operand.vmem [shape: f32[1,10], index: 8, kind: input, shape index: {}]   ;;  %s9711_s9 = inlined_call_operand.vmem [shape: f32[16,10], index: 9, kind: output, shape index: {}]  }
   0x1   :  { %s7712_s11 = smov 0  }
   0x2 LB: > { %s5780_s12 = sadd.s32 4294967295, %s7652_s11   ;;  %s7725_s13 = sadd.s32 1, %s7652_s11   ;;  %s7652_s11 = sphi %s7712_s11, %s9898_s11   ;;  %s7648_s10 = sphi %s7710_s10, %s9897_s10   ;;  %s7644_s30 = sphi %s7708_s30, %s9896_s30  }
   0x3   : > { %s23_s14 = ssub.s32 %s7652_s11, %s7725_s13  ;;  %s26_s15 = sadd.s32 1, %s7648_s10 }
   0x4   : > { %p24_p0 = scmp.eq.s32.totalorder %s23_s14, 0  ;;  %p33_p1 = scmp.ne.s32.totalorder %s7648_s10, %s7644_s30 }
   0x5   : > { %p34_p2 = scmp.eq.s32.totalorder %s7652_s11, 0  ;;  %p5783_p4 = scmp.ge.s32.totalorder %s7652_s11, 2 }
   0x6   : > { %s7734_s16 = scalar_select %p24_p0, %s7648_s10, %s26_s15  }
   0x7   : > { %p35_p3 = por %p34_p2, %p33_p1  ;;  %277 = sbr.rel (%p5783_p4) target bundleno = 116 (0x74), region = 48 }
   0xe   : > { %280 = sbr.rel (!%p35_p3) target bundleno = 116 (0x74), region = 52  ;;  %s282_s17 = sand.u32 (%p35_p3), 1, %s7648_s10  }
   0xf   : > { %s5784_s18 = sshll.u32 (%p35_p3), %s7652_s11, 3  ;;  %s7600_s19 = smul.u32 (%p35_p3), 1568, %s282_s17 }
  0x10   : > { %s7742_s22 = scalar_lea.vmem (%p35_p3), %s9702_s0, %s5784_s18 }
  0x11   : > { %v704_v0 = vld [vmem:[%s7742_s22] sm:$0xff] (%p35_p3)  ;;  %v706_v1 = vld [vmem:[%s7742_s22 + $0x10] sm:$0xff] (%p35_p3)  ;;  %s7750_s23 = scalar_lea.vmem (%p35_p3), [#allocation2], %s7600_s19 }
  0x12   : > { %v708_v2 = vld [vmem:[%s7742_s22 + $0x20] sm:$0xff] (%p35_p3)  ;;  %v710_v3 = vld [vmem:[%s7742_s22 + $0x30] sm:$0xff] (%p35_p3)  ;;  %705 = vst [vmem:[%s7750_s23] sm:$0xff] (%p35_p3), %v704_v0  ;;  %707 = vst [vmem:[%s7750_s23 + $0x8] sm:$0xff] (%p35_p3), %v706_v1 }
  0x13   : > { %v712_v4 = vld [vmem:[%s7742_s22 + $0x40] sm:$0xff] (%p35_p3)  ;;  %v714_v5 = vld [vmem:[%s7742_s22 + $0x50] sm:$0xff] (%p35_p3)  ;;  %709 = vst [vmem:[%s7750_s23 + $0x10] sm:$0xff] (%p35_p3), %v708_v2  ;;  %711 = vst [vmem:[%s7750_s23 + $0x18] sm:$0xff] (%p35_p3), %v710_v3 }
  0x14   : > { %713 = vst [vmem:[%s7750_s23 + $0x20] sm:$0xff] (%p35_p3), %v712_v4  ;;  %715 = vst [vmem:[%s7750_s23 + $0x28] sm:$0xff] (%p35_p3), %v714_v5  ;;  %v716_v6 = vld [vmem:[%s7742_s22 + $0x60] sm:$0xff] (%p35_p3)  ;;  %v718_v7 = vld [vmem:[%s7742_s22 + $0x70] sm:$0xff] (%p35_p3) }
  0x15   : > { %v720_v8 = vld [vmem:[%s7742_s22 + $0x80] sm:$0xff]  ;;  %717 = vst [vmem:[%s7750_s23 + $0x30] sm:$0xff] %v716_v6  ;;  %719 = vst [vmem:[%s7750_s23 + $0x38] sm:$0xff] %v718_v7  ;;  %v722_v9 = vld [vmem:[%s7742_s22 + $0x90] sm:$0xff] }
  0x16   : > { %721 = vst [vmem:[%s7750_s23 + $0x40] sm:$0xff] %v720_v8  ;;  %v724_v10 = vld [vmem:[%s7742_s22 + $0xa0] sm:$0xff]  ;;  %v726_v11 = vld [vmem:[%s7742_s22 + $0xb0] sm:$0xff]  ;;  %723 = vst [vmem:[%s7750_s23 + $0x48] sm:$0xff] %v722_v9 }
  0x17   : > { %725 = vst [vmem:[%s7750_s23 + $0x50] sm:$0xff] %v724_v10  ;;  %727 = vst [vmem:[%s7750_s23 + $0x58] sm:$0xff] %v726_v11  ;;  %v728_v12 = vld [vmem:[%s7742_s22 + $0xc0] sm:$0xff]  ;;  %v730_v13 = vld [vmem:[%s7742_s22 + $0xd0] sm:$0xff] }
  0x18   : > { %v732_v14 = vld [vmem:[%s7742_s22 + $0xe0] sm:$0xff]  ;;  %729 = vst [vmem:[%s7750_s23 + $0x60] sm:$0xff] %v728_v12  ;;  %731 = vst [vmem:[%s7750_s23 + $0x68] sm:$0xff] %v730_v13  ;;  %v734_v15 = vld [vmem:[%s7742_s22 + $0xf0] sm:$0xff] }
  0x19   : > { %733 = vst [vmem:[%s7750_s23 + $0x70] sm:$0xff] %v732_v14  ;;  %v736_v16 = vld [vmem:[%s7742_s22 + $0x100] sm:$0xff]  ;;  %v738_v17 = vld [vmem:[%s7742_s22 + $0x110] sm:$0xff]  ;;  %735 = vst [vmem:[%s7750_s23 + $0x78] sm:$0xff] %v734_v15 }
  0x1a   : > { %737 = vst [vmem:[%s7750_s23 + $0x80] sm:$0xff] %v736_v16  ;;  %739 = vst [vmem:[%s7750_s23 + $0x88] sm:$0xff] %v738_v17  ;;  %v740_v18 = vld [vmem:[%s7742_s22 + $0x120] sm:$0xff]  ;;  %v742_v19 = vld [vmem:[%s7742_s22 + $0x130] sm:$0xff] }
  0x1b   : > { %v744_v20 = vld [vmem:[%s7742_s22 + $0x140] sm:$0xff]  ;;  %741 = vst [vmem:[%s7750_s23 + $0x90] sm:$0xff] %v740_v18  ;;  %743 = vst [vmem:[%s7750_s23 + $0x98] sm:$0xff] %v742_v19  ;;  %v746_v21 = vld [vmem:[%s7742_s22 + $0x150] sm:$0xff] }
  0x1c   : > { %745 = vst [vmem:[%s7750_s23 + $0xa0] sm:$0xff] %v744_v20  ;;  %v748_v22 = vld [vmem:[%s7742_s22 + $0x160] sm:$0xff]  ;;  %v750_v23 = vld [vmem:[%s7742_s22 + $0x170] sm:$0xff]  ;;  %747 = vst [vmem:[%s7750_s23 + $0xa8] sm:$0xff] %v746_v21 }
  0x1d   : > { %749 = vst [vmem:[%s7750_s23 + $0xb0] sm:$0xff] %v748_v22  ;;  %751 = vst [vmem:[%s7750_s23 + $0xb8] sm:$0xff] %v750_v23  ;;  %v752_v24 = vld [vmem:[%s7742_s22 + $0x180] sm:$0xff]  ;;  %v754_v25 = vld [vmem:[%s7742_s22 + $0x190] sm:$0xff] }
  0x1e   : > { %v756_v26 = vld [vmem:[%s7742_s22 + $0x1a0] sm:$0xff]  ;;  %753 = vst [vmem:[%s7750_s23 + $0xc0] sm:$0xff] %v752_v24  ;;  %755 = vst [vmem:[%s7750_s23 + $0xc8] sm:$0xff] %v754_v25  ;;  %v758_v27 = vld [vmem:[%s7742_s22 + $0x1b0] sm:$0xff] }
  0x1f   : > { %757 = vst [vmem:[%s7750_s23 + $0xd0] sm:$0xff] %v756_v26  ;;  %v760_v28 = vld [vmem:[%s7742_s22 + $0x1c0] sm:$0xff]  ;;  %v762_v29 = vld [vmem:[%s7742_s22 + $0x1d0] sm:$0xff]  ;;  %759 = vst [vmem:[%s7750_s23 + $0xd8] sm:$0xff] %v758_v27 }
  0x20   : > { %761 = vst [vmem:[%s7750_s23 + $0xe0] sm:$0xff] %v760_v28  ;;  %763 = vst [vmem:[%s7750_s23 + $0xe8] sm:$0xff] %v762_v29  ;;  %v764_v30 = vld [vmem:[%s7742_s22 + $0x1e0] sm:$0xff]  ;;  %v766_v31 = vld [vmem:[%s7742_s22 + $0x1f0] sm:$0xff] }
  0x21   : > { %v768_v32 = vld [vmem:[%s7742_s22 + $0x200] sm:$0xff]  ;;  %765 = vst [vmem:[%s7750_s23 + $0xf0] sm:$0xff] %v764_v30  ;;  %767 = vst [vmem:[%s7750_s23 + $0xf8] sm:$0xff] %v766_v31  ;;  %v770_v33 = vld [vmem:[%s7742_s22 + $0x210] sm:$0xff] }
  0x22   : > { %769 = vst [vmem:[%s7750_s23 + $0x100] sm:$0xff] %v768_v32  ;;  %v772_v34 = vld [vmem:[%s7742_s22 + $0x220] sm:$0xff]  ;;  %v774_v35 = vld [vmem:[%s7742_s22 + $0x230] sm:$0xff]  ;;  %771 = vst [vmem:[%s7750_s23 + $0x108] sm:$0xff] %v770_v33 }
  0x23   : > { %773 = vst [vmem:[%s7750_s23 + $0x110] sm:$0xff] %v772_v34  ;;  %775 = vst [vmem:[%s7750_s23 + $0x118] sm:$0xff] %v774_v35  ;;  %v776_v36 = vld [vmem:[%s7742_s22 + $0x240] sm:$0xff]  ;;  %v778_v37 = vld [vmem:[%s7742_s22 + $0x250] sm:$0xff] }
  0x24   : > { %v780_v38 = vld [vmem:[%s7742_s22 + $0x260] sm:$0xff]  ;;  %777 = vst [vmem:[%s7750_s23 + $0x120] sm:$0xff] %v776_v36  ;;  %779 = vst [vmem:[%s7750_s23 + $0x128] sm:$0xff] %v778_v37  ;;  %v782_v39 = vld [vmem:[%s7742_s22 + $0x270] sm:$0xff] }
  0x25   : > { %781 = vst [vmem:[%s7750_s23 + $0x130] sm:$0xff] %v780_v38  ;;  %v784_v40 = vld [vmem:[%s7742_s22 + $0x280] sm:$0xff]  ;;  %v786_v41 = vld [vmem:[%s7742_s22 + $0x290] sm:$0xff]  ;;  %783 = vst [vmem:[%s7750_s23 + $0x138] sm:$0xff] %v782_v39 }
  0x26   : > { %785 = vst [vmem:[%s7750_s23 + $0x140] sm:$0xff] %v784_v40  ;;  %787 = vst [vmem:[%s7750_s23 + $0x148] sm:$0xff] %v786_v41  ;;  %v788_v42 = vld [vmem:[%s7742_s22 + $0x2a0] sm:$0xff]  ;;  %v790_v43 = vld [vmem:[%s7742_s22 + $0x2b0] sm:$0xff] }
  0x27   : > { %v792_v44 = vld [vmem:[%s7742_s22 + $0x2c0] sm:$0xff]  ;;  %789 = vst [vmem:[%s7750_s23 + $0x150] sm:$0xff] %v788_v42  ;;  %791 = vst [vmem:[%s7750_s23 + $0x158] sm:$0xff] %v790_v43  ;;  %v794_v45 = vld [vmem:[%s7742_s22 + $0x2d0] sm:$0xff] }
  0x28   : > { %793 = vst [vmem:[%s7750_s23 + $0x160] sm:$0xff] %v792_v44  ;;  %v796_v46 = vld [vmem:[%s7742_s22 + $0x2e0] sm:$0xff]  ;;  %v798_v47 = vld [vmem:[%s7742_s22 + $0x2f0] sm:$0xff]  ;;  %795 = vst [vmem:[%s7750_s23 + $0x168] sm:$0xff] %v794_v45 }
  0x29   : > { %797 = vst [vmem:[%s7750_s23 + $0x170] sm:$0xff] %v796_v46  ;;  %799 = vst [vmem:[%s7750_s23 + $0x178] sm:$0xff] %v798_v47  ;;  %v800_v48 = vld [vmem:[%s7742_s22 + $0x300] sm:$0xff]  ;;  %v802_v49 = vld [vmem:[%s7742_s22 + $0x310] sm:$0xff] }
  0x2a   : > { %v804_v50 = vld [vmem:[%s7742_s22 + $0x320] sm:$0xff]  ;;  %801 = vst [vmem:[%s7750_s23 + $0x180] sm:$0xff] %v800_v48  ;;  %803 = vst [vmem:[%s7750_s23 + $0x188] sm:$0xff] %v802_v49  ;;  %v806_v51 = vld [vmem:[%s7742_s22 + $0x330] sm:$0xff] }
  0x2b   : > { %805 = vst [vmem:[%s7750_s23 + $0x190] sm:$0xff] %v804_v50  ;;  %v808_v52 = vld [vmem:[%s7742_s22 + $0x340] sm:$0xff]  ;;  %v810_v53 = vld [vmem:[%s7742_s22 + $0x350] sm:$0xff]  ;;  %807 = vst [vmem:[%s7750_s23 + $0x198] sm:$0xff] %v806_v51 }
  0x2c   : > { %809 = vst [vmem:[%s7750_s23 + $0x1a0] sm:$0xff] %v808_v52  ;;  %811 = vst [vmem:[%s7750_s23 + $0x1a8] sm:$0xff] %v810_v53  ;;  %v812_v54 = vld [vmem:[%s7742_s22 + $0x360] sm:$0xff]  ;;  %v814_v55 = vld [vmem:[%s7742_s22 + $0x370] sm:$0xff] }
  0x2d   : > { %v816_v56 = vld [vmem:[%s7742_s22 + $0x380] sm:$0xff]  ;;  %813 = vst [vmem:[%s7750_s23 + $0x1b0] sm:$0xff] %v812_v54  ;;  %815 = vst [vmem:[%s7750_s23 + $0x1b8] sm:$0xff] %v814_v55  ;;  %v818_v57 = vld [vmem:[%s7742_s22 + $0x390] sm:$0xff] }
  0x2e   : > { %817 = vst [vmem:[%s7750_s23 + $0x1c0] sm:$0xff] %v816_v56  ;;  %v820_v58 = vld [vmem:[%s7742_s22 + $0x3a0] sm:$0xff]  ;;  %v822_v59 = vld [vmem:[%s7742_s22 + $0x3b0] sm:$0xff]  ;;  %819 = vst [vmem:[%s7750_s23 + $0x1c8] sm:$0xff] %v818_v57 }
  0x2f   : > { %821 = vst [vmem:[%s7750_s23 + $0x1d0] sm:$0xff] %v820_v58  ;;  %823 = vst [vmem:[%s7750_s23 + $0x1d8] sm:$0xff] %v822_v59  ;;  %v824_v60 = vld [vmem:[%s7742_s22 + $0x3c0] sm:$0xff]  ;;  %v826_v61 = vld [vmem:[%s7742_s22 + $0x3d0] sm:$0xff] }
  0x30   : > { %v828_v62 = vld [vmem:[%s7742_s22 + $0x3e0] sm:$0xff]  ;;  %825 = vst [vmem:[%s7750_s23 + $0x1e0] sm:$0xff] %v824_v60  ;;  %827 = vst [vmem:[%s7750_s23 + $0x1e8] sm:$0xff] %v826_v61  ;;  %v830_v63 = vld [vmem:[%s7742_s22 + $0x3f0] sm:$0xff] }
  0x31   : > { %829 = vst [vmem:[%s7750_s23 + $0x1f0] sm:$0xff] %v828_v62  ;;  %v832_v0 = vld [vmem:[%s7742_s22 + $0x400] sm:$0xff]  ;;  %v834_v1 = vld [vmem:[%s7742_s22 + $0x410] sm:$0xff]  ;;  %831 = vst [vmem:[%s7750_s23 + $0x1f8] sm:$0xff] %v830_v63 }
  0x32   : > { %833 = vst [vmem:[%s7750_s23 + $0x200] sm:$0xff] %v832_v0  ;;  %835 = vst [vmem:[%s7750_s23 + $0x208] sm:$0xff] %v834_v1  ;;  %v836_v2 = vld [vmem:[%s7742_s22 + $0x420] sm:$0xff]  ;;  %v838_v3 = vld [vmem:[%s7742_s22 + $0x430] sm:$0xff] }
  0x33   : > { %v840_v4 = vld [vmem:[%s7742_s22 + $0x440] sm:$0xff]  ;;  %837 = vst [vmem:[%s7750_s23 + $0x210] sm:$0xff] %v836_v2  ;;  %839 = vst [vmem:[%s7750_s23 + $0x218] sm:$0xff] %v838_v3  ;;  %v842_v5 = vld [vmem:[%s7742_s22 + $0x450] sm:$0xff] }
  0x34   : > { %841 = vst [vmem:[%s7750_s23 + $0x220] sm:$0xff] %v840_v4  ;;  %v844_v6 = vld [vmem:[%s7742_s22 + $0x460] sm:$0xff]  ;;  %v846_v7 = vld [vmem:[%s7742_s22 + $0x470] sm:$0xff]  ;;  %843 = vst [vmem:[%s7750_s23 + $0x228] sm:$0xff] %v842_v5 }
  0x35   : > { %845 = vst [vmem:[%s7750_s23 + $0x230] sm:$0xff] %v844_v6  ;;  %847 = vst [vmem:[%s7750_s23 + $0x238] sm:$0xff] %v846_v7  ;;  %v848_v8 = vld [vmem:[%s7742_s22 + $0x480] sm:$0xff]  ;;  %v850_v9 = vld [vmem:[%s7742_s22 + $0x490] sm:$0xff] }
  0x36   : > { %v852_v10 = vld [vmem:[%s7742_s22 + $0x4a0] sm:$0xff]  ;;  %849 = vst [vmem:[%s7750_s23 + $0x240] sm:$0xff] %v848_v8  ;;  %851 = vst [vmem:[%s7750_s23 + $0x248] sm:$0xff] %v850_v9  ;;  %v854_v11 = vld [vmem:[%s7742_s22 + $0x4b0] sm:$0xff] }
  0x37   : > { %853 = vst [vmem:[%s7750_s23 + $0x250] sm:$0xff] %v852_v10  ;;  %v856_v12 = vld [vmem:[%s7742_s22 + $0x4c0] sm:$0xff]  ;;  %v858_v13 = vld [vmem:[%s7742_s22 + $0x4d0] sm:$0xff]  ;;  %855 = vst [vmem:[%s7750_s23 + $0x258] sm:$0xff] %v854_v11 }
  0x38   : > { %857 = vst [vmem:[%s7750_s23 + $0x260] sm:$0xff] %v856_v12  ;;  %859 = vst [vmem:[%s7750_s23 + $0x268] sm:$0xff] %v858_v13  ;;  %v860_v14 = vld [vmem:[%s7742_s22 + $0x4e0] sm:$0xff]  ;;  %v862_v15 = vld [vmem:[%s7742_s22 + $0x4f0] sm:$0xff] }
  0x39   : > { %v864_v16 = vld [vmem:[%s7742_s22 + $0x500] sm:$0xff]  ;;  %861 = vst [vmem:[%s7750_s23 + $0x270] sm:$0xff] %v860_v14  ;;  %863 = vst [vmem:[%s7750_s23 + $0x278] sm:$0xff] %v862_v15  ;;  %v866_v17 = vld [vmem:[%s7742_s22 + $0x510] sm:$0xff] }
  0x3a   : > { %865 = vst [vmem:[%s7750_s23 + $0x280] sm:$0xff] %v864_v16  ;;  %v868_v18 = vld [vmem:[%s7742_s22 + $0x520] sm:$0xff]  ;;  %v870_v19 = vld [vmem:[%s7742_s22 + $0x530] sm:$0xff]  ;;  %867 = vst [vmem:[%s7750_s23 + $0x288] sm:$0xff] %v866_v17 }
  0x3b   : > { %869 = vst [vmem:[%s7750_s23 + $0x290] sm:$0xff] %v868_v18  ;;  %871 = vst [vmem:[%s7750_s23 + $0x298] sm:$0xff] %v870_v19  ;;  %v872_v20 = vld [vmem:[%s7742_s22 + $0x540] sm:$0xff]  ;;  %v874_v21 = vld [vmem:[%s7742_s22 + $0x550] sm:$0xff] }
  0x3c   : > { %v876_v22 = vld [vmem:[%s7742_s22 + $0x560] sm:$0xff]  ;;  %873 = vst [vmem:[%s7750_s23 + $0x2a0] sm:$0xff] %v872_v20  ;;  %875 = vst [vmem:[%s7750_s23 + $0x2a8] sm:$0xff] %v874_v21  ;;  %v878_v23 = vld [vmem:[%s7742_s22 + $0x570] sm:$0xff] }
  0x3d   : > { %877 = vst [vmem:[%s7750_s23 + $0x2b0] sm:$0xff] %v876_v22  ;;  %v880_v24 = vld [vmem:[%s7742_s22 + $0x580] sm:$0xff]  ;;  %v882_v25 = vld [vmem:[%s7742_s22 + $0x590] sm:$0xff]  ;;  %879 = vst [vmem:[%s7750_s23 + $0x2b8] sm:$0xff] %v878_v23 }
  0x3e   : > { %881 = vst [vmem:[%s7750_s23 + $0x2c0] sm:$0xff] %v880_v24  ;;  %883 = vst [vmem:[%s7750_s23 + $0x2c8] sm:$0xff] %v882_v25  ;;  %v884_v26 = vld [vmem:[%s7742_s22 + $0x5a0] sm:$0xff]  ;;  %v886_v27 = vld [vmem:[%s7742_s22 + $0x5b0] sm:$0xff] }
  0x3f   : > { %v888_v28 = vld [vmem:[%s7742_s22 + $0x5c0] sm:$0xff]  ;;  %885 = vst [vmem:[%s7750_s23 + $0x2d0] sm:$0xff] %v884_v26  ;;  %887 = vst [vmem:[%s7750_s23 + $0x2d8] sm:$0xff] %v886_v27  ;;  %v890_v29 = vld [vmem:[%s7742_s22 + $0x5d0] sm:$0xff] }
  0x40   : > { %889 = vst [vmem:[%s7750_s23 + $0x2e0] sm:$0xff] %v888_v28  ;;  %v892_v30 = vld [vmem:[%s7742_s22 + $0x5e0] sm:$0xff]  ;;  %v894_v31 = vld [vmem:[%s7742_s22 + $0x5f0] sm:$0xff]  ;;  %891 = vst [vmem:[%s7750_s23 + $0x2e8] sm:$0xff] %v890_v29 }
  0x41   : > { %893 = vst [vmem:[%s7750_s23 + $0x2f0] sm:$0xff] %v892_v30  ;;  %895 = vst [vmem:[%s7750_s23 + $0x2f8] sm:$0xff] %v894_v31  ;;  %v896_v32 = vld [vmem:[%s7742_s22 + $0x600] sm:$0xff]  ;;  %v898_v33 = vld [vmem:[%s7742_s22 + $0x610] sm:$0xff] }
  0x42   : > { %v900_v34 = vld [vmem:[%s7742_s22 + $0x620] sm:$0xff]  ;;  %897 = vst [vmem:[%s7750_s23 + $0x300] sm:$0xff] %v896_v32  ;;  %899 = vst [vmem:[%s7750_s23 + $0x308] sm:$0xff] %v898_v33  ;;  %v902_v35 = vld [vmem:[%s7742_s22 + $0x630] sm:$0xff] }
  0x43   : > { %901 = vst [vmem:[%s7750_s23 + $0x310] sm:$0xff] %v900_v34  ;;  %v904_v36 = vld [vmem:[%s7742_s22 + $0x640] sm:$0xff]  ;;  %v906_v37 = vld [vmem:[%s7742_s22 + $0x650] sm:$0xff]  ;;  %903 = vst [vmem:[%s7750_s23 + $0x318] sm:$0xff] %v902_v35 }
  0x44   : > { %905 = vst [vmem:[%s7750_s23 + $0x320] sm:$0xff] %v904_v36  ;;  %907 = vst [vmem:[%s7750_s23 + $0x328] sm:$0xff] %v906_v37  ;;  %v908_v38 = vld [vmem:[%s7742_s22 + $0x660] sm:$0xff]  ;;  %v910_v39 = vld [vmem:[%s7742_s22 + $0x670] sm:$0xff] }
  0x45   : > { %v912_v40 = vld [vmem:[%s7742_s22 + $0x680] sm:$0xff]  ;;  %909 = vst [vmem:[%s7750_s23 + $0x330] sm:$0xff] %v908_v38  ;;  %911 = vst [vmem:[%s7750_s23 + $0x338] sm:$0xff] %v910_v39  ;;  %v914_v41 = vld [vmem:[%s7742_s22 + $0x690] sm:$0xff] }
  0x46   : > { %913 = vst [vmem:[%s7750_s23 + $0x340] sm:$0xff] %v912_v40  ;;  %v916_v42 = vld [vmem:[%s7742_s22 + $0x6a0] sm:$0xff]  ;;  %v918_v43 = vld [vmem:[%s7742_s22 + $0x6b0] sm:$0xff]  ;;  %915 = vst [vmem:[%s7750_s23 + $0x348] sm:$0xff] %v914_v41 }
  0x47   : > { %917 = vst [vmem:[%s7750_s23 + $0x350] sm:$0xff] %v916_v42  ;;  %919 = vst [vmem:[%s7750_s23 + $0x358] sm:$0xff] %v918_v43  ;;  %v920_v44 = vld [vmem:[%s7742_s22 + $0x6c0] sm:$0xff]  ;;  %v922_v45 = vld [vmem:[%s7742_s22 + $0x6d0] sm:$0xff] }
  0x48   : > { %v924_v46 = vld [vmem:[%s7742_s22 + $0x6e0] sm:$0xff]  ;;  %921 = vst [vmem:[%s7750_s23 + $0x360] sm:$0xff] %v920_v44  ;;  %923 = vst [vmem:[%s7750_s23 + $0x368] sm:$0xff] %v922_v45  ;;  %v926_v47 = vld [vmem:[%s7742_s22 + $0x6f0] sm:$0xff] }
  0x49   : > { %925 = vst [vmem:[%s7750_s23 + $0x370] sm:$0xff] %v924_v46  ;;  %v928_v48 = vld [vmem:[%s7742_s22 + $0x700] sm:$0xff]  ;;  %v930_v49 = vld [vmem:[%s7742_s22 + $0x710] sm:$0xff]  ;;  %927 = vst [vmem:[%s7750_s23 + $0x378] sm:$0xff] %v926_v47 }
  0x4a   : > { %929 = vst [vmem:[%s7750_s23 + $0x380] sm:$0xff] %v928_v48  ;;  %931 = vst [vmem:[%s7750_s23 + $0x388] sm:$0xff] %v930_v49  ;;  %v932_v50 = vld [vmem:[%s7742_s22 + $0x720] sm:$0xff]  ;;  %v934_v51 = vld [vmem:[%s7742_s22 + $0x730] sm:$0xff] }
  0x4b   : > { %v936_v52 = vld [vmem:[%s7742_s22 + $0x740] sm:$0xff]  ;;  %933 = vst [vmem:[%s7750_s23 + $0x390] sm:$0xff] %v932_v50  ;;  %935 = vst [vmem:[%s7750_s23 + $0x398] sm:$0xff] %v934_v51  ;;  %v938_v53 = vld [vmem:[%s7742_s22 + $0x750] sm:$0xff] }
  0x4c   : > { %937 = vst [vmem:[%s7750_s23 + $0x3a0] sm:$0xff] %v936_v52  ;;  %v940_v54 = vld [vmem:[%s7742_s22 + $0x760] sm:$0xff]  ;;  %v942_v55 = vld [vmem:[%s7742_s22 + $0x770] sm:$0xff]  ;;  %939 = vst [vmem:[%s7750_s23 + $0x3a8] sm:$0xff] %v938_v53 }
  0x4d   : > { %941 = vst [vmem:[%s7750_s23 + $0x3b0] sm:$0xff] %v940_v54  ;;  %943 = vst [vmem:[%s7750_s23 + $0x3b8] sm:$0xff] %v942_v55  ;;  %v944_v56 = vld [vmem:[%s7742_s22 + $0x780] sm:$0xff]  ;;  %v946_v57 = vld [vmem:[%s7742_s22 + $0x790] sm:$0xff] }
  0x4e   : > { %v948_v58 = vld [vmem:[%s7742_s22 + $0x7a0] sm:$0xff]  ;;  %945 = vst [vmem:[%s7750_s23 + $0x3c0] sm:$0xff] %v944_v56  ;;  %947 = vst [vmem:[%s7750_s23 + $0x3c8] sm:$0xff] %v946_v57  ;;  %v950_v59 = vld [vmem:[%s7742_s22 + $0x7b0] sm:$0xff] }
  0x4f   : > { %949 = vst [vmem:[%s7750_s23 + $0x3d0] sm:$0xff] %v948_v58  ;;  %v952_v60 = vld [vmem:[%s7742_s22 + $0x7c0] sm:$0xff]  ;;  %v954_v61 = vld [vmem:[%s7742_s22 + $0x7d0] sm:$0xff]  ;;  %951 = vst [vmem:[%s7750_s23 + $0x3d8] sm:$0xff] %v950_v59 }
  0x50   : > { %953 = vst [vmem:[%s7750_s23 + $0x3e0] sm:$0xff] %v952_v60  ;;  %955 = vst [vmem:[%s7750_s23 + $0x3e8] sm:$0xff] %v954_v61  ;;  %v956_v62 = vld [vmem:[%s7742_s22 + $0x7e0] sm:$0xff]  ;;  %v958_v63 = vld [vmem:[%s7742_s22 + $0x7f0] sm:$0xff] }
  0x51   : > { %v960_v0 = vld [vmem:[%s7742_s22 + $0x800] sm:$0xff]  ;;  %957 = vst [vmem:[%s7750_s23 + $0x3f0] sm:$0xff] %v956_v62  ;;  %959 = vst [vmem:[%s7750_s23 + $0x3f8] sm:$0xff] %v958_v63  ;;  %v962_v1 = vld [vmem:[%s7742_s22 + $0x810] sm:$0xff] }
  0x52   : > { %961 = vst [vmem:[%s7750_s23 + $0x400] sm:$0xff] %v960_v0  ;;  %v964_v2 = vld [vmem:[%s7742_s22 + $0x820] sm:$0xff]  ;;  %v966_v3 = vld [vmem:[%s7742_s22 + $0x830] sm:$0xff]  ;;  %963 = vst [vmem:[%s7750_s23 + $0x408] sm:$0xff] %v962_v1 }
  0x53   : > { %965 = vst [vmem:[%s7750_s23 + $0x410] sm:$0xff] %v964_v2  ;;  %967 = vst [vmem:[%s7750_s23 + $0x418] sm:$0xff] %v966_v3  ;;  %v968_v4 = vld [vmem:[%s7742_s22 + $0x840] sm:$0xff]  ;;  %v970_v5 = vld [vmem:[%s7742_s22 + $0x850] sm:$0xff] }
  0x54   : > { %v972_v6 = vld [vmem:[%s7742_s22 + $0x860] sm:$0xff]  ;;  %969 = vst [vmem:[%s7750_s23 + $0x420] sm:$0xff] %v968_v4  ;;  %971 = vst [vmem:[%s7750_s23 + $0x428] sm:$0xff] %v970_v5  ;;  %v974_v7 = vld [vmem:[%s7742_s22 + $0x870] sm:$0xff] }
  0x55   : > { %973 = vst [vmem:[%s7750_s23 + $0x430] sm:$0xff] %v972_v6  ;;  %v976_v8 = vld [vmem:[%s7742_s22 + $0x880] sm:$0xff]  ;;  %v978_v9 = vld [vmem:[%s7742_s22 + $0x890] sm:$0xff]  ;;  %975 = vst [vmem:[%s7750_s23 + $0x438] sm:$0xff] %v974_v7 }
  0x56   : > { %977 = vst [vmem:[%s7750_s23 + $0x440] sm:$0xff] %v976_v8  ;;  %979 = vst [vmem:[%s7750_s23 + $0x448] sm:$0xff] %v978_v9  ;;  %v980_v10 = vld [vmem:[%s7742_s22 + $0x8a0] sm:$0xff]  ;;  %v982_v11 = vld [vmem:[%s7742_s22 + $0x8b0] sm:$0xff] }
  0x57   : > { %v984_v12 = vld [vmem:[%s7742_s22 + $0x8c0] sm:$0xff]  ;;  %981 = vst [vmem:[%s7750_s23 + $0x450] sm:$0xff] %v980_v10  ;;  %983 = vst [vmem:[%s7750_s23 + $0x458] sm:$0xff] %v982_v11  ;;  %v986_v13 = vld [vmem:[%s7742_s22 + $0x8d0] sm:$0xff] }
  0x58   : > { %985 = vst [vmem:[%s7750_s23 + $0x460] sm:$0xff] %v984_v12  ;;  %v988_v14 = vld [vmem:[%s7742_s22 + $0x8e0] sm:$0xff]  ;;  %v990_v15 = vld [vmem:[%s7742_s22 + $0x8f0] sm:$0xff]  ;;  %987 = vst [vmem:[%s7750_s23 + $0x468] sm:$0xff] %v986_v13 }
  0x59   : > { %989 = vst [vmem:[%s7750_s23 + $0x470] sm:$0xff] %v988_v14  ;;  %991 = vst [vmem:[%s7750_s23 + $0x478] sm:$0xff] %v990_v15  ;;  %v992_v16 = vld [vmem:[%s7742_s22 + $0x900] sm:$0xff]  ;;  %v994_v17 = vld [vmem:[%s7742_s22 + $0x910] sm:$0xff] }
  0x5a   : > { %v996_v18 = vld [vmem:[%s7742_s22 + $0x920] sm:$0xff]  ;;  %993 = vst [vmem:[%s7750_s23 + $0x480] sm:$0xff] %v992_v16  ;;  %995 = vst [vmem:[%s7750_s23 + $0x488] sm:$0xff] %v994_v17  ;;  %v998_v19 = vld [vmem:[%s7742_s22 + $0x930] sm:$0xff] }
  0x5b   : > { %997 = vst [vmem:[%s7750_s23 + $0x490] sm:$0xff] %v996_v18  ;;  %v1000_v20 = vld [vmem:[%s7742_s22 + $0x940] sm:$0xff]  ;;  %v1002_v21 = vld [vmem:[%s7742_s22 + $0x950] sm:$0xff]  ;;  %999 = vst [vmem:[%s7750_s23 + $0x498] sm:$0xff] %v998_v19 }
  0x5c   : > { %1001 = vst [vmem:[%s7750_s23 + $0x4a0] sm:$0xff] %v1000_v20  ;;  %1003 = vst [vmem:[%s7750_s23 + $0x4a8] sm:$0xff] %v1002_v21  ;;  %v1004_v22 = vld [vmem:[%s7742_s22 + $0x960] sm:$0xff]  ;;  %v1006_v23 = vld [vmem:[%s7742_s22 + $0x970] sm:$0xff] }
  0x5d   : > { %v1008_v24 = vld [vmem:[%s7742_s22 + $0x980] sm:$0xff]  ;;  %1005 = vst [vmem:[%s7750_s23 + $0x4b0] sm:$0xff] %v1004_v22  ;;  %1007 = vst [vmem:[%s7750_s23 + $0x4b8] sm:$0xff] %v1006_v23  ;;  %v1010_v25 = vld [vmem:[%s7742_s22 + $0x990] sm:$0xff] }
  0x5e   : > { %1009 = vst [vmem:[%s7750_s23 + $0x4c0] sm:$0xff] %v1008_v24  ;;  %v1012_v26 = vld [vmem:[%s7742_s22 + $0x9a0] sm:$0xff]  ;;  %v1014_v27 = vld [vmem:[%s7742_s22 + $0x9b0] sm:$0xff]  ;;  %1011 = vst [vmem:[%s7750_s23 + $0x4c8] sm:$0xff] %v1010_v25 }
  0x5f   : > { %1013 = vst [vmem:[%s7750_s23 + $0x4d0] sm:$0xff] %v1012_v26  ;;  %1015 = vst [vmem:[%s7750_s23 + $0x4d8] sm:$0xff] %v1014_v27  ;;  %v1016_v28 = vld [vmem:[%s7742_s22 + $0x9c0] sm:$0xff]  ;;  %v1018_v29 = vld [vmem:[%s7742_s22 + $0x9d0] sm:$0xff] }
  0x60   : > { %v1020_v30 = vld [vmem:[%s7742_s22 + $0x9e0] sm:$0xff]  ;;  %1017 = vst [vmem:[%s7750_s23 + $0x4e0] sm:$0xff] %v1016_v28  ;;  %1019 = vst [vmem:[%s7750_s23 + $0x4e8] sm:$0xff] %v1018_v29  ;;  %v1022_v31 = vld [vmem:[%s7742_s22 + $0x9f0] sm:$0xff] }
  0x61   : > { %1021 = vst [vmem:[%s7750_s23 + $0x4f0] sm:$0xff] %v1020_v30  ;;  %v1024_v32 = vld [vmem:[%s7742_s22 + $0xa00] sm:$0xff]  ;;  %v1026_v33 = vld [vmem:[%s7742_s22 + $0xa10] sm:$0xff]  ;;  %1023 = vst [vmem:[%s7750_s23 + $0x4f8] sm:$0xff] %v1022_v31 }
  0x62   : > { %1025 = vst [vmem:[%s7750_s23 + $0x500] sm:$0xff] %v1024_v32  ;;  %1027 = vst [vmem:[%s7750_s23 + $0x508] sm:$0xff] %v1026_v33  ;;  %v1028_v34 = vld [vmem:[%s7742_s22 + $0xa20] sm:$0xff]  ;;  %v1030_v35 = vld [vmem:[%s7742_s22 + $0xa30] sm:$0xff] }
  0x63   : > { %v1032_v36 = vld [vmem:[%s7742_s22 + $0xa40] sm:$0xff]  ;;  %1029 = vst [vmem:[%s7750_s23 + $0x510] sm:$0xff] %v1028_v34  ;;  %1031 = vst [vmem:[%s7750_s23 + $0x518] sm:$0xff] %v1030_v35  ;;  %v1034_v37 = vld [vmem:[%s7742_s22 + $0xa50] sm:$0xff] }
  0x64   : > { %1033 = vst [vmem:[%s7750_s23 + $0x520] sm:$0xff] %v1032_v36  ;;  %v1036_v38 = vld [vmem:[%s7742_s22 + $0xa60] sm:$0xff]  ;;  %v1038_v39 = vld [vmem:[%s7742_s22 + $0xa70] sm:$0xff]  ;;  %1035 = vst [vmem:[%s7750_s23 + $0x528] sm:$0xff] %v1034_v37 }
  0x65   : > { %1037 = vst [vmem:[%s7750_s23 + $0x530] sm:$0xff] %v1036_v38  ;;  %1039 = vst [vmem:[%s7750_s23 + $0x538] sm:$0xff] %v1038_v39  ;;  %v1040_v40 = vld [vmem:[%s7742_s22 + $0xa80] sm:$0xff]  ;;  %v1042_v41 = vld [vmem:[%s7742_s22 + $0xa90] sm:$0xff] }
  0x66   : > { %v1044_v42 = vld [vmem:[%s7742_s22 + $0xaa0] sm:$0xff]  ;;  %1041 = vst [vmem:[%s7750_s23 + $0x540] sm:$0xff] %v1040_v40  ;;  %1043 = vst [vmem:[%s7750_s23 + $0x548] sm:$0xff] %v1042_v41  ;;  %v1046_v43 = vld [vmem:[%s7742_s22 + $0xab0] sm:$0xff] }
  0x67   : > { %1045 = vst [vmem:[%s7750_s23 + $0x550] sm:$0xff] %v1044_v42  ;;  %v1048_v44 = vld [vmem:[%s7742_s22 + $0xac0] sm:$0xff]  ;;  %v1050_v45 = vld [vmem:[%s7742_s22 + $0xad0] sm:$0xff]  ;;  %1047 = vst [vmem:[%s7750_s23 + $0x558] sm:$0xff] %v1046_v43 }
  0x68   : > { %1049 = vst [vmem:[%s7750_s23 + $0x560] sm:$0xff] %v1048_v44  ;;  %1051 = vst [vmem:[%s7750_s23 + $0x568] sm:$0xff] %v1050_v45  ;;  %v1052_v46 = vld [vmem:[%s7742_s22 + $0xae0] sm:$0xff]  ;;  %v1054_v47 = vld [vmem:[%s7742_s22 + $0xaf0] sm:$0xff] }
  0x69   : > { %v1056_v48 = vld [vmem:[%s7742_s22 + $0xb00] sm:$0xff]  ;;  %1053 = vst [vmem:[%s7750_s23 + $0x570] sm:$0xff] %v1052_v46  ;;  %1055 = vst [vmem:[%s7750_s23 + $0x578] sm:$0xff] %v1054_v47  ;;  %v1058_v49 = vld [vmem:[%s7742_s22 + $0xb10] sm:$0xff] }
  0x6a   : > { %1057 = vst [vmem:[%s7750_s23 + $0x580] sm:$0xff] %v1056_v48  ;;  %v1060_v50 = vld [vmem:[%s7742_s22 + $0xb20] sm:$0xff]  ;;  %v1062_v51 = vld [vmem:[%s7742_s22 + $0xb30] sm:$0xff]  ;;  %1059 = vst [vmem:[%s7750_s23 + $0x588] sm:$0xff] %v1058_v49 }
  0x6b   : > { %1061 = vst [vmem:[%s7750_s23 + $0x590] sm:$0xff] %v1060_v50  ;;  %1063 = vst [vmem:[%s7750_s23 + $0x598] sm:$0xff] %v1062_v51  ;;  %v1064_v52 = vld [vmem:[%s7742_s22 + $0xb40] sm:$0xff]  ;;  %v1066_v53 = vld [vmem:[%s7742_s22 + $0xb50] sm:$0xff] }
  0x6c   : > { %v1068_v54 = vld [vmem:[%s7742_s22 + $0xb60] sm:$0xff]  ;;  %1065 = vst [vmem:[%s7750_s23 + $0x5a0] sm:$0xff] %v1064_v52  ;;  %1067 = vst [vmem:[%s7750_s23 + $0x5a8] sm:$0xff] %v1066_v53  ;;  %v1070_v55 = vld [vmem:[%s7742_s22 + $0xb70] sm:$0xff] }
  0x6d   : > { %1069 = vst [vmem:[%s7750_s23 + $0x5b0] sm:$0xff] %v1068_v54  ;;  %v1072_v56 = vld [vmem:[%s7742_s22 + $0xb80] sm:$0xff]  ;;  %v1074_v57 = vld [vmem:[%s7742_s22 + $0xb90] sm:$0xff]  ;;  %1071 = vst [vmem:[%s7750_s23 + $0x5b8] sm:$0xff] %v1070_v55 }
  0x6e   : > { %1073 = vst [vmem:[%s7750_s23 + $0x5c0] sm:$0xff] %v1072_v56  ;;  %1075 = vst [vmem:[%s7750_s23 + $0x5c8] sm:$0xff] %v1074_v57  ;;  %v1076_v58 = vld [vmem:[%s7742_s22 + $0xba0] sm:$0xff]  ;;  %v1078_v59 = vld [vmem:[%s7742_s22 + $0xbb0] sm:$0xff] }
  0x6f   : > { %v1080_v60 = vld [vmem:[%s7742_s22 + $0xbc0] sm:$0xff]  ;;  %1077 = vst [vmem:[%s7750_s23 + $0x5d0] sm:$0xff] %v1076_v58  ;;  %1079 = vst [vmem:[%s7750_s23 + $0x5d8] sm:$0xff] %v1078_v59  ;;  %v1082_v61 = vld [vmem:[%s7742_s22 + $0xbd0] sm:$0xff] }
  0x70   : > { %1081 = vst [vmem:[%s7750_s23 + $0x5e0] sm:$0xff] %v1080_v60  ;;  %v1084_v62 = vld [vmem:[%s7742_s22 + $0xbe0] sm:$0xff]  ;;  %v1086_v63 = vld [vmem:[%s7742_s22 + $0xbf0] sm:$0xff]  ;;  %1083 = vst [vmem:[%s7750_s23 + $0x5e8] sm:$0xff] %v1082_v61 }
  0x71   : > { %1085 = vst [vmem:[%s7750_s23 + $0x5f0] sm:$0xff] %v1084_v62  ;;  %1087 = vst [vmem:[%s7750_s23 + $0x5f8] sm:$0xff] %v1086_v63  ;;  %v1088_v0 = vld [vmem:[%s7742_s22 + $0xc00] sm:$0xff]  ;;  %v1090_v1 = vld [vmem:[%s7742_s22 + $0xc10] sm:$0xff] }
  0x72   : > { %v1092_v2 = vld [vmem:[%s7742_s22 + $0xc20] sm:$0xff]  ;;  %1089 = vst [vmem:[%s7750_s23 + $0x600] sm:$0xff] %v1088_v0  ;;  %1091 = vst [vmem:[%s7750_s23 + $0x608] sm:$0xff] %v1090_v1  ;;  %v1094_v3 = vld [vmem:[%s7742_s22 + $0xc30] sm:$0xff] }
  0x73   : > { %1093 = vst [vmem:[%s7750_s23 + $0x610] sm:$0xff] %v1092_v2  ;;  %1095 = vst [vmem:[%s7750_s23 + $0x618] sm:$0xff] %v1094_v3 }
  0x74 PF: > { %p5785_p5 = scmp.ge.s32.totalorder %s7652_s11, 1  ;;  %p1100_p6 = scmp.lt.s32.totalorder %s7652_s11, 3 }
  0x76   : > { %p1101_p7 = pnand %p5785_p5, %p1100_p6 }
  0x78   : > { %1104 = sbr.rel (%p1101_p7) target bundleno = 1497 (0x5d9), region = 90 }
  0x7f   : > { %v1341_v4 = vld [vmem:[%s9703_s1] sm:$0xff]  ;;  %v1342_v5 = vld [vmem:[%s9703_s1 + $0x8] sm:$0x1]  ;;  %vm1932_vm0 = vcmask 1040384   ;;  %s1107_s28 = sand.u32 1, %s7644_s30   ;;  %vm7654_vm1 = vmmov 1  }
  0x80   : > { %v7278_v6 = vpack.c.bf16 %v1342_v5, %v1341_v4  ;;  %vm7279_vm2 = vmpackc.low %vm1932_vm0, %vm7654_vm1  ;;  %s7601_s29 = smul.u32 1568, %s1107_s28  ;;  %vm1343_vm3 = vcmask 72704   ;;  %vm3089_vm4 = vcmask 261120   ;;  %vm7656_vm5 = vmmov 0   ;;  %p1141_p8 = scmp.lt.s32.totalorder %s5780_s12, 1 }
  0x81   : > { %vm5530_vm6 = vcmask 523264   ;;  %vm5719_vm7 = vcmask 80896  }
  0x82   : > { %7280 = vmatprep.subr.msk.bf16.mxu0 %vm7279_vm2, %v7278_v6  ;;  %7502 = vmatprep.subr.msk.bf16.mxu1 %vm7279_vm2, %v7278_v6  ;;  %s8147_s14 = scalar_lea.vmem [#allocation2], %s7601_s29  ;;  %s9900_s12 = smov (!%p1141_p8, %s5780_s12), 1 }
  0x83   : > { %7283 = vmatpush3.bf16.msk.msra.mxu0 %vm7279_vm2, %v7278_v6  ;;  %v1145_v7 = vld [vmem:[%s8147_s14] sm:$0xff]  ;;  %v1146_v8 = vld [vmem:[%s8147_s14 + $0x8] sm:$0xff]  ;;  %7503 = vmatpush3.bf16.msk.msra.mxu1 %vm7279_vm2, %v7278_v6  ;;  %v1147_v9 = vld [vmem:[%s8147_s14 + $0x10] sm:$0xff]  ;;  %s5786_s21 = sshll.u32 %s9900_s12, 3 }
  0x84   : > { %6604 = vmatprep.mubr.msk.f32.mxu0 %vm1343_vm3, %v1145_v7  ;;  %v1148_v10 = vld [vmem:[%s8147_s14 + $0x18] sm:$0xff]  ;;  %v1149_v11 = vld [vmem:[%s8147_s14 + $0x20] sm:$0xff]  ;;  %v1150_v12 = vld [vmem:[%s8147_s14 + $0x28] sm:$0xff]  ;;  %s1144_s26 = scalar_lea.vmem %s9711_s9, %s5786_s21 }
  0x85   : > { %v1151_v13 = vld [vmem:[%s8147_s14 + $0x30] sm:$0xff]  ;;  %v1152_v14 = vld [vmem:[%s8147_s14 + $0x38] sm:$0xff]  ;;  %v1153_v15 = vld [vmem:[%s8147_s14 + $0x40] sm:$0xff] }
  0x86   : > { %6605 = vmatmul.mubr.msk.f32.vlgmr.msra.gmra.mrb[0].mxu0 %vm1343_vm3, %v1146_v8  ;;  %v1154_v16 = vld [vmem:[%s8147_s14 + $0x48] sm:$0xff]  ;;  %v1155_v17 = vld [vmem:[%s8147_s14 + $0x50] sm:$0xff]  ;;  %v1156_v18 = vld [vmem:[%s8147_s14 + $0x58] sm:$0xff] }
  0x87   : > { %6607 = vmatprep.mubr.msk.f32.mxu0 %vm1343_vm3, %v1147_v9  ;;  %v1157_v19 = vld [vmem:[%s8147_s14 + $0x60] sm:$0xff]  ;;  %v1158_v20 = vld [vmem:[%s8147_s14 + $0x68] sm:$0xff]  ;;  %v1159_v21 = vld [vmem:[%s8147_s14 + $0x70] sm:$0xff] }
  0x88   : > { %v1160_v22 = vld [vmem:[%s8147_s14 + $0x78] sm:$0xff]  ;;  %v1161_v23 = vld [vmem:[%s8147_s14 + $0x80] sm:$0xff]  ;;  %v1162_v24 = vld [vmem:[%s8147_s14 + $0x88] sm:$0xff] }
  0x89   : > { %v1163_v25 = vld [vmem:[%s8147_s14 + $0x90] sm:$0xff]  ;;  %v1164_v26 = vld [vmem:[%s8147_s14 + $0x98] sm:$0xff]  ;;  %v1165_v27 = vld [vmem:[%s8147_s14 + $0xa0] sm:$0xff] }
  0x8a   : > { %6608 = vmatmul.mubr.msk.f32.gmra.mrb[2].mxu0 %vm1343_vm3, %v1148_v10  ;;  %v1166_v28 = vld [vmem:[%s8147_s14 + $0xa8] sm:$0xff]  ;;  %v1167_v29 = vld [vmem:[%s8147_s14 + $0xb0] sm:$0xff]  ;;  %v1168_v30 = vld [vmem:[%s8147_s14 + $0xb8] sm:$0xff] }
  0x8b   : > { %6610 = vmatprep.mubr.msk.f32.mxu0 %vm1343_vm3, %v1149_v11  ;;  %v1169_v31 = vld [vmem:[%s8147_s14 + $0xc0] sm:$0xff]  ;;  %v1170_v32 = vld [vmem:[%s8147_s14 + $0xc8] sm:$0xff]  ;;  %v1171_v33 = vld [vmem:[%s8147_s14 + $0xd0] sm:$0xff] }
  0x8c   : > { %v1172_v34 = vld [vmem:[%s8147_s14 + $0xd8] sm:$0xff]  ;;  %v1173_v35 = vld [vmem:[%s8147_s14 + $0xe0] sm:$0xff]  ;;  %v1174_v36 = vld [vmem:[%s8147_s14 + $0xe8] sm:$0xff] }
  0x8d   : > { %v1175_v37 = vld [vmem:[%s8147_s14 + $0xf0] sm:$0xff]  ;;  %v1176_v38 = vld [vmem:[%s8147_s14 + $0xf8] sm:$0xff]  ;;  %v1177_v39 = vld [vmem:[%s8147_s14 + $0x100] sm:$0xff] }
  0x8e   : > { %6611 = vmatmul.mubr.msk.f32.gmra.mrb[4].mxu0 %vm1343_vm3, %v1150_v12  ;;  %v1178_v40 = vld [vmem:[%s8147_s14 + $0x108] sm:$0xff]  ;;  %v1179_v41 = vld [vmem:[%s8147_s14 + $0x110] sm:$0xff]  ;;  %v1180_v42 = vld [vmem:[%s8147_s14 + $0x118] sm:$0xff] }
  0x8f   : > { %6613 = vmatprep.mubr.msk.f32.mxu0 %vm1343_vm3, %v1151_v13  ;;  %v1181_v43 = vld [vmem:[%s8147_s14 + $0x120] sm:$0xff]  ;;  %v1182_v44 = vld [vmem:[%s8147_s14 + $0x128] sm:$0xff]  ;;  %v1183_v45 = vld [vmem:[%s8147_s14 + $0x130] sm:$0xff] }
  0x90   : > { %v1184_v46 = vld [vmem:[%s8147_s14 + $0x138] sm:$0xff]  ;;  %v1185_v47 = vld [vmem:[%s8147_s14 + $0x140] sm:$0xff]  ;;  %v1299_v48 = vld [vmem:[%s8147_s14 + $0x4d0] sm:$0xff] }
  0x91   : > { %v1186_v49 = vld [vmem:[%s8147_s14 + $0x148] sm:$0xff]  ;;  %6835 = vmatprep.mubr.msk.f32.mxu1 %vm1343_vm3, %v1299_v48  ;;  %v1300_v50 = vld [vmem:[%s8147_s14 + $0x4d8] sm:$0xff]  ;;  %v1187_v51 = vld [vmem:[%s8147_s14 + $0x150] sm:$0xff] }
  0x92   : > { %6614 = vmatmul.mubr.msk.f32.gmra.mrb[6].mxu0 %vm1343_vm3, %v1152_v14  ;;  %6836 = vmatmul.mubr.msk.f32.vlgmr.msra.gmra.mrb[0].mxu1 %vm1343_vm3, %v1300_v50  ;;  %v1301_v52 = vld [vmem:[%s8147_s14 + $0x4e0] sm:$0xff]  ;;  %v1188_v53 = vld [vmem:[%s8147_s14 + $0x158] sm:$0xff]  ;;  %v1302_v55 = vld [vmem:[%s8147_s14 + $0x4e8] sm:$0xff] }
  0x93   : > { %6616 = vmatprep.mubr.msk.f32.mxu0 %vm1343_vm3, %v1153_v15  ;;  %6838 = vmatprep.mubr.msk.f32.mxu1 %vm1343_vm3, %v1301_v52  ;;  %v1189_v54 = vld [vmem:[%s8147_s14 + $0x160] sm:$0xff]  ;;  %v1303_v56 = vld [vmem:[%s8147_s14 + $0x4f0] sm:$0xff]  ;;  %v1190_v57 = vld [vmem:[%s8147_s14 + $0x168] sm:$0xff] }
  0x94   : > { %v1191_v58 = vld [vmem:[%s8147_s14 + $0x170] sm:$0xff]  ;;  %v1304_v59 = vld [vmem:[%s8147_s14 + $0x4f8] sm:$0xff]  ;;  %v1305_v60 = vld [vmem:[%s8147_s14 + $0x500] sm:$0xff] }
  0x95   : > { %v1192_v61 = vld [vmem:[%s8147_s14 + $0x178] sm:$0xff]  ;;  %v1193_v62 = vld [vmem:[%s8147_s14 + $0x180] sm:$0xff]  ;;  %v1306_v63 = vld [vmem:[%s8147_s14 + $0x508] sm:$0xff] }
  0x96   : > { %6617 = vmatmul.mubr.msk.f32.gmra.mrb[8].mxu0 %vm1343_vm3, %v1154_v16  ;;  %6839 = vmatmul.mubr.msk.f32.gmra.mrb[2].mxu1 %vm1343_vm3, %v1302_v55  ;;  %v1307_v0 = vld [vmem:[%s8147_s14 + $0x510] sm:$0xff]  ;;  %v1194_v1 = vld [vmem:[%s8147_s14 + $0x188] sm:$0xff]  ;;  %v1308_v3 = vld [vmem:[%s8147_s14 + $0x518] sm:$0xff] }
  0x97   : > { %6619 = vmatprep.mubr.msk.f32.mxu0 %vm1343_vm3, %v1155_v17  ;;  %6841 = vmatprep.mubr.msk.f32.mxu1 %vm1343_vm3, %v1303_v56  ;;  %v1195_v2 = vld [vmem:[%s8147_s14 + $0x190] sm:$0xff]  ;;  %v1309_v4 = vld [vmem:[%s8147_s14 + $0x520] sm:$0xff]  ;;  %v1196_v5 = vld [vmem:[%s8147_s14 + $0x198] sm:$0xff] }
  0x98   : > { %v1197_v6 = vld [vmem:[%s8147_s14 + $0x1a0] sm:$0xff]  ;;  %v1310_v7 = vld [vmem:[%s8147_s14 + $0x528] sm:$0xff]  ;;  %v1311_v8 = vld [vmem:[%s8147_s14 + $0x530] sm:$0xff] }
  0x99   : > { %v1198_v9 = vld [vmem:[%s8147_s14 + $0x1a8] sm:$0xff]  ;;  %v1199_v10 = vld [vmem:[%s8147_s14 + $0x1b0] sm:$0xff]  ;;  %v1312_v11 = vld [vmem:[%s8147_s14 + $0x538] sm:$0xff] }
  0x9a   : > { %6620 = vmatmul.mubr.msk.f32.gmra.mrb[10].mxu0 %vm1343_vm3, %v1156_v18  ;;  %6842 = vmatmul.mubr.msk.f32.gmra.mrb[4].mxu1 %vm1343_vm3, %v1304_v59  ;;  %v1313_v12 = vld [vmem:[%s8147_s14 + $0x540] sm:$0xff]  ;;  %v1200_v13 = vld [vmem:[%s8147_s14 + $0x1b8] sm:$0xff]  ;;  %v1314_v15 = vld [vmem:[%s8147_s14 + $0x548] sm:$0xff] }
  0x9b   : > { %6622 = vmatprep.mubr.msk.f32.mxu0 %vm1343_vm3, %v1157_v19  ;;  %6844 = vmatprep.mubr.msk.f32.mxu1 %vm1343_vm3, %v1305_v60  ;;  %v1201_v14 = vld [vmem:[%s8147_s14 + $0x1c0] sm:$0xff]  ;;  %v1315_v16 = vld [vmem:[%s8147_s14 + $0x550] sm:$0xff]  ;;  %v1202_v17 = vld [vmem:[%s8147_s14 + $0x1c8] sm:$0xff] }
  0x9c   : > { %v1203_v18 = vld [vmem:[%s8147_s14 + $0x1d0] sm:$0xff]  ;;  %v1316_v19 = vld [vmem:[%s8147_s14 + $0x558] sm:$0xff] }
  0x9d   : > { %v1331_v48 = vld [vmem:[%s8147_s14 + $0x5d0] sm:$0xff]  ;;  %v1220_v52 = vld [vmem:[%s8147_s14 + $0x258] sm:$0xff] }
  0x9e   : > { %6623 = vmatmul.mubr.msk.f32.gmra.mrb[12].mxu0 %vm1343_vm3, %v1158_v20  ;;  %6845 = vmatmul.mubr.msk.f32.gmra.mrb[6].mxu1 %vm1343_vm3, %v1306_v63  ;;  %v1317_v20 = vld [vmem:[%s8147_s14 + $0x560] sm:$0xff]  ;;  %v1219_v50 = vld [vmem:[%s8147_s14 + $0x250] sm:$0xff]  ;;  %v1224_v56 = vld [vmem:[%s8147_s14 + $0x278] sm:$0xff] }
  0x9f   : > { %6625 = vmatprep.mubr.msk.f32.mxu0 %vm1343_vm3, %v1159_v21  ;;  %6847 = vmatprep.mubr.msk.f32.mxu1 %vm1343_vm3, %v1307_v0  ;;  %v1204_v21 = vld [vmem:[%s8147_s14 + $0x1d8] sm:$0xff]  ;;  %v1223_v55 = vld [vmem:[%s8147_s14 + $0x270] sm:$0xff] }
  0xa0   : > { %v1227_v59 = vld [vmem:[%s8147_s14 + $0x290] sm:$0xff]  ;;  %v1228_v60 = vld [vmem:[%s8147_s14 + $0x298] sm:$0xff] }
  0xa1   : > { %v1231_v63 = vld [vmem:[%s8147_s14 + $0x2b0] sm:$0xff]  ;;  %v1232_v0 = vld [vmem:[%s8147_s14 + $0x2b8] sm:$0xff] }
  0xa2   : > { %6626 = vmatmul.mubr.msk.f32.gmra.mrb[14].mxu0 %vm1343_vm3, %v1160_v22  ;;  %6848 = vmatmul.mubr.msk.f32.gmra.mrb[8].mxu1 %vm1343_vm3, %v1308_v3  ;;  %v1205_v22 = vld [vmem:[%s8147_s14 + $0x1e0] sm:$0xff]  ;;  %v1235_v3 = vld [vmem:[%s8147_s14 + $0x2d0] sm:$0xff] }
  0xa3   : > { %6628 = vmatprep.mubr.msk.f32.mxu0 %vm1343_vm3, %v1161_v23  ;;  %6850 = vmatprep.mubr.msk.f32.mxu1 %vm1343_vm3, %v1309_v4  ;;  %v1318_v23 = vld [vmem:[%s8147_s14 + $0x568] sm:$0xff]  ;;  %v1236_v4 = vld [vmem:[%s8147_s14 + $0x2d8] sm:$0xff] }
  0xa6   : > { %6629 = vmatmul.mubr.msk.f32.gmra.mrb[16].mxu0 %vm1343_vm3, %v1162_v24  ;;  %6851 = vmatmul.mubr.msk.f32.gmra.mrb[10].mxu1 %vm1343_vm3, %v1310_v7  ;;  %v1319_v24 = vld [vmem:[%s8147_s14 + $0x570] sm:$0xff] }
  0xa7   : > { %6631 = vmatprep.mubr.msk.f32.mxu0 %vm1343_vm3, %v1163_v25  ;;  %6853 = vmatprep.mubr.msk.f32.mxu1 %vm1343_vm3, %v1311_v8  ;;  %v1206_v25 = vld [vmem:[%s8147_s14 + $0x1e8] sm:$0xff]  ;;  %v1239_v7 = vld [vmem:[%s8147_s14 + $0x2f0] sm:$0xff]  ;;  %v1240_v8 = vld [vmem:[%s8147_s14 + $0x2f8] sm:$0xff] }
  0xaa   : > { %6632 = vmatmul.mubr.msk.f32.gmra.mrb[18].mxu0 %vm1343_vm3, %v1164_v26  ;;  %6854 = vmatmul.mubr.msk.f32.gmra.mrb[12].mxu1 %vm1343_vm3, %v1312_v11  ;;  %v1207_v26 = vld [vmem:[%s8147_s14 + $0x1f0] sm:$0xff] }
  0xab   : > { %6634 = vmatprep.mubr.msk.f32.mxu0 %vm1343_vm3, %v1165_v27  ;;  %6856 = vmatprep.mubr.msk.f32.mxu1 %vm1343_vm3, %v1313_v12  ;;  %v1320_v27 = vld [vmem:[%s8147_s14 + $0x578] sm:$0xff]  ;;  %v1243_v11 = vld [vmem:[%s8147_s14 + $0x310] sm:$0xff] }
  0xac   : > { %v1244_v12 = vld [vmem:[%s8147_s14 + $0x318] sm:$0xff] }
  0xae   : > { %6635 = vmatmul.mubr.msk.f32.gmra.mrb[20].mxu0 %vm1343_vm3, %v1166_v28  ;;  %6857 = vmatmul.mubr.msk.f32.gmra.mrb[14].mxu1 %vm1343_vm3, %v1314_v15  ;;  %v1321_v28 = vld [vmem:[%s8147_s14 + $0x580] sm:$0xff]  ;;  %v1247_v15 = vld [vmem:[%s8147_s14 + $0x330] sm:$0xff] }
  0xaf   : > { %6637 = vmatprep.mubr.msk.f32.mxu0 %vm1343_vm3, %v1167_v29  ;;  %6859 = vmatprep.mubr.msk.f32.mxu1 %vm1343_vm3, %v1315_v16  ;;  %v1208_v29 = vld [vmem:[%s8147_s14 + $0x1f8] sm:$0xff] }
  0xb0   : > { %v1248_v16 = vld [vmem:[%s8147_s14 + $0x338] sm:$0xff] }
  0xb2   : > { %6638 = vmatmul.mubr.msk.f32.gmra.mrb[22].mxu0 %vm1343_vm3, %v1168_v30  ;;  %6860 = vmatmul.mubr.msk.f32.gmra.mrb[16].mxu1 %vm1343_vm3, %v1316_v19  ;;  %v1209_v30 = vld [vmem:[%s8147_s14 + $0x200] sm:$0xff]  ;;  %v1251_v19 = vld [vmem:[%s8147_s14 + $0x350] sm:$0xff] }
  0xb3   : > { %6640 = vmatprep.mubr.msk.f32.mxu0 %vm1343_vm3, %v1169_v31  ;;  %6862 = vmatprep.mubr.msk.f32.mxu1 %vm1343_vm3, %v1317_v20  ;;  %v1322_v31 = vld [vmem:[%s8147_s14 + $0x588] sm:$0xff]  ;;  %v1252_v20 = vld [vmem:[%s8147_s14 + $0x358] sm:$0xff] }
  0xb6   : > { %6641 = vmatmul.mubr.msk.f32.gmra.mrb[24].mxu0 %vm1343_vm3, %v1170_v32  ;;  %6863 = vmatmul.mubr.msk.f32.gmra.mrb[18].mxu1 %vm1343_vm3, %v1318_v23  ;;  %v1323_v32 = vld [vmem:[%s8147_s14 + $0x590] sm:$0xff] }
  0xb7   : > { %6643 = vmatprep.mubr.msk.f32.mxu0 %vm1343_vm3, %v1171_v33  ;;  %6865 = vmatprep.mubr.msk.f32.mxu1 %vm1343_vm3, %v1319_v24  ;;  %v1210_v33 = vld [vmem:[%s8147_s14 + $0x208] sm:$0xff] }
  0xb8   : > { %v1254_v24 = vld [vmem:[%s8147_s14 + $0x368] sm:$0xff] }
  0xba   : > { %6644 = vmatmul.mubr.msk.f32.gmra.mrb[26].mxu0 %vm1343_vm3, %v1172_v34  ;;  %6866 = vmatmul.mubr.msk.f32.gmra.mrb[20].mxu1 %vm1343_vm3, %v1320_v27  ;;  %v1211_v34 = vld [vmem:[%s8147_s14 + $0x210] sm:$0xff] }
  0xbb   : > { %6646 = vmatprep.mubr.msk.f32.mxu0 %vm1343_vm3, %v1173_v35  ;;  %6868 = vmatprep.mubr.msk.f32.mxu1 %vm1343_vm3, %v1321_v28  ;;  %v1324_v35 = vld [vmem:[%s8147_s14 + $0x598] sm:$0xff] }
  0xbc   : > { %v1256_v28 = vld [vmem:[%s8147_s14 + $0x378] sm:$0xff] }
  0xbe   : > { %6647 = vmatmul.mubr.msk.f32.gmra.mrb[28].mxu0 %vm1343_vm3, %v1174_v36  ;;  %6869 = vmatmul.mubr.msk.f32.gmra.mrb[22].mxu1 %vm1343_vm3, %v1322_v31  ;;  %v1325_v36 = vld [vmem:[%s8147_s14 + $0x5a0] sm:$0xff] }
  0xbf   : > { %6649 = vmatprep.mubr.msk.f32.mxu0 %vm1343_vm3, %v1175_v37  ;;  %6871 = vmatprep.mubr.msk.f32.mxu1 %vm1343_vm3, %v1323_v32  ;;  %v1212_v37 = vld [vmem:[%s8147_s14 + $0x218] sm:$0xff]  ;;  %v1258_v32 = vld [vmem:[%s8147_s14 + $0x388] sm:$0xff] }
  0xc2   : > { %6650 = vmatmul.mubr.msk.f32.gmra.mrb[30].mxu0 %vm1343_vm3, %v1176_v38  ;;  %6872 = vmatmul.mubr.msk.f32.gmra.mrb[24].mxu1 %vm1343_vm3, %v1324_v35  ;;  %v1213_v38 = vld [vmem:[%s8147_s14 + $0x220] sm:$0xff] }
  0xc3   : > { %6652 = vmatprep.mubr.msk.f32.mxu0 %vm1343_vm3, %v1177_v39  ;;  %6874 = vmatprep.mubr.msk.f32.mxu1 %vm1343_vm3, %v1325_v36  ;;  %v1326_v39 = vld [vmem:[%s8147_s14 + $0x5a8] sm:$0xff]  ;;  %v1260_v36 = vld [vmem:[%s8147_s14 + $0x398] sm:$0xff] }
  0xc6   : > { %6653 = vmatmul.mubr.msk.f32.gmra.mrb[32].mxu0 %vm1343_vm3, %v1178_v40  ;;  %6875 = vmatmul.mubr.msk.f32.gmra.mrb[26].mxu1 %vm1343_vm3, %v1326_v39  ;;  %v1327_v40 = vld [vmem:[%s8147_s14 + $0x5b0] sm:$0xff] }
  0xc7   : > { %6655 = vmatprep.mubr.msk.f32.mxu0 %vm1343_vm3, %v1179_v41  ;;  %v1214_v41 = vld [vmem:[%s8147_s14 + $0x228] sm:$0xff]  ;;  %6877 = vmatprep.mubr.msk.f32.mxu1 %vm1343_vm3, %v1327_v40 }
  0xc8   : > { %v1262_v40 = vld [vmem:[%s8147_s14 + $0x3a8] sm:$0xff] }
  0xca   : > { %6656 = vmatmul.mubr.msk.f32.gmra.mrb[34].mxu0 %vm1343_vm3, %v1180_v42  ;;  %v1215_v42 = vld [vmem:[%s8147_s14 + $0x230] sm:$0xff] }
  0xcb   : > { %6658 = vmatprep.mubr.msk.f32.mxu0 %vm1343_vm3, %v1181_v43  ;;  %v1328_v43 = vld [vmem:[%s8147_s14 + $0x5b8] sm:$0xff] }
  0xcc   : > { %6878 = vmatmul.mubr.msk.f32.gmra.mrb[28].mxu1 %vm1343_vm3, %v1328_v43 }
  0xce   : > { %6659 = vmatmul.mubr.msk.f32.gmra.mrb[36].mxu0 %vm1343_vm3, %v1182_v44  ;;  %v1329_v44 = vld [vmem:[%s8147_s14 + $0x5c0] sm:$0xff] }
  0xcf   : > { %6661 = vmatprep.mubr.msk.f32.mxu0 %vm1343_vm3, %v1183_v45  ;;  %v1216_v45 = vld [vmem:[%s8147_s14 + $0x238] sm:$0xff]  ;;  %6880 = vmatprep.mubr.msk.f32.mxu1 %vm1343_vm3, %v1329_v44 }
  0xd0   : > { %v1264_v44 = vld [vmem:[%s8147_s14 + $0x3b8] sm:$0xff] }
  0xd2   : > { %6662 = vmatmul.mubr.msk.f32.gmra.mrb[38].mxu0 %vm1343_vm3, %v1184_v46  ;;  %v1217_v46 = vld [vmem:[%s8147_s14 + $0x240] sm:$0xff] }
  0xd3   : > { %6664 = vmatprep.mubr.msk.f32.mxu0 %vm1343_vm3, %v1185_v47  ;;  %v1330_v47 = vld [vmem:[%s8147_s14 + $0x5c8] sm:$0xff] }
  0xd4   : > { %6881 = vmatmul.mubr.msk.f32.gmra.mrb[30].mxu1 %vm1343_vm3, %v1330_v47 }
  0xd5   : > { %6883 = vmatprep.mubr.msk.f32.mxu1 %vm1343_vm3, %v1331_v48  ;;  %v1266_v48 = vld [vmem:[%s8147_s14 + $0x3c8] sm:$0xff] }
  0xd6   : > { %6665 = vmatmul.mubr.msk.f32.gmra.mrb[40].mxu0 %vm1343_vm3, %v1186_v49  ;;  %v1218_v49 = vld [vmem:[%s8147_s14 + $0x248] sm:$0xff] }
  0xd7   : > { %6667 = vmatprep.mubr.msk.f32.mxu0 %vm1343_vm3, %v1187_v51  ;;  %v1332_v51 = vld [vmem:[%s8147_s14 + $0x5d8] sm:$0xff] }
  0xd8   : > { %6884 = vmatmul.mubr.msk.f32.gmra.mrb[32].mxu1 %vm1343_vm3, %v1332_v51 }
  0xda   : > { %6668 = vmatmul.mubr.msk.f32.gmra.mrb[42].mxu0 %vm1343_vm3, %v1188_v53  ;;  %v1221_v53 = vld [vmem:[%s8147_s14 + $0x260] sm:$0xff] }
  0xdb   : > { %6670 = vmatprep.mubr.msk.f32.mxu0 %vm1343_vm3, %v1189_v54  ;;  %v1222_v54 = vld [vmem:[%s8147_s14 + $0x268] sm:$0xff] }
  0xde   : > { %6671 = vmatmul.mubr.msk.f32.gmra.mrb[44].mxu0 %vm1343_vm3, %v1190_v57  ;;  %v1225_v57 = vld [vmem:[%s8147_s14 + $0x280] sm:$0xff] }
  0xdf   : > { %6673 = vmatprep.mubr.msk.f32.mxu0 %vm1343_vm3, %v1191_v58  ;;  %v1226_v58 = vld [vmem:[%s8147_s14 + $0x288] sm:$0xff] }
  0xe2   : > { %6674 = vmatmul.mubr.msk.f32.gmra.mrb[46].mxu0 %vm1343_vm3, %v1192_v61  ;;  %v1229_v61 = vld [vmem:[%s8147_s14 + $0x2a0] sm:$0xff] }
  0xe3   : > { %6676 = vmatprep.mubr.msk.f32.mxu0 %vm1343_vm3, %v1193_v62  ;;  %v1230_v62 = vld [vmem:[%s8147_s14 + $0x2a8] sm:$0xff] }
  0xe6   : > { %6677 = vmatmul.mubr.msk.f32.gmra.mrb[48].mxu0 %vm1343_vm3, %v1194_v1  ;;  %v1233_v1 = vld [vmem:[%s8147_s14 + $0x2c0] sm:$0xff] }
  0xe7   : > { %6679 = vmatprep.mubr.msk.f32.mxu0 %vm1343_vm3, %v1195_v2  ;;  %v1234_v2 = vld [vmem:[%s8147_s14 + $0x2c8] sm:$0xff] }
  0xea   : > { %6680 = vmatmul.mubr.msk.f32.gmra.mrb[50].mxu0 %vm1343_vm3, %v1196_v5  ;;  %v1237_v5 = vld [vmem:[%s8147_s14 + $0x2e0] sm:$0xff] }
  0xeb   : > { %6682 = vmatprep.mubr.msk.f32.mxu0 %vm1343_vm3, %v1197_v6  ;;  %v1238_v6 = vld [vmem:[%s8147_s14 + $0x2e8] sm:$0xff] }
  0xee   : > { %6683 = vmatmul.mubr.msk.f32.gmra.mrb[52].mxu0 %vm1343_vm3, %v1198_v9  ;;  %v1241_v9 = vld [vmem:[%s8147_s14 + $0x300] sm:$0xff] }
  0xef   : > { %6685 = vmatprep.mubr.msk.f32.mxu0 %vm1343_vm3, %v1199_v10  ;;  %v1242_v10 = vld [vmem:[%s8147_s14 + $0x308] sm:$0xff] }
  0xf2   : > { %6686 = vmatmul.mubr.msk.f32.gmra.mrb[54].mxu0 %vm1343_vm3, %v1200_v13  ;;  %v1245_v13 = vld [vmem:[%s8147_s14 + $0x320] sm:$0xff] }
  0xf3   : > { %6688 = vmatprep.mubr.msk.f32.mxu0 %vm1343_vm3, %v1201_v14  ;;  %v1246_v14 = vld [vmem:[%s8147_s14 + $0x328] sm:$0xff] }
  0xf6   : > { %6689 = vmatmul.mubr.msk.f32.gmra.mrb[56].mxu0 %vm1343_vm3, %v1202_v17  ;;  %v1249_v17 = vld [vmem:[%s8147_s14 + $0x340] sm:$0xff] }
  0xf7   : > { %6691 = vmatprep.mubr.msk.f32.mxu0 %vm1343_vm3, %v1203_v18  ;;  %v1250_v18 = vld [vmem:[%s8147_s14 + $0x348] sm:$0xff] }
  0xfa   : > { %6692 = vmatmul.mubr.msk.f32.gmra.mrb[58].mxu0 %vm1343_vm3, %v1204_v21  ;;  %v1253_v21 = vld [vmem:[%s8147_s14 + $0x360] sm:$0xff] }
  0xfb   : > { %6694 = vmatprep.mubr.msk.f32.mxu0 %vm1343_vm3, %v1205_v22 }
  0xfe   : > { %6695 = vmatmul.mubr.msk.f32.gmra.mrb[60].mxu0 %vm1343_vm3, %v1206_v25  ;;  %v1255_v25 = vld [vmem:[%s8147_s14 + $0x370] sm:$0xff] }
  0xff   : > { %6697 = vmatprep.mubr.msk.f32.mxu0 %vm1343_vm3, %v1207_v26 }
 0x102   : > { %6698 = vmatmul.mubr.msk.f32.gmra.mrb[62].mxu0 %vm1343_vm3, %v1208_v29  ;;  %v1257_v29 = vld [vmem:[%s8147_s14 + $0x380] sm:$0xff] }
 0x103   : > { %6700 = vmatprep.mubr.msk.f32.mxu0 %vm1343_vm3, %v1209_v30 }
 0x106   : > { %6701 = vmatmul.mubr.msk.f32.gmra.mrb[64].mxu0 %vm1343_vm3, %v1210_v33  ;;  %v1259_v33 = vld [vmem:[%s8147_s14 + $0x390] sm:$0xff] }
 0x107   : > { %6703 = vmatprep.mubr.msk.f32.mxu0 %vm1343_vm3, %v1211_v34 }
 0x10a   : > { %6704 = vmatmul.mubr.msk.f32.gmra.mrb[66].mxu0 %vm1343_vm3, %v1212_v37  ;;  %v1261_v37 = vld [vmem:[%s8147_s14 + $0x3a0] sm:$0xff] }
 0x10b   : > { %6706 = vmatprep.mubr.msk.f32.mxu0 %vm1343_vm3, %v1213_v38 }
 0x10e   : > { %6707 = vmatmul.mubr.msk.f32.gmra.mrb[68].mxu0 %vm1343_vm3, %v1214_v41  ;;  %v1263_v41 = vld [vmem:[%s8147_s14 + $0x3b0] sm:$0xff] }
 0x10f   : > { %6709 = vmatprep.mubr.msk.f32.mxu0 %vm1343_vm3, %v1215_v42 }
 0x112   : > { %6710 = vmatmul.mubr.msk.f32.gmra.mrb[70].mxu0 %vm1343_vm3, %v1216_v45  ;;  %v1265_v45 = vld [vmem:[%s8147_s14 + $0x3c0] sm:$0xff] }
 0x113   : > { %6712 = vmatprep.mubr.msk.f32.mxu0 %vm1343_vm3, %v1217_v46 }
 0x116   : > { %6713 = vmatmul.mubr.msk.f32.gmra.mrb[72].mxu0 %vm1343_vm3, %v1218_v49  ;;  %v1267_v49 = vld [vmem:[%s8147_s14 + $0x3d0] sm:$0xff] }
 0x117   : > { %6715 = vmatprep.mubr.msk.f32.mxu0 %vm1343_vm3, %v1219_v50 }
 0x11a   : > { %6716 = vmatmul.mubr.msk.f32.gmra.mrb[74].mxu0 %vm1343_vm3, %v1220_v52  ;;  %v1268_v52 = vld [vmem:[%s8147_s14 + $0x3d8] sm:$0xff] }
 0x11b   : > { %6718 = vmatprep.mubr.msk.f32.mxu0 %vm1343_vm3, %v1221_v53  ;;  %v1269_v53 = vld [vmem:[%s8147_s14 + $0x3e0] sm:$0xff] }
 0x11e   : > { %6719 = vmatmul.mubr.msk.f32.gmra.mrb[76].mxu0 %vm1343_vm3, %v1222_v54 }
 0x11f   : > { %6721 = vmatprep.mubr.msk.f32.mxu0 %vm1343_vm3, %v1223_v55 }
 0x122   : > { %6722 = vmatmul.mubr.msk.f32.gmra.mrb[78].mxu0 %vm1343_vm3, %v1224_v56  ;;  %v1270_v56 = vld [vmem:[%s8147_s14 + $0x3e8] sm:$0xff] }
 0x123   : > { %6724 = vmatprep.mubr.msk.f32.mxu0 %vm1343_vm3, %v1225_v57  ;;  %v1271_v57 = vld [vmem:[%s8147_s14 + $0x3f0] sm:$0xff] }
 0x126   : > { %6725 = vmatmul.mubr.msk.f32.gmra.mrb[80].mxu0 %vm1343_vm3, %v1226_v58 }
 0x127   : > { %6727 = vmatprep.mubr.msk.f32.mxu0 %vm1343_vm3, %v1227_v59 }
 0x12a   : > { %6728 = vmatmul.mubr.msk.f32.gmra.mrb[82].mxu0 %vm1343_vm3, %v1228_v60  ;;  %v1272_v60 = vld [vmem:[%s8147_s14 + $0x3f8] sm:$0xff] }
 0x12b   : > { %6730 = vmatprep.mubr.msk.f32.mxu0 %vm1343_vm3, %v1229_v61  ;;  %v1273_v61 = vld [vmem:[%s8147_s14 + $0x400] sm:$0xff] }
 0x12e   : > { %6731 = vmatmul.mubr.msk.f32.gmra.mrb[84].mxu0 %vm1343_vm3, %v1230_v62 }
 0x12f   : > { %6733 = vmatprep.mubr.msk.f32.mxu0 %vm1343_vm3, %v1231_v63 }
 0x132   : > { %6734 = vmatmul.mubr.msk.f32.gmra.mrb[86].mxu0 %vm1343_vm3, %v1232_v0  ;;  %v1274_v0 = vld [vmem:[%s8147_s14 + $0x408] sm:$0xff] }
 0x133   : > { %6736 = vmatprep.mubr.msk.f32.mxu0 %vm1343_vm3, %v1233_v1  ;;  %v1275_v1 = vld [vmem:[%s8147_s14 + $0x410] sm:$0xff] }
 0x136   : > { %6737 = vmatmul.mubr.msk.f32.gmra.mrb[88].mxu0 %vm1343_vm3, %v1234_v2 }
 0x137   : > { %6739 = vmatprep.mubr.msk.f32.mxu0 %vm1343_vm3, %v1235_v3 }
 0x13a   : > { %6740 = vmatmul.mubr.msk.f32.gmra.mrb[90].mxu0 %vm1343_vm3, %v1236_v4  ;;  %v1276_v4 = vld [vmem:[%s8147_s14 + $0x418] sm:$0xff] }
 0x13b   : > { %6742 = vmatprep.mubr.msk.f32.mxu0 %vm1343_vm3, %v1237_v5  ;;  %v1277_v5 = vld [vmem:[%s8147_s14 + $0x420] sm:$0xff] }
 0x13e   : > { %6743 = vmatmul.mubr.msk.f32.gmra.mrb[92].mxu0 %vm1343_vm3, %v1238_v6 }
 0x13f   : > { %6745 = vmatprep.mubr.msk.f32.mxu0 %vm1343_vm3, %v1239_v7 }
 0x142   : > { %6746 = vmatmul.mubr.msk.f32.gmra.mrb[94].mxu0 %vm1343_vm3, %v1240_v8  ;;  %v1278_v8 = vld [vmem:[%s8147_s14 + $0x428] sm:$0xff] }
 0x143   : > { %6748 = vmatprep.mubr.msk.f32.mxu0 %vm1343_vm3, %v1241_v9  ;;  %v1279_v9 = vld [vmem:[%s8147_s14 + $0x430] sm:$0xff] }
 0x146   : > { %6749 = vmatmul.mubr.msk.f32.gmra.mrb[96].mxu0 %vm1343_vm3, %v1242_v10 }
 0x147   : > { %6751 = vmatprep.mubr.msk.f32.mxu0 %vm1343_vm3, %v1243_v11 }
 0x14a   : > { %6752 = vmatmul.mubr.msk.f32.gmra.mrb[98].mxu0 %vm1343_vm3, %v1244_v12  ;;  %v1280_v12 = vld [vmem:[%s8147_s14 + $0x438] sm:$0xff] }
 0x14b   : > { %6754 = vmatprep.mubr.msk.f32.mxu0 %vm1343_vm3, %v1245_v13  ;;  %v1281_v13 = vld [vmem:[%s8147_s14 + $0x440] sm:$0xff] }
 0x14e   : > { %6755 = vmatmul.mubr.msk.f32.gmra.mrb[100].mxu0 %vm1343_vm3, %v1246_v14 }
 0x14f   : > { %6757 = vmatprep.mubr.msk.f32.mxu0 %vm1343_vm3, %v1247_v15 }
 0x152   : > { %6758 = vmatmul.mubr.msk.f32.gmra.mrb[102].mxu0 %vm1343_vm3, %v1248_v16  ;;  %v1282_v16 = vld [vmem:[%s8147_s14 + $0x448] sm:$0xff] }
 0x153   : > { %6760 = vmatprep.mubr.msk.f32.mxu0 %vm1343_vm3, %v1249_v17  ;;  %v1283_v17 = vld [vmem:[%s8147_s14 + $0x450] sm:$0xff] }
 0x156   : > { %6761 = vmatmul.mubr.msk.f32.gmra.mrb[104].mxu0 %vm1343_vm3, %v1250_v18 }
 0x157   : > { %6763 = vmatprep.mubr.msk.f32.mxu0 %vm1343_vm3, %v1251_v19 }
 0x159   : > { %v8433_v22 = vpop.f32.mrb[0].mxu0 }
 0x15a   : > { %9748 = vst [vmem:[#allocation3_spill] sm:$0xff] %v8433_v22  ;;  %v8435_v23 = vpop.f32.mrb[1].mxu0  ;;  %6764 = vmatmul.mubr.msk.f32.gmra.mrb[106].mxu0 %vm1343_vm3, %v1252_v20  ;;  %v1284_v20 = vld [vmem:[%s8147_s14 + $0x458] sm:$0xff] }
 0x15b   : > { %9749 = vst [vmem:[#allocation4_spill] sm:$0xff] %v8435_v23  ;;  %6766 = vmatprep.mubr.msk.f32.mxu0 %vm1343_vm3, %v1253_v21  ;;  %v1285_v21 = vld [vmem:[%s8147_s14 + $0x460] sm:$0xff] }
 0x15d   : > { %v8441_v26 = vpop.f32.mrb[2].mxu0 }
 0x15e   : > { %9750 = vst [vmem:[#allocation5_spill] sm:$0xff] %v8441_v26  ;;  %v8443_v27 = vpop.f32.mrb[3].mxu0  ;;  %6767 = vmatmul.mubr.msk.f32.gmra.mrb[108].mxu0 %vm1343_vm3, %v1254_v24 }
 0x15f   : > { %9751 = vst [vmem:[#allocation6_spill] sm:$0xff] %v8443_v27  ;;  %6769 = vmatprep.mubr.msk.f32.mxu0 %vm1343_vm3, %v1255_v25 }
 0x161   : > { %v8449_v30 = vpop.f32.mrb[4].mxu0 }
 0x162   : > { %9752 = vst [vmem:[#allocation7_spill] sm:$0xff] %v8449_v30  ;;  %v8451_v31 = vpop.f32.mrb[5].mxu0  ;;  %6770 = vmatmul.mubr.msk.f32.gmra.mrb[110].mxu0 %vm1343_vm3, %v1256_v28  ;;  %v1286_v28 = vld [vmem:[%s8147_s14 + $0x468] sm:$0xff] }
 0x163   : > { %9753 = vst [vmem:[#allocation8_spill] sm:$0xff] %v8451_v31  ;;  %6772 = vmatprep.mubr.msk.f32.mxu0 %vm1343_vm3, %v1257_v29  ;;  %v1287_v29 = vld [vmem:[%s8147_s14 + $0x470] sm:$0xff] }
 0x165   : > { %v8457_v34 = vpop.f32.mrb[6].mxu0 }
 0x166   : > { %v2032_v35 = vpop.f32.mrb[7].mxu0  ;;  %6773 = vmatmul.mubr.msk.f32.gmra.mrb[112].mxu0 %vm1343_vm3, %v1258_v32 }
 0x167   : > { %6775 = vmatprep.mubr.msk.f32.mxu0 %vm1343_vm3, %v1259_v33  ;;  %v1288_v35 = vld [vmem:[%s8147_s14 + $0x478] sm:$0xff] }
 0x169   : > { %v8463_v38 = vpop.f32.mrb[8].mxu0 }
 0x16a   : > { %v8465_v39 = vpop.f32.mrb[9].mxu0  ;;  %6776 = vmatmul.mubr.msk.f32.gmra.mrb[114].mxu0 %vm1343_vm3, %v1260_v36  ;;  %v1289_v36 = vld [vmem:[%s8147_s14 + $0x480] sm:$0xff] }
 0x16b   : > { %6778 = vmatprep.mubr.msk.f32.mxu0 %vm1343_vm3, %v1261_v37 }
 0x16d   : > { %v8471_v42 = vpop.f32.mrb[10].mxu0 }
 0x16e   : > { %v8473_v43 = vpop.f32.mrb[11].mxu0  ;;  %6779 = vmatmul.mubr.msk.f32.gmra.mrb[116].mxu0 %vm1343_vm3, %v1262_v40 }
 0x16f   : > { %6781 = vmatprep.mubr.msk.f32.mxu0 %vm1343_vm3, %v1263_v41  ;;  %v1290_v41 = vld [vmem:[%s8147_s14 + $0x488] sm:$0xff] }
 0x171   : > { %v6624_v46 = vpop.f32.mrb[12].mxu0 }
 0x172   : > { %v8479_v47 = vpop.f32.mrb[13].mxu0  ;;  %6782 = vmatmul.mubr.msk.f32.gmra.mrb[118].mxu0 %vm1343_vm3, %v1264_v44  ;;  %v1291_v44 = vld [vmem:[%s8147_s14 + $0x490] sm:$0xff] }
 0x173   : > { %6784 = vmatprep.mubr.msk.f32.mxu0 %vm1343_vm3, %v1265_v45 }
 0x175   : > { %v8485_v50 = vpop.f32.mrb[14].mxu0 }
 0x176   : > { %v8487_v51 = vpop.f32.mrb[15].mxu0  ;;  %6785 = vmatmul.mubr.msk.f32.gmra.mrb[120].mxu0 %vm1343_vm3, %v1266_v48  ;;  %v1292_v48 = vld [vmem:[%s8147_s14 + $0x498] sm:$0xff] }
 0x177   : > { %6787 = vmatprep.mubr.msk.f32.mxu0 %vm1343_vm3, %v1267_v49  ;;  %v8582_v49 = vpop.f32.mrb[0].mxu1 }
 0x179   : > { %v8493_v54 = vpop.f32.mrb[16].mxu0 }
 0x17a   : > { %v8495_v55 = vpop.f32.mrb[17].mxu0  ;;  %6788 = vmatmul.mubr.msk.f32.gmra.mrb[122].mxu0 %vm1343_vm3, %v1268_v52  ;;  %v1293_v52 = vld [vmem:[%s8147_s14 + $0x4a0] sm:$0xff] }
 0x17b   : > { %6790 = vmatprep.mubr.msk.f32.mxu0 %vm1343_vm3, %v1269_v53 }
 0x17d   : > { %v8501_v58 = vpop.f32.mrb[18].mxu0 }
 0x17e   : > { %v8503_v59 = vpop.f32.mrb[19].mxu0  ;;  %6791 = vmatmul.mubr.msk.f32.gmra.mrb[124].mxu0 %vm1343_vm3, %v1270_v56  ;;  %v8585_v56 = vpop.f32.mrb[1].mxu1 }
 0x17f   : > { %6793 = vmatprep.mubr.msk.f32.mxu0 %vm1343_vm3, %v1271_v57 }
 0x181   : > { %v8509_v62 = vpop.f32.mrb[20].mxu0 }
 0x182   : > { %v2100_v63 = vpop.f32.mrb[21].mxu0  ;;  %6794 = vmatmul.mubr.msk.f32.gmra.mrb[126].mxu0 %vm1343_vm3, %v1272_v60  ;;  %v1294_v60 = vld [vmem:[%s8147_s14 + $0x4a8] sm:$0xff] }
 0x183   : > { %6796 = vmatprep.mubr.msk.f32.mxu0 %vm1343_vm3, %v1273_v61  ;;  %v1295_v61 = vld [vmem:[%s8147_s14 + $0x4b0] sm:$0xff]  ;;  %v8593_v63 = vpop.f32.mrb[2].mxu1 }
 0x185   : > { %v8515_v2 = vpop.f32.mrb[22].mxu0 }
 0x186   : > { %v8517_v3 = vpop.f32.mrb[23].mxu0  ;;  %6797 = vmatmul.mubr.msk.f32.gmra.mrb[128].mxu0 %vm1343_vm3, %v1274_v0 }
 0x187   : > { %9754 = vst [vmem:[#allocation9_spill] sm:$0xff] %v8517_v3  ;;  %6799 = vmatprep.mubr.msk.f32.mxu0 %vm1343_vm3, %v1275_v1  ;;  %v8595_v1 = vpop.f32.mrb[3].mxu1 }
 0x189   : > { %v8523_v6 = vpop.f32.mrb[24].mxu0 }
 0x18a   : > { %v8525_v7 = vpop.f32.mrb[25].mxu0  ;;  %6800 = vmatmul.mubr.msk.f32.gmra.mrb[130].mxu0 %vm1343_vm3, %v1276_v4 }
 0x18b   : > { %9755 = vst [vmem:[#allocation10_spill] sm:$0xff] %v8525_v7  ;;  %6802 = vmatprep.mubr.msk.f32.mxu0 %vm1343_vm3, %v1277_v5  ;;  %v1296_v5 = vld [vmem:[%s8147_s14 + $0x4b8] sm:$0xff] }
 0x18d   : > { %v6645_v10 = vpop.f32.mrb[26].mxu0 }
 0x18e   : > { %v8531_v11 = vpop.f32.mrb[27].mxu0  ;;  %6803 = vmatmul.mubr.msk.f32.gmra.mrb[132].mxu0 %vm1343_vm3, %v1278_v8  ;;  %v1297_v8 = vld [vmem:[%s8147_s14 + $0x4c0] sm:$0xff] }
 0x18f   : > { %9756 = vst [vmem:[#allocation11_spill] sm:$0xff] %v8531_v11  ;;  %6805 = vmatprep.mubr.msk.f32.mxu0 %vm1343_vm3, %v1279_v9  ;;  %v8601_v9 = vpop.f32.mrb[4].mxu1 }
 0x191   : > { %v8537_v14 = vpop.f32.mrb[28].mxu0 }
 0x192   : > { %v8539_v15 = vpop.f32.mrb[29].mxu0  ;;  %6806 = vmatmul.mubr.msk.f32.gmra.mrb[134].mxu0 %vm1343_vm3, %v1280_v12  ;;  %v8603_v12 = vpop.f32.mrb[5].mxu1 }
 0x193   : > { %6808 = vmatprep.mubr.msk.f32.mxu0 %vm1343_vm3, %v1281_v13 }
 0x195   : > { %v8545_v18 = vpop.f32.mrb[30].mxu0 }
 0x196   : > { %v8547_v19 = vpop.f32.mrb[31].mxu0  ;;  %6809 = vmatmul.mubr.msk.f32.gmra.mrb[136].mxu0 %vm1343_vm3, %v1282_v16  ;;  %v1298_v16 = vld [vmem:[%s8147_s14 + $0x4c8] sm:$0xff] }
 0x197   : > { %9757 = vst [vmem:[#allocation12_spill] sm:$0xff] %v8547_v19  ;;  %6811 = vmatprep.mubr.msk.f32.mxu0 %vm1343_vm3, %v1283_v17 }
 0x199   : > { %v8553_v24 = vpop.f32.mrb[32].mxu0 }
 0x19a   : > { %9758 = vst [vmem:[#allocation13_spill] sm:$0xff] %v8553_v24  ;;  %v8555_v25 = vpop.f32.mrb[33].mxu0  ;;  %6812 = vmatmul.mubr.msk.f32.gmra.mrb[138].mxu0 %vm1343_vm3, %v1284_v20 }
 0x19b   : > { %9759 = vst [vmem:[#allocation14_spill] sm:$0xff] %v8555_v25  ;;  %6814 = vmatprep.mubr.msk.f32.mxu0 %vm1343_vm3, %v1285_v21  ;;  %v8609_v21 = vpop.f32.mrb[6].mxu1 }
 0x19d   : > { %v8561_v32 = vpop.f32.mrb[34].mxu0 }
 0x19e   : > { %9760 = vst [vmem:[#allocation15_spill] sm:$0xff] %v8561_v32  ;;  %v2168_v33 = vpop.f32.mrb[35].mxu0  ;;  %6815 = vmatmul.mubr.msk.f32.gmra.mrb[140].mxu0 %vm1343_vm3, %v1286_v28  ;;  %v5985_v28 = vld [vmem:[%s9705_s3 + $0x20] sm:$0xff] }
 0x19f   : > { %6817 = vmatprep.mubr.msk.f32.mxu0 %vm1343_vm3, %v1287_v29  ;;  %v5986_v29 = vld [vmem:[%s9705_s3 + $0x28] sm:$0xff]  ;;  %v2762_v33 = vpop.f32.mrb[7].mxu1 }
 0x1a1   : > { %v8567_v37 = vpop.f32.mrb[36].mxu0 }
 0x1a2   : > { %9761 = vst [vmem:[#allocation16_spill] sm:$0xff] %v8567_v37  ;;  %v8569_v40 = vpop.f32.mrb[37].mxu0  ;;  %6818 = vmatmul.mubr.msk.f32.gmra.mrb[142].mxu0 %vm1343_vm3, %v1288_v35  ;;  %v7284_v35 = vpack.c.bf16 %v5986_v29, %v5985_v28 }
 0x1a3   : > { %9762 = vst [vmem:[#allocation17_spill] sm:$0xff] %v8569_v40  ;;  %6820 = vmatprep.mubr.msk.f32.mxu0 %vm1343_vm3, %v1289_v36  ;;  %v8617_v36 = vpop.f32.mrb[8].mxu1 }
 0x1a4   : > { %7285 = vmatprep.subr.bf16.mxu1 %v7284_v35 }
 0x1a5   : > { %v8575_v45 = vpop.f32.mrb[38].mxu0  ;;  %7287 = vmatpush3.bf16.msra.mxu1 %v7284_v35 }
 0x1a6   : > { %v8577_v46 = vpop.f32.mrb[39].mxu0  ;;  %6821 = vmatmul.mubr.msk.f32.gmra.mrb[144].mxu0 %vm1343_vm3, %v1290_v41 }
 0x1a7   : > { %9763 = vst [vmem:[#allocation18_spill] sm:$0xff] %v8577_v46  ;;  %6823 = vmatprep.mubr.msk.f32.mxu0 %vm1343_vm3, %v1291_v44  ;;  %v8621_v44 = vpop.f32.mrb[9].mxu1 }
 0x1a9   : > { %v6666_v53 = vpop.f32.mrb[40].mxu0 }
 0x1aa   : > { %v8587_v57 = vpop.f32.mrb[41].mxu0  ;;  %6824 = vmatmul.mubr.msk.f32.gmra.mrb[146].mxu0 %vm1343_vm3, %v1292_v48  ;;  %v8625_v53 = vpop.f32.mrb[10].mxu1 }
 0x1ab   : > { %9764 = vst [vmem:[#allocation19_spill] sm:$0xff] %v8587_v57  ;;  %6826 = vmatprep.mubr.msk.f32.mxu0 %vm1343_vm3, %v1293_v52 }
 0x1ad   : > { %v6669_v0 = vpop.f32.mrb[42].mxu0 }
 0x1ae   : > { %v2206_v4 = vpop.f32.mrb[43].mxu0  ;;  %6827 = vmatmul.mubr.msk.f32.gmra.mrb[148].mxu0 %vm1343_vm3, %v1294_v60 }
 0x1af   : > { %6829 = vmatprep.mubr.msk.f32.mxu0 %vm1343_vm3, %v1295_v61  ;;  %v8629_v61 = vpop.f32.mrb[11].mxu1 }
 0x1b1   : > { %v6672_v10 = vpop.f32.mrb[44].mxu0 }
 0x1b2   : > { %v2214_v13 = vpop.f32.mrb[45].mxu0  ;;  %6830 = vmatmul.mubr.msk.f32.gmra.mrb[150].mxu0 %vm1343_vm3, %v1296_v5 }
 0x1b3   : > { %6832 = vmatprep.mubr.msk.f32.mxu0 %vm1343_vm3, %v1297_v8  ;;  %v6855_v8 = vpop.f32.mrb[12].mxu1 }
 0x1b4   : > { %v8639_v13 = vpop.f32.mrb[13].mxu1 }
 0x1b5   : > { %v6675_v17 = vpop.f32.mrb[46].mxu0  ;;  %v8647_v28 = vpop.f32.mrb[14].mxu1 }
 0x1b6   : > { %v2222_v20 = vpop.f32.mrb[47].mxu0  ;;  %6833 = vmatmul.mubr.msk.f32.gmra.mrb[152].mxu0 %vm1343_vm3, %v1298_v16  ;;  %9770 = vst [vmem:[#allocation25_spill] sm:$0xff] %v8647_v28  ;;  %v8649_v33 = vpop.f32.mrb[15].mxu1 }
 0x1b7   : > { %9771 = vst [vmem:[#allocation26_spill] sm:$0xff] %v8649_v33  ;;  %v8655_v8 = vpop.f32.mrb[16].mxu1 }
 0x1b8   : > { %9773 = vst [vmem:[#allocation28_spill] sm:$0xff] %v8655_v8  ;;  %v8659_v16 = vpop.f32.mrb[17].mxu1 }
 0x1b9   : > { %v8619_v41 = vpop.f32.mrb[48].mxu0  ;;  %9774 = vst [vmem:[#allocation29_spill] sm:$0xff] %v8659_v16  ;;  %v8667_v48 = vpop.f32.mrb[18].mxu1 }
 0x1ba   : > { %9765 = vst [vmem:[#allocation20_spill] sm:$0xff] %v8619_v41  ;;  %v2230_v52 = vpop.f32.mrb[49].mxu0  ;;  %9775 = vst [vmem:[#allocation30_spill] sm:$0xff] %v8667_v48  ;;  %v8671_v26 = vpop.f32.mrb[19].mxu1 }
 0x1bb   : > { %9776 = vst [vmem:[#allocation31_spill] sm:$0xff] %v8671_v26  ;;  %v8685_v31 = vpop.f32.mrb[20].mxu1 }
 0x1bc   : > { %9777 = vst [vmem:[#allocation32_spill] sm:$0xff] %v8685_v31  ;;  %v2830_v22 = vpop.f32.mrb[21].mxu1 }
 0x1bd   : > { %v8627_v60 = vpop.f32.mrb[50].mxu0 }
 0x1be   : > { %9766 = vst [vmem:[#allocation21_spill] sm:$0xff] %v8627_v60  ;;  %v8633_v4 = vpop.f32.mrb[51].mxu0  ;;  %v8689_v60 = vpop.f32.mrb[22].mxu1 }
 0x1bf   : > { %9767 = vst [vmem:[#allocation22_spill] sm:$0xff] %v8633_v4  ;;  %9778 = vst [vmem:[#allocation33_spill] sm:$0xff] %v8689_v60  ;;  %v8693_v27 = vpop.f32.mrb[23].mxu1  ;;  %v5987_v60 = vld [vmem:[%s9705_s3 + $0x30] sm:$0xff] }
 0x1c0   : > { %9779 = vst [vmem:[#allocation34_spill] sm:$0xff] %v8693_v27  ;;  %v8697_v23 = vpop.f32.mrb[24].mxu1 }
 0x1c1   : > { %v8637_v10 = vpop.f32.mrb[52].mxu0  ;;  %9780 = vst [vmem:[#allocation35_spill] sm:$0xff] %v8697_v23  ;;  %v8701_v48 = vpop.f32.mrb[25].mxu1 }
 0x1c2   : > { %9768 = vst [vmem:[#allocation23_spill] sm:$0xff] %v8637_v10  ;;  %v8643_v17 = vpop.f32.mrb[53].mxu0  ;;  %9781 = vst [vmem:[#allocation36_spill] sm:$0xff] %v8701_v48  ;;  %v6876_v31 = vpop.f32.mrb[26].mxu1 }
 0x1c3   : > { %9769 = vst [vmem:[#allocation24_spill] sm:$0xff] %v8643_v17  ;;  %v8711_v8 = vpop.f32.mrb[27].mxu1 }
 0x1c4   : > { %9782 = vst [vmem:[#allocation37_spill] sm:$0xff] %v8711_v8  ;;  %v8719_v48 = vpop.f32.mrb[28].mxu1 }
 0x1c5   : > { %v6687_v29 = vpop.f32.mrb[54].mxu0  ;;  %9783 = vst [vmem:[#allocation38_spill] sm:$0xff] %v8719_v48  ;;  %v8721_v26 = vpop.f32.mrb[29].mxu1 }
 0x1c6   : > { %v8651_v35 = vpop.f32.mrb[55].mxu0  ;;  %9784 = vst [vmem:[#allocation39_spill] sm:$0xff] %v8721_v26  ;;  %v8733_v23 = vpop.f32.mrb[30].mxu1  ;;  %v1335_v26 = vld [vmem:[%s8147_s14 + $0x5f0] sm:$0xff] }
 0x1c7   : > { %9772 = vst [vmem:[#allocation27_spill] sm:$0xff] %v8651_v35  ;;  %9785 = vst [vmem:[#allocation40_spill] sm:$0xff] %v8733_v23 }
 0x1c9   : > { %v8657_v5 = vpop.f32.mrb[56].mxu0 }
 0x1ca   : > { %v8663_v20 = vpop.f32.mrb[57].mxu0 }
 0x1cd   : > { %v8669_v17 = vpop.f32.mrb[58].mxu0 }
 0x1ce   : > { %v8675_v35 = vpop.f32.mrb[59].mxu0 }
 0x1d1   : > { %v8679_v0 = vpop.f32.mrb[60].mxu0 }
 0x1d2   : > { %v8683_v29 = vpop.f32.mrb[61].mxu0 }
 0x1d5   : > { %v8691_v52 = vpop.f32.mrb[62].mxu0 }
 0x1d6   : > { %v2298_v41 = vpop.f32.mrb[63].mxu0 }
 0x1d7   : > { %v5988_v41 = vld [vmem:[%s9705_s3 + $0x38] sm:$0xff] }
 0x1d8   : > { %v7288_v8 = vpack.c.bf16 %v5988_v41, %v5987_v60 }
 0x1d9   : > { %v8699_v10 = vpop.f32.mrb[64].mxu0 }
 0x1da   : > { %v8705_v22 = vpop.f32.mrb[65].mxu0  ;;  %7289 = vmatprep.subr.bf16.mxu1 %v7288_v8 }
 0x1db   : > { %7291 = vmatpush3.bf16.msra.mxu1 %v7288_v8  ;;  %v1333_v8 = vld [vmem:[%s8147_s14 + $0x5e0] sm:$0xff] }
 0x1dc   : > { %6886 = vmatprep.mubr.msk.f32.mxu1 %vm1343_vm3, %v1333_v8  ;;  %v1336_v8 = vld [vmem:[%s8147_s14 + $0x5f8] sm:$0xff] }
 0x1dd   : > { %v8709_v27 = vpop.f32.mrb[66].mxu0 }
 0x1de   : > { %v8715_v30 = vpop.f32.mrb[67].mxu0 }
 0x1e1   : > { %v6708_v4 = vpop.f32.mrb[68].mxu0 }
 0x1e2   : > { %v8723_v28 = vpop.f32.mrb[69].mxu0  ;;  %v8737_v4 = vpop.f32.mrb[31].mxu1 }
 0x1e3   : > { %9787 = vst [vmem:[#allocation42_spill] sm:$0xff] %v8737_v4  ;;  %v8745_v33 = vpop.f32.mrb[32].mxu1 }
 0x1e4   : > { %9788 = vst [vmem:[#allocation43_spill] sm:$0xff] %v8745_v33  ;;  %v8749_v41 = vpop.f32.mrb[33].mxu1  ;;  %v1334_v33 = vld [vmem:[%s8147_s14 + $0x5e8] sm:$0xff] }
 0x1e5   : > { %v8735_v48 = vpop.f32.mrb[70].mxu0  ;;  %9790 = vst [vmem:[#allocation45_spill] sm:$0xff] %v8749_v41  ;;  %6887 = vmatmul.mubr.msk.f32.gmra.mrb[34].mxu1 %vm1343_vm3, %v1334_v33  ;;  %v1340_v33 = vld [vmem:[%s8147_s14 + $0x618] sm:$0xff] }
 0x1e6   : > { %9786 = vst [vmem:[#allocation41_spill] sm:$0xff] %v8735_v48  ;;  %v8741_v16 = vpop.f32.mrb[71].mxu0  ;;  %6889 = vmatprep.mubr.msk.f32.mxu1 %vm1343_vm3, %v1335_v26 }
 0x1e9   : > { %v8747_v60 = vpop.f32.mrb[72].mxu0  ;;  %6890 = vmatmul.mubr.msk.f32.gmra.mrb[36].mxu1 %vm1343_vm3, %v1336_v8  ;;  %v1339_v8 = vld [vmem:[%s8147_s14 + $0x610] sm:$0xff] }
 0x1ea   : > { %9789 = vst [vmem:[#allocation44_spill] sm:$0xff] %v8747_v60  ;;  %v8753_v4 = vpop.f32.mrb[73].mxu0 }
 0x1ed   : > { %v8757_v48 = vpop.f32.mrb[74].mxu0 }
 0x1ee   : > { %9791 = vst [vmem:[#allocation46_spill] sm:$0xff] %v8757_v48  ;;  %v8761_v31 = vpop.f32.mrb[75].mxu0 }
 0x1f1   : > { %v8765_v41 = vpop.f32.mrb[76].mxu0 }
 0x1f2   : > { %v2366_v60 = vpop.f32.mrb[77].mxu0 }
 0x1f3   : > { %v1337_v60 = vld [vmem:[%s8147_s14 + $0x600] sm:$0xff] }
 0x1f4   : > { %6892 = vmatprep.mubr.msk.f32.mxu1 %vm1343_vm3, %v1337_v60 }
 0x1f5   : > { %v8769_v7 = vpop.f32.mrb[78].mxu0 }
 0x1f6   : > { %9792 = vst [vmem:[#allocation47_spill] sm:$0xff] %v8769_v7  ;;  %v8773_v3 = vpop.f32.mrb[79].mxu0 }
 0x1f9   : > { %v8780_v11 = vpop.f32.mrb[80].mxu0 }
 0x1fa   : > { %9793 = vst [vmem:[#allocation48_spill] sm:$0xff] %v8780_v11  ;;  %v8785_v23 = vpop.f32.mrb[81].mxu0  ;;  %v1338_v11 = vld [vmem:[%s8147_s14 + $0x608] sm:$0xff] }
 0x1fb   : > { %9794 = vst [vmem:[#allocation49_spill] sm:$0xff] %v8785_v23  ;;  %6893 = vmatmul.mubr.msk.f32.gmra.mrb[38].mxu1 %vm1343_vm3, %v1338_v11 }
 0x1fc   : > { %6895 = vmatprep.mubr.msk.f32.mxu1 %vm1343_vm3, %v1339_v8  ;;  %v3081_v8 = vld [vmem:[%s9705_s3 + $0x8] sm:$0xff] }
 0x1fd   : > { %v6729_v48 = vpop.f32.mrb[82].mxu0 }
 0x1fe   : > { %v8793_v19 = vpop.f32.mrb[83].mxu0  ;;  %v3080_v48 = vld [vmem:[%s9705_s3] sm:$0xff] }
 0x1ff   : > { %9795 = vst [vmem:[#allocation50_spill] sm:$0xff] %v8793_v19  ;;  %6896 = vmatmul.mubr.msk.f32.gmra.mrb[40].mxu1 %vm1343_vm3, %v1340_v33 }
 0x201   : > { %v8800_v25 = vpop.f32.mrb[84].mxu0 }
 0x202   : > { %9796 = vst [vmem:[#allocation51_spill] sm:$0xff] %v8800_v25  ;;  %v8805_v7 = vpop.f32.mrb[85].mxu0  ;;  %v8827_v25 = vpack.c.bf16 %v3081_v8, %v3080_v48 }
 0x203   : > { %9797 = vst [vmem:[#allocation52_spill] sm:$0xff] %v8805_v7 }
 0x204   : > { %9800 = vst [vmem:[#allocation55_spill] sm:$0xff] %v8827_v25  ;;  %7293 = vmatprep.subr.bf16.mxu1 %v8827_v25 }
 0x205   : > { %v8812_v19 = vpop.f32.mrb[86].mxu0 }
 0x206   : > { %9798 = vst [vmem:[#allocation53_spill] sm:$0xff] %v8812_v19  ;;  %v8817_v11 = vpop.f32.mrb[87].mxu0 }
 0x207   : > { %9799 = vst [vmem:[#allocation54_spill] sm:$0xff] %v8817_v11 }
 0x209   : > { %v8829_v40 = vpop.f32.mrb[88].mxu0 }
 0x20a   : > { %9801 = vst [vmem:[#allocation56_spill] sm:$0xff] %v8829_v40  ;;  %v8833_v60 = vpop.f32.mrb[89].mxu0 }
 0x20d   : > { %v6741_v19 = vpop.f32.mrb[90].mxu0 }
 0x20e   : > { %v2434_v46 = vpop.f32.mrb[91].mxu0 }
 0x211   : > { %v6744_v11 = vpop.f32.mrb[92].mxu0 }
 0x212   : > { %v2442_v37 = vpop.f32.mrb[93].mxu0 }
 0x215   : > { %v6747_v7 = vpop.f32.mrb[94].mxu0 }
 0x216   : > { %v2450_v32 = vpop.f32.mrb[95].mxu0  ;;  %v9804_v7 = vmax.f32 %v8457_v34, %v8663_v20 }
 0x219   : > { %v6750_v48 = vpop.f32.mrb[96].mxu0 }
 0x21a   : > { %v2458_v8 = vpop.f32.mrb[97].mxu0 }
 0x21d   : > { %v8838_v24 = vpop.f32.mrb[98].mxu0 }
 0x21e   : > { %v8840_v23 = vpop.f32.mrb[99].mxu0 }
 0x221   : > { %v8842_v33 = vpop.f32.mrb[100].mxu0 }
 0x222   : > { %9802 = vst [vmem:[#allocation57_spill] sm:$0xff] %v8842_v33  ;;  %v8844_v40 = vpop.f32.mrb[101].mxu0 }
 0x225   : > { %v8846_v25 = vpop.f32.mrb[102].mxu0 }
 0x226   : > { %9803 = vst [vmem:[#allocation58_spill] sm:$0xff] %v8846_v25  ;;  %v8848_v57 = vpop.f32.mrb[103].mxu0  ;;  %v9805_v25 = vmax.f32 %v8463_v38, %v8675_v35  ;;  %v9808_v38 = vmax.f32 %v8473_v43, %v8669_v17  ;;  %v9810_v43 = vmax.f32 %v8485_v50, %v8705_v22  ;;  %v9813_v50 = vmax.f32 %v8495_v55, %v8699_v10  ;;  %v9816_v55 = vld [vmem:[#allocation26_spill] sm:$0xff] }
 0x229   : > { %v6762_v19 = vpop.f32.mrb[104].mxu0 }
 0x22a   : > { %v2971_v46 = vmax.f32 %v6762_v19, %v8585_v56  ;;  %v2496_v37 = vpop.f32.mrb[105].mxu0  ;;  %v9806_v56 = vmax.f32 %v8465_v39, %v8657_v5 }
 0x22c   : > { %v8854_v32 = vmax.f32 %v9804_v7, %v2971_v46 }
 0x22d   : > { %v6765_v11 = vpop.f32.mrb[106].mxu0 }
 0x22e   : > { %v2973_v48 = vmax.f32 %v6765_v11, %v8595_v1  ;;  %v2505_v8 = vpop.f32.mrb[107].mxu0  ;;  %v9807_v1 = vmax.f32 %v8471_v42, %v8683_v29  ;;  %v9811_v11 = vmax.f32 %v8487_v51, %v8691_v52 }
 0x22f   : > { %v2972_v26 = vmax.f32 %v2505_v8, %v8582_v49 }
 0x230   : > { %v8861_v33 = vmax.f32 %v9805_v25, %v2973_v48 }
 0x231   : > { %v8866_v19 = vmax.f32 %v9806_v56, %v2972_v26  ;;  %v6768_v37 = vpop.f32.mrb[108].mxu0 }
 0x232   : > { %v2975_v34 = vmax.f32 %v6768_v37, %v8603_v12  ;;  %v2515_v20 = vpop.f32.mrb[109].mxu0  ;;  %v9809_v12 = vmax.f32 %v8479_v47, %v8679_v0 }
 0x233   : > { %v2974_v46 = vmax.f32 %v2515_v20, %v8593_v63 }
 0x234   : > { %v8873_v49 = vmax.f32 %v9807_v1, %v2975_v34  ;;  %v9818_v1 = vld [vmem:[#allocation29_spill] sm:$0xff] }
 0x235   : > { %v8878_v25 = vmax.f32 %v9808_v38, %v2974_v46  ;;  %v6771_v35 = vpop.f32.mrb[110].mxu0 }
 0x236   : > { %v2525_v39 = vpop.f32.mrb[111].mxu0 }
 0x237   : > { %v2976_v5 = vmax.f32 %v2525_v39, %v8601_v9  ;;  %v9821_v39 = vld [vmem:[#allocation9_spill] sm:$0xff] }
 0x239   : > { %v8884_v26 = vmax.f32 %v9809_v12, %v2976_v5  ;;  %v6774_v63 = vpop.f32.mrb[112].mxu0  ;;  %v9822_v5 = vld [vmem:[#allocation41_spill] sm:$0xff] }
 0x23a   : > { %v2978_v7 = vmax.f32 %v6774_v63, %v8621_v44  ;;  %v2534_v42 = vpop.f32.mrb[113].mxu0  ;;  %v9812_v44 = vmax.f32 %v8493_v54, %v8715_v30  ;;  %v9815_v30 = vmax.f32 %v8503_v59, %v8709_v27  ;;  %v9820_v27 = vmax.f32 %v8515_v2, %v8753_v4  ;;  %v9828_v2 = vld [vmem:[#allocation44_spill] sm:$0xff] }
 0x23b   : > { %v2977_v29 = vmax.f32 %v2534_v42, %v8609_v21  ;;  %v9823_v12 = vmax.f32 %v9821_v39, %v9822_v5  ;;  %v9840_v5 = vld [vmem:[#allocation49_spill] sm:$0xff] }
 0x23c   : > { %v8891_v17 = vmax.f32 %v9810_v43, %v2978_v7 }
 0x23d   : > { %v8896_v9 = vmax.f32 %v9811_v11, %v2977_v29  ;;  %v6777_v48 = vpop.f32.mrb[114].mxu0  ;;  %v9825_v29 = vld [vmem:[#allocation28_spill] sm:$0xff]  ;;  %v9826_v11 = vmax.f32 %v8523_v6, %v8761_v31 }
 0x23e   : > { %v2980_v47 = vmax.f32 %v6777_v48, %v8629_v61  ;;  %v2544_v0 = vpop.f32.mrb[115].mxu0  ;;  %v9814_v61 = vmax.f32 %v8501_v58, %v8723_v28  ;;  %v9819_v28 = vld [vmem:[#allocation25_spill] sm:$0xff]  ;;  %v9835_v31 = vld [vmem:[#allocation32_spill] sm:$0xff] }
 0x23f   : > { %v2979_v8 = vmax.f32 %v2544_v0, %v8617_v36 }
 0x240   : > { %v8903_v21 = vmax.f32 %v9812_v44, %v2980_v47  ;;  %v9827_v47 = vld [vmem:[#allocation10_spill] sm:$0xff] }
 0x241   : > { %v8908_v22 = vmax.f32 %v9813_v50, %v2979_v8  ;;  %v6780_v56 = vpop.f32.mrb[116].mxu0  ;;  %v9829_v4 = vmax.f32 %v9827_v47, %v9828_v2  ;;  %v9830_v50 = vld [vmem:[#allocation30_spill] sm:$0xff]  ;;  %v9847_v47 = vld [vmem:[#allocation13_spill] sm:$0xff] }
 0x242   : > { %v2982_v51 = vmax.f32 %v6780_v56, %v8639_v13  ;;  %v2554_v52 = vpop.f32.mrb[117].mxu0  ;;  %v9817_v13 = vmax.f32 %v8509_v62, %v8741_v16  ;;  %v9824_v62 = vld [vmem:[#allocation31_spill] sm:$0xff]  ;;  %v9848_v2 = vld [vmem:[#allocation50_spill] sm:$0xff] }
 0x243   : > { %v2981_v37 = vmax.f32 %v2554_v52, %v8625_v53  ;;  %v9832_v52 = vld [vmem:[#allocation46_spill] sm:$0xff] }
 0x244   : > { %v8915_v36 = vmax.f32 %v9814_v61, %v2982_v51  ;;  %v9831_v51 = vld [vmem:[#allocation11_spill] sm:$0xff] }
 0x245   : > { %v8920_v54 = vmax.f32 %v9815_v30, %v2981_v37  ;;  %v6783_v34 = vpop.f32.mrb[118].mxu0  ;;  %v9833_v37 = vmax.f32 %v9831_v51, %v9832_v52  ;;  %v9853_v52 = vld [vmem:[#allocation39_spill] sm:$0xff] }
 0x246   : > { %v2983_v10 = vmax.f32 %v6783_v34, %v9816_v55  ;;  %v2564_v20 = vpop.f32.mrb[119].mxu0  ;;  %v9834_v34 = vld [vmem:[#allocation34_spill] sm:$0xff] }
 0x247   : > { %v9836_v20 = vmax.f32 %v8537_v14, %v8773_v3  ;;  %v9843_v3 = vld [vmem:[#allocation47_spill] sm:$0xff] }
 0x248   : > { %v8926_v46 = vmax.f32 %v9817_v13, %v2983_v10 }
 0x249   : > { %v6786_v53 = vpop.f32.mrb[120].mxu0 }
 0x24a   : > { %v2985_v38 = vmax.f32 %v6786_v53, %v9818_v1  ;;  %v2573_v58 = vpop.f32.mrb[121].mxu0  ;;  %v9837_v53 = vmax.f32 %v8539_v15, %v8765_v41  ;;  %v9845_v15 = vld [vmem:[#allocation37_spill] sm:$0xff] }
 0x24b   : > { %v2984_v35 = vmax.f32 %v2573_v58, %v9819_v28  ;;  %v9838_v58 = vld [vmem:[#allocation36_spill] sm:$0xff] }
 0x24c   : > { %v8933_v59 = vmax.f32 %v9820_v27, %v2985_v38  ;;  %v9839_v27 = vld [vmem:[#allocation33_spill] sm:$0xff] }
 0x24d   : > { %v8938_v63 = vmax.f32 %v9823_v12, %v2984_v35  ;;  %v6789_v7 = vpop.f32.mrb[122].mxu0  ;;  %v9841_v12 = vmax.f32 %v8545_v18, %v9840_v5  ;;  %v9851_v18 = vld [vmem:[#allocation48_spill] sm:$0xff] }
 0x24e   : > { %v2987_v16 = vmax.f32 %v6789_v7, %v9824_v62  ;;  %v2583_v42 = vpop.f32.mrb[123].mxu0  ;;  %v9842_v62 = vld [vmem:[#allocation12_spill] sm:$0xff] }
 0x24f   : > { %v2986_v43 = vmax.f32 %v2583_v42, %v9825_v29  ;;  %v9844_v14 = vmax.f32 %v9842_v62, %v9843_v3  ;;  %v9863_v62 = vld [vmem:[#allocation51_spill] sm:$0xff] }
 0x250   : > { %v8945_v48 = vmax.f32 %v9826_v11, %v2987_v16 }
 0x251   : > { %v8950_v0 = vmax.f32 %v9829_v4, %v2986_v43  ;;  %v6792_v8 = vpop.f32.mrb[124].mxu0  ;;  %v9846_v43 = vld [vmem:[#allocation35_spill] sm:$0xff]  ;;  %v9849_v4 = vmax.f32 %v9847_v47, %v9848_v2  ;;  %v9867_v47 = vmax.f32 %v8575_v45, %v8833_v60 }
 0x252   : > { %v2593_v44 = vpop.f32.mrb[125].mxu0 }
 0x253   : > { %v2988_v56 = vmax.f32 %v2593_v44, %v9830_v50  ;;  %v9850_v44 = vld [vmem:[#allocation14_spill] sm:$0xff] }
 0x254   : > { %v9852_v50 = vmax.f32 %v9850_v44, %v9851_v18  ;;  %v9869_v44 = vld [vmem:[#allocation53_spill] sm:$0xff] }
 0x255   : > { %v8956_v61 = vmax.f32 %v9833_v37, %v2988_v56  ;;  %v6795_v30 = vpop.f32.mrb[126].mxu0 }
 0x256   : > { %v2990_v55 = vmax.f32 %v6795_v30, %v9834_v34  ;;  %v2602_v6 = vpop.f32.mrb[127].mxu0  ;;  %v9854_v34 = vld [vmem:[#allocation15_spill] sm:$0xff] }
 0x257   : > { %v2989_v10 = vmax.f32 %v2602_v6, %v9835_v31 }
 0x258   : > { %v8963_v13 = vmax.f32 %v9836_v20, %v2990_v55  ;;  %v9855_v55 = vld [vmem:[#allocation52_spill] sm:$0xff]  ;;  %v9857_v20 = vld [vmem:[#allocation42_spill] sm:$0xff] }
 0x259   : > { %v8968_v1 = vmax.f32 %v9837_v53, %v2989_v10  ;;  %v6798_v38 = vpop.f32.mrb[128].mxu0  ;;  %v9856_v6 = vmax.f32 %v9854_v34, %v9855_v55  ;;  %v9872_v34 = vld [vmem:[#allocation19_spill] sm:$0xff]  ;;  %v9873_v55 = vld [vmem:[#allocation56_spill] sm:$0xff] }
 0x25a   : > { %v2992_v28 = vmax.f32 %v6798_v38, %v9838_v58  ;;  %v2612_v35 = vpop.f32.mrb[129].mxu0  ;;  %v9858_v58 = vld [vmem:[#allocation38_spill] sm:$0xff] }
 0x25b   : > { %v2991_v39 = vmax.f32 %v2612_v35, %v9839_v27  ;;  %v9859_v35 = vld [vmem:[#allocation16_spill] sm:$0xff]  ;;  %v9860_v27 = vld [vmem:[#allocation54_spill] sm:$0xff] }
 0x25c   : > { %v8975_v7 = vmax.f32 %v9841_v12, %v2992_v28  ;;  %v9862_v12 = vld [vmem:[#allocation17_spill] sm:$0xff] }
 0x25d   : > { %v8980_v16 = vmax.f32 %v9844_v14, %v2991_v39  ;;  %v6801_v42 = vpop.f32.mrb[130].mxu0  ;;  %v9861_v39 = vmax.f32 %v9859_v35, %v9860_v27  ;;  %v9864_v3 = vmax.f32 %v9862_v12, %v9863_v62  ;;  %v9876_v12 = vld [vmem:[#allocation20_spill] sm:$0xff] }
 0x25e   : > { %v2994_v41 = vmax.f32 %v6801_v42, %v9845_v15  ;;  %v2622_v29 = vpop.f32.mrb[131].mxu0  ;;  %v9865_v15 = vld [vmem:[#allocation45_spill] sm:$0xff] }
 0x25f   : > { %v2993_v11 = vmax.f32 %v2622_v29, %v9846_v43  ;;  %v9866_v43 = vld [vmem:[#allocation40_spill] sm:$0xff] }
 0x260   : > { %v8987_v8 = vmax.f32 %v9849_v4, %v2994_v41  ;;  %v9868_v4 = vld [vmem:[#allocation18_spill] sm:$0xff] }
 0x261   : > { %v8992_v56 = vmax.f32 %v9852_v50, %v2993_v11  ;;  %v6804_v51 = vpop.f32.mrb[132].mxu0  ;;  %v9870_v18 = vmax.f32 %v9868_v4, %v9869_v44  ;;  %v9881_v44 = vld [vmem:[#allocation3_spill] sm:$0xff] }
 0x262   : > { %v2995_v37 = vmax.f32 %v6804_v51, %v9853_v52  ;;  %v2632_v30 = vpop.f32.mrb[133].mxu0 }
 0x264   : > { %v8998_v31 = vmax.f32 %v9856_v6, %v2995_v37  ;;  %v9871_v37 = vld [vmem:[#allocation43_spill] sm:$0xff]  ;;  %v9874_v6 = vmax.f32 %v9872_v34, %v9873_v55 }
 0x265   : > { %v6807_v10 = vpop.f32.mrb[134].mxu0 }
 0x266   : > { %v2997_v53 = vmax.f32 %v6807_v10, %v9857_v20  ;;  %v2641_v38 = vpop.f32.mrb[135].mxu0 }
 0x267   : > { %v2996_v28 = vmax.f32 %v2641_v38, %v9858_v58 }
 0x268   : > { %v9005_v5 = vmax.f32 %v9861_v39, %v2997_v53  ;;  %v9875_v39 = vld [vmem:[#allocation4_spill] sm:$0xff] }
 0x269   : > { %v9010_v14 = vmax.f32 %v9864_v3, %v2996_v28  ;;  %v6810_v42 = vpop.f32.mrb[136].mxu0  ;;  %v9877_v62 = vmax.f32 %v9875_v39, %v9876_v12  ;;  %v9889_v39 = vld [vmem:[#allocation24_spill] sm:$0xff] }
 0x26a   : > { %v2999_v41 = vmax.f32 %v6810_v42, %v9865_v15  ;;  %v2651_v29 = vpop.f32.mrb[137].mxu0 }
 0x26b   : > { %v2998_v11 = vmax.f32 %v2651_v29, %v9866_v43  ;;  %v9878_v43 = vld [vmem:[#allocation6_spill] sm:$0xff] }
 0x26c   : > { %v9017_v2 = vmax.f32 %v9867_v47, %v2999_v41 }
 0x26d   : > { %v9022_v50 = vmax.f32 %v9870_v18, %v2998_v11  ;;  %v6813_v51 = vpop.f32.mrb[138].mxu0  ;;  %v9879_v11 = vld [vmem:[#allocation21_spill] sm:$0xff]  ;;  %v9882_v18 = vld [vmem:[#allocation22_spill] sm:$0xff] }
 0x26e   : > { %v2661_v52 = vpop.f32.mrb[139].mxu0  ;;  %v9880_v47 = vmax.f32 %v9878_v43, %v9879_v11  ;;  %v9883_v51 = vmax.f32 %v9881_v44, %v9882_v18  ;;  %v9892_v43 = vld [vmem:[#allocation55_spill] sm:$0xff] }
 0x26f   : > { %v3000_v30 = vmax.f32 %v2661_v52, %v9871_v37  ;;  %v3082_v37 = vld [vmem:[%s9705_s3 + $0x10] sm:$0xff]  ;;  %v9893_v44 = vld [vmem:[#allocation7_spill] sm:$0xff] }
 0x270   : > { %v9894_v18 = vld [vmem:[#allocation27_spill] sm:$0xff] }
 0x271   : > { %v9028_v10 = vmax.f32 %v9874_v6, %v3000_v30  ;;  %v6816_v20 = vpop.f32.mrb[140].mxu0  ;;  %v9884_v6 = vld [vmem:[#allocation57_spill] sm:$0xff] }
 0x272   : > { %v2670_v53 = vpop.f32.mrb[141].mxu0 }
 0x275   : > { %v6819_v38 = vpop.f32.mrb[142].mxu0 }
 0x276   : > { %v2678_v45 = vpop.f32.mrb[143].mxu0  ;;  %v9885_v38 = vld [vmem:[#allocation8_spill] sm:$0xff] }
 0x277   : > { %v9886_v45 = vld [vmem:[#allocation23_spill] sm:$0xff] }
 0x279   : > { %v6822_v60 = vpop.f32.mrb[144].mxu0 }
 0x27a   : > { %v2686_v58 = vpop.f32.mrb[145].mxu0  ;;  %v9887_v60 = vmax.f32 %v9885_v38, %v9886_v45  ;;  %v6013_v38 = vld [vmem:[%s9705_s3 + $0x80] sm:$0xff]  ;;  %v6014_v45 = vld [vmem:[%s9705_s3 + $0x88] sm:$0xff] }
 0x27d   : > { %v6825_v28 = vpop.f32.mrb[146].mxu0 }
 0x27e   : > { %v2965_v35 = vmax.f32 %v8840_v23, %v6825_v28  ;;  %v2694_v27 = vpop.f32.mrb[147].mxu0 }
 0x27f   : > { %v9888_v27 = vld [vmem:[#allocation5_spill] sm:$0xff] }
 0x280   : > { %v3001_v3 = vmax.f32 %v9877_v62, %v2965_v35 }
 0x281   : > { %v6828_v42 = vpop.f32.mrb[148].mxu0 }
 0x282   : > { %v2967_v15 = vmax.f32 %v8844_v40, %v6828_v42  ;;  %v2703_v41 = vpop.f32.mrb[149].mxu0  ;;  %v3083_v40 = vld [vmem:[%s9705_s3 + $0x18] sm:$0xff]  ;;  %v5997_v42 = vld [vmem:[%s9705_s3 + $0x40] sm:$0xff] }
 0x283   : > { %v2966_v29 = vmax.f32 %v8838_v24, %v2703_v41  ;;  %v9051_v24 = vld [vmem:[%s9704_s2] ss:$0 sm:$0xff]  ;;  %v7296_v28 = vpack.c.bf16 %v3083_v40, %v3082_v37  ;;  %v6000_v37 = vld [vmem:[%s9705_s3 + $0x58] sm:$0xff] }
 0x284   : > { %v3003_v4 = vmax.f32 %v9880_v47, %v2967_v15  ;;  %v9062_v35 = vadd.f32 %v9051_v24, %v8866_v19  ;;  %v5998_v15 = vld [vmem:[%s9705_s3 + $0x48] sm:$0xff]  ;;  %v9891_v19 = vld [vmem:[#allocation58_spill] sm:$0xff]  ;;  %v9081_v11 = vadd.f32 %v9051_v24, %v8861_v33  ;;  %v6005_v40 = vld [vmem:[%s9705_s3 + $0x60] sm:$0xff] }
 0x285   : > { %v3002_v52 = vmax.f32 %v9883_v51, %v2966_v29  ;;  %v6831_v23 = vpop.f32.mrb[150].mxu0  ;;  %v7300_v47 = vpack.c.bf16 %v5998_v15, %v5997_v42  ;;  %v9895_v51 = vmax.f32 %v9893_v44, %v9894_v18  ;;  %v6023_v42 = vld [vmem:[%s9705_s3 + $0xb0] sm:$0xff]  ;;  %v6024_v15 = vld [vmem:[%s9705_s3 + $0xb8] sm:$0xff] }
 0x286   : > { %v2969_v30 = vmax.f32 %v8848_v57, %v6831_v23  ;;  %v2713_v34 = vpop.f32.mrb[151].mxu0  ;;  %v3046_v53 = vadd.f32 %v9051_v24, %v3003_v4  ;;  %v9890_v57 = vmax.f32 %v9888_v27, %v9889_v39  ;;  %v3044_v4 = vadd.f32 %v9051_v24, %v3001_v3  ;;  %v5999_v23 = vld [vmem:[%s9705_s3 + $0x50] sm:$0xff]  ;;  %v6016_v27 = vld [vmem:[%s9705_s3 + $0x98] sm:$0xff] }
 0x287   : > { %v3045_v55 = vadd.f32 %v9051_v24, %v3002_v52  ;;  %v2968_v20 = vmax.f32 %v9884_v6, %v2713_v34  ;;  %v7304_v33 = vpack.c.bf16 %v6000_v37, %v5999_v23  ;;  %v3050_v3 = vadd.f32 %v9051_v24, %v8854_v32  ;;  %v6007_v6 = vld [vmem:[%s9705_s3 + $0x70] sm:$0xff]  ;;  %v6008_v32 = vld [vmem:[%s9705_s3 + $0x78] sm:$0xff] }
 0x288   : > { %v3005_v58 = vmax.f32 %v9887_v60, %v2969_v30  ;;  %v6006_v30 = vld [vmem:[%s9705_s3 + $0x68] sm:$0xff]  ;;  %v7316_v60 = vpack.c.bf16 %v6014_v45, %v6013_v38  ;;  %v6032_v44 = vld [vmem:[%s9705_s3 + $0xd8] sm:$0xff]  ;;  %v9200_v23 = vadd.f32 %v9051_v24, %v8891_v17  ;;  %v6039_v37 = vld [vmem:[%s9705_s3 + $0xf0] sm:$0xff] }
 0x289   : > { %v3004_v12 = vmax.f32 %v9890_v57, %v2968_v20  ;;  %v6834_v62 = vpop.f32.mrb[152].mxu0  ;;  %6906 = vmatprep.mubr.msk.f32.mxu1 %vm3089_vm4, %v3045_v55  ;;  %v7308_v34 = vpack.c.bf16 %v6006_v30, %v6005_v40  ;;  %v7312_v20 = vpack.c.bf16 %v6008_v32, %v6007_v6  ;;  %v6021_v57 = vld [vmem:[%s9705_s3 + $0xa0] sm:$0xff]  ;;  %v6046_v40 = vld [vmem:[%s9705_s3 + $0x108] sm:$0xff]  ;;  %v6048_v6 = vld [vmem:[%s9705_s3 + $0x118] sm:$0xff] }
 0x28a   : > { %v2723_v41 = vpop.f32.mrb[153].mxu0  ;;  %6907 = vmatmul.mubr.msk.f32.vlgmr.msra.gmra.mrb[42].mxu1 %vm3089_vm4, %v3046_v53  ;;  %v3048_v39 = vadd.f32 %v9051_v24, %v3005_v58  ;;  %v9150_v62 = vadd.f32 %v9051_v24, %v8873_v49  ;;  %v7328_v49 = vpack.c.bf16 %v6024_v15, %v6023_v42  ;;  %v6053_v32 = vld [vmem:[%s9705_s3 + $0x120] sm:$0xff]  ;;  %v6055_v38 = vld [vmem:[%s9705_s3 + $0x130] sm:$0xff]  ;;  %v6056_v45 = vld [vmem:[%s9705_s3 + $0x138] sm:$0xff] }
 0x28b   : > { %v2970_v29 = vmax.f32 %v9891_v19, %v2723_v41  ;;  %7295 = vmatpush3.bf16.msra.mxu1 %v9892_v43  ;;  %6909 = vmatprep.mubr.msk.f32.mxu1 %vm3089_vm4, %v9062_v35  ;;  %v6029_v19 = vld [vmem:[%s9705_s3 + $0xc0] sm:$0xff]  ;;  %v9173_v43 = vadd.f32 %v9051_v24, %v8884_v26  ;;  %v9186_v26 = vadd.f32 %v9051_v24, %v8896_v9  ;;  %v6070_v15 = vld [vmem:[%s9705_s3 + $0x168] sm:$0xff] }
 0x28c   : > { %7297 = vmatprep.subr.bf16.mxu1 %v7296_v28  ;;  %v6069_v42 = vld [vmem:[%s9705_s3 + $0x160] sm:$0xff] }
 0x28d   : > { %v3006_v52 = vmax.f32 %v9895_v51, %v2970_v29  ;;  %v6030_v29 = vld [vmem:[%s9705_s3 + $0xc8] sm:$0xff]  ;;  %v6037_v51 = vld [vmem:[%s9705_s3 + $0xe0] sm:$0xff] }
 0x28e   : > { %6910 = vmatmul.mubr.msk.f32.gmra.mrb[44].mxu1 %vm3089_vm4, %v9081_v11 }
 0x28f   : > { %7299 = vmatpush3.bf16.msra.mxu1 %v7296_v28  ;;  %6920 = vmatprep.mubr.msk.f32.mxu1 %vm3089_vm4, %v3044_v4  ;;  %v6015_v28 = vld [vmem:[%s9705_s3 + $0x90] sm:$0xff]  ;;  %v3049_v41 = vadd.f32 %v9051_v24, %v3006_v52  ;;  %v6038_v52 = vld [vmem:[%s9705_s3 + $0xe8] sm:$0xff] }
 0x290   : > { %7301 = vmatprep.subr.bf16.mxu1 %v7300_v47  ;;  %v6031_v4 = vld [vmem:[%s9705_s3 + $0xd0] sm:$0xff]  ;;  %v7340_v9 = vpack.c.bf16 %v6038_v52, %v6037_v51  ;;  %v6078_v51 = vld [vmem:[%s9705_s3 + $0x188] sm:$0xff] }
 0x291   : > { %v7336_v18 = vpack.c.bf16 %v6032_v44, %v6031_v4  ;;  %v9310_v44 = vadd.f32 %v9051_v24, %v8926_v46  ;;  %v9324_v46 = vadd.f32 %v9051_v24, %v8938_v63 }
 0x292   : > { %6921 = vmatmul.mubr.msk.f32.vlgmr.msra.gmra.mrb[42].mxu1 %vm3089_vm4, %v3045_v55  ;;  %v3047_v55 = vadd.f32 %v9051_v24, %v3004_v12  ;;  %v6022_v12 = vld [vmem:[%s9705_s3 + $0xa8] sm:$0xff] }
 0x293   : > { %7303 = vmatpush3.bf16.msra.mxu1 %v7300_v47  ;;  %6923 = vmatprep.mubr.msk.f32.mxu1 %vm3089_vm4, %v3050_v3  ;;  %v7324_v58 = vpack.c.bf16 %v6022_v12, %v6021_v57  ;;  %v7332_v47 = vpack.c.bf16 %v6030_v29, %v6029_v19  ;;  %v6064_v57 = vld [vmem:[%s9705_s3 + $0x158] sm:$0xff]  ;;  %v6071_v29 = vld [vmem:[%s9705_s3 + $0x170] sm:$0xff] }
 0x294   : > { %7305 = vmatprep.subr.bf16.mxu1 %v7304_v33 }
 0x296   : > { %6924 = vmatmul.mubr.msk.f32.gmra.mrb[44].mxu1 %vm3089_vm4, %v9062_v35 }
 0x297   : > { %7307 = vmatpush3.bf16.msra.mxu1 %v7304_v33  ;;  %6934 = vmatprep.mubr.msk.f32.mxu1 %vm3089_vm4, %v3046_v53  ;;  %v9127_v53 = vadd.f32 %v9051_v24, %v8878_v25  ;;  %v7320_v25 = vpack.c.bf16 %v6016_v27, %v6015_v28  ;;  %v6040_v33 = vld [vmem:[%s9705_s3 + $0xf8] sm:$0xff]  ;;  %v6062_v28 = vld [vmem:[%s9705_s3 + $0x148] sm:$0xff] }
 0x298   : > { %7309 = vmatprep.subr.bf16.mxu1 %v7308_v34  ;;  %v7344_v17 = vpack.c.bf16 %v6040_v33, %v6039_v37  ;;  %v6080_v37 = vld [vmem:[%s9705_s3 + $0x198] sm:$0xff]  ;;  %v6085_v33 = vld [vmem:[%s9705_s3 + $0x1a0] sm:$0xff] }
 0x29a   : > { %6935 = vmatmul.mubr.msk.f32.vlgmr.msra.gmra.mrb[42].mxu1 %vm3089_vm4, %v3047_v55 }
 0x29b   : > { %7311 = vmatpush3.bf16.msra.mxu1 %v7308_v34  ;;  %6937 = vmatprep.mubr.msk.f32.mxu1 %vm3089_vm4, %v9081_v11  ;;  %v6047_v34 = vld [vmem:[%s9705_s3 + $0x110] sm:$0xff] }
 0x29c   : > { %7313 = vmatprep.subr.bf16.mxu1 %v7312_v20 }
 0x29e   : > { %6938 = vmatmul.mubr.msk.f32.gmra.mrb[44].mxu1 %vm3089_vm4, %v9127_v53 }
 0x29f   : > { %7315 = vmatpush3.bf16.msra.mxu1 %v7312_v20  ;;  %6948 = vmatprep.mubr.msk.f32.mxu1 %vm3089_vm4, %v3047_v55  ;;  %v6054_v55 = vld [vmem:[%s9705_s3 + $0x128] sm:$0xff] }
 0x2a0   : > { %7317 = vmatprep.subr.bf16.mxu1 %v7316_v60  ;;  %v7356_v20 = vpack.c.bf16 %v6054_v55, %v6053_v32  ;;  %v6095_v32 = vld [vmem:[%s9705_s3 + $0x1d0] sm:$0xff]  ;;  %v6096_v55 = vld [vmem:[%s9705_s3 + $0x1d8] sm:$0xff] }
 0x2a2   : > { %6949 = vmatmul.mubr.msk.f32.vlgmr.msra.gmra.mrb[42].mxu1 %vm3089_vm4, %v3048_v39 }
 0x2a3   : > { %7319 = vmatpush3.bf16.msra.mxu1 %v7316_v60  ;;  %6951 = vmatprep.mubr.msk.f32.mxu1 %vm3089_vm4, %v9127_v53  ;;  %v6061_v60 = vld [vmem:[%s9705_s3 + $0x140] sm:$0xff] }
 0x2a4   : > { %7321 = vmatprep.subr.bf16.mxu1 %v7320_v25  ;;  %v7364_v27 = vpack.c.bf16 %v6062_v28, %v6061_v60  ;;  %v6104_v60 = vld [vmem:[%s9705_s3 + $0x1f8] sm:$0xff]  ;;  %v6109_v28 = vld [vmem:[%s9705_s3 + $0x200] sm:$0xff] }
 0x2a6   : > { %6952 = vmatmul.mubr.msk.f32.gmra.mrb[44].mxu1 %vm3089_vm4, %v9150_v62 }
 0x2a7   : > { %7323 = vmatpush3.bf16.msra.mxu1 %v7320_v25  ;;  %6962 = vmatprep.mubr.msk.f32.mxu1 %vm3089_vm4, %v3048_v39  ;;  %v6063_v25 = vld [vmem:[%s9705_s3 + $0x150] sm:$0xff] }
 0x2a8   : > { %7325 = vmatprep.subr.bf16.mxu1 %v7324_v58 }
 0x2aa   : > { %6963 = vmatmul.mubr.msk.f32.vlgmr.msra.gmra.mrb[42].mxu1 %vm3089_vm4, %v3049_v41 }
 0x2ab   : > { %7327 = vmatpush3.bf16.msra.mxu1 %v7324_v58  ;;  %6965 = vmatprep.mubr.msk.f32.mxu1 %vm3089_vm4, %v9150_v62 }
 0x2ac   : > { %7329 = vmatprep.subr.bf16.mxu1 %v7328_v49 }
 0x2ae   : > { %6966 = vmatmul.mubr.msk.f32.gmra.mrb[44].mxu1 %vm3089_vm4, %v9173_v43 }
 0x2af   : > { %7331 = vmatpush3.bf16.msra.mxu1 %v7328_v49  ;;  %6976 = vmatprep.mubr.msk.f32.mxu1 %vm3089_vm4, %v3050_v3  ;;  %v6045_v3 = vld [vmem:[%s9705_s3 + $0x100] sm:$0xff]  ;;  %v7372_v49 = vpack.c.bf16 %v6070_v15, %v6069_v42  ;;  %v9448_v42 = vadd.f32 %v9051_v24, %v8963_v13  ;;  %v6119_v15 = vld [vmem:[%s9705_s3 + $0x230] sm:$0xff] }
 0x2b0   : > { %7333 = vmatprep.subr.bf16.mxu1 %v7332_v47  ;;  %v7348_v30 = vpack.c.bf16 %v6046_v40, %v6045_v3  ;;  %v6087_v40 = vld [vmem:[%s9705_s3 + $0x1b0] sm:$0xff] }
 0x2b2   : > { %6977 = vmatmul.mubr.msk.f32.vlgmr.msra.gmra.mrb[42].mxu1 %vm3089_vm4, %v9062_v35 }
 0x2b3   : > { %7335 = vmatpush3.bf16.msra.mxu1 %v7332_v47  ;;  %6979 = vmatprep.mubr.msk.f32.mxu1 %vm3089_vm4, %v9186_v26  ;;  %v6072_v47 = vld [vmem:[%s9705_s3 + $0x178] sm:$0xff] }
 0x2b4   : > { %7337 = vmatprep.subr.bf16.mxu1 %v7336_v18 }
 0x2b6   : > { %6980 = vmatmul.mubr.msk.f32.gmra.mrb[44].mxu1 %vm3089_vm4, %v9200_v23 }
 0x2b7   : > { %7339 = vmatpush3.bf16.msra.mxu1 %v7336_v18  ;;  %6990 = vmatprep.mubr.msk.f32.mxu1 %vm3089_vm4, %v9062_v35  ;;  %v9224_v35 = vadd.f32 %v9051_v24, %v8908_v22  ;;  %v7352_v22 = vpack.c.bf16 %v6048_v6, %v6047_v34  ;;  %v6077_v18 = vld [vmem:[%s9705_s3 + $0x180] sm:$0xff]  ;;  %v6094_v6 = vld [vmem:[%s9705_s3 + $0x1c8] sm:$0xff] }
 0x2b8   : > { %7341 = vmatprep.subr.bf16.mxu1 %v7340_v9  ;;  %v6888_v39 = vpop.f32.mrb[34].mxu1  ;;  %v6093_v34 = vld [vmem:[%s9705_s3 + $0x1c0] sm:$0xff] }
 0x2b9   : > { %v2898_v12 = vpop.f32.mrb[35].mxu1 }
 0x2ba   : > { %6991 = vmatmul.mubr.msk.f32.vlgmr.msra.gmra.mrb[42].mxu1 %vm3089_vm4, %v9081_v11  ;;  %v9434_v12 = vadd.f32 %v9051_v24, %v8968_v1 }
 0x2bb   : > { %7343 = vmatpush3.bf16.msra.mxu1 %v7340_v9  ;;  %6993 = vmatprep.mubr.msk.f32.mxu1 %vm3089_vm4, %v9200_v23  ;;  %v6079_v9 = vld [vmem:[%s9705_s3 + $0x190] sm:$0xff] }
 0x2bc   : > { %7345 = vmatprep.subr.bf16.mxu1 %v7344_v17  ;;  %v6891_v58 = vpop.f32.mrb[36].mxu1  ;;  %v7384_v63 = vpack.c.bf16 %v6080_v37, %v6079_v9  ;;  %v9520_v9 = vadd.f32 %v9051_v24, %v8992_v56 }
 0x2bd   : > { %v2906_v41 = vpop.f32.mrb[37].mxu1  ;;  %v6118_v58 = vld [vmem:[%s9705_s3 + $0x228] sm:$0xff] }
 0x2be   : > { %6994 = vmatmul.mubr.msk.f32.gmra.mrb[44].mxu1 %vm3089_vm4, %v9224_v35  ;;  %v6120_v41 = vld [vmem:[%s9705_s3 + $0x238] sm:$0xff] }
 0x2bf   : > { %7347 = vmatpush3.bf16.msra.mxu1 %v7344_v17  ;;  %7004 = vmatprep.mubr.msk.f32.mxu1 %vm3089_vm4, %v9081_v11  ;;  %v9248_v11 = vadd.f32 %v9051_v24, %v8903_v21  ;;  %v7360_v21 = vpack.c.bf16 %v6056_v45, %v6055_v38  ;;  %v6086_v17 = vld [vmem:[%s9705_s3 + $0x1a8] sm:$0xff]  ;;  %v7424_v13 = vpack.c.bf16 %v6120_v41, %v6119_v15  ;;  %v5550_v15 = vld [vmem:[%s9707_s5 + $0x20] sm:$0xff]  ;;  %v5552_v41 = vld [vmem:[%s9707_s5 + $0x30] sm:$0xff] }
 0x2c0   : > { %7349 = vmatprep.subr.bf16.mxu1 %v7348_v30  ;;  %v7388_v3 = vpack.c.bf16 %v6086_v17, %v6085_v33  ;;  %v6102_v38 = vld [vmem:[%s9705_s3 + $0x1e8] sm:$0xff]  ;;  %v6144_v33 = vld [vmem:[%s9705_s3 + $0x298] sm:$0xff]  ;;  %v6149_v17 = vld [vmem:[%s9705_s3 + $0x2a0] sm:$0xff] }
 0x2c2   : > { %7005 = vmatmul.mubr.msk.f32.vlgmr.msra.gmra.mrb[42].mxu1 %vm3089_vm4, %v9127_v53 }
 0x2c3   : > { %7351 = vmatpush3.bf16.msra.mxu1 %v7348_v30  ;;  %7007 = vmatprep.mubr.msk.f32.mxu1 %vm3089_vm4, %v9224_v35  ;;  %v6088_v30 = vld [vmem:[%s9705_s3 + $0x1b8] sm:$0xff] }
 0x2c4   : > { %7353 = vmatprep.subr.bf16.mxu1 %v7352_v22 }
 0x2c6   : > { %7008 = vmatmul.mubr.msk.f32.gmra.mrb[44].mxu1 %vm3089_vm4, %v9248_v11 }
 0x2c7   : > { %7355 = vmatpush3.bf16.msra.mxu1 %v7352_v22  ;;  %7018 = vmatprep.mubr.msk.f32.mxu1 %vm3089_vm4, %v9127_v53  ;;  %v9272_v53 = vadd.f32 %v9051_v24, %v8920_v54  ;;  %v7368_v54 = vpack.c.bf16 %v6064_v57, %v6063_v25  ;;  %v7396_v22 = vpack.c.bf16 %v6094_v6, %v6093_v34  ;;  %v6111_v25 = vld [vmem:[%s9705_s3 + $0x210] sm:$0xff]  ;;  %v6112_v57 = vld [vmem:[%s9705_s3 + $0x218] sm:$0xff]  ;;  %v6157_v6 = vld [vmem:[%s9705_s3 + $0x2c0] sm:$0xff] }
 0x2c8   : > { %7357 = vmatprep.subr.bf16.mxu1 %v7356_v20  ;;  %v3074_v34 = vadd.f32 %v9051_v24, %v8998_v31  ;;  %v6159_v31 = vld [vmem:[%s9705_s3 + $0x2d0] sm:$0xff] }
 0x2ca   : > { %7019 = vmatmul.mubr.msk.f32.vlgmr.msra.gmra.mrb[42].mxu1 %vm3089_vm4, %v9150_v62 }
 0x2cb   : > { %7359 = vmatpush3.bf16.msra.mxu1 %v7356_v20  ;;  %7021 = vmatprep.mubr.msk.f32.mxu1 %vm3089_vm4, %v9248_v11  ;;  %v6101_v20 = vld [vmem:[%s9705_s3 + $0x1e0] sm:$0xff] }
 0x2cc   : > { %7361 = vmatprep.subr.bf16.mxu1 %v7360_v21  ;;  %v7404_v45 = vpack.c.bf16 %v6102_v38, %v6101_v20  ;;  %v6166_v20 = vld [vmem:[%s9705_s3 + $0x2e8] sm:$0xff]  ;;  %v3076_v38 = vadd.f32 %v9051_v24, %v9005_v5  ;;  %v6173_v5 = vld [vmem:[%s9705_s3 + $0x300] sm:$0xff] }
 0x2ce   : > { %7022 = vmatmul.mubr.msk.f32.gmra.mrb[44].mxu1 %vm3089_vm4, %v9272_v53  ;;  %v6894_v19 = vpop.f32.mrb[38].mxu1 }
 0x2cf   : > { %7363 = vmatpush3.bf16.msra.mxu1 %v7360_v21  ;;  %7032 = vmatprep.mubr.msk.f32.mxu1 %vm3089_vm4, %v9150_v62  ;;  %v9296_v62 = vadd.f32 %v9051_v24, %v8915_v36  ;;  %v7376_v36 = vpack.c.bf16 %v6072_v47, %v6071_v29  ;;  %v6103_v21 = vld [vmem:[%s9705_s3 + $0x1f0] sm:$0xff]  ;;  %v9472_v19 = vadd.f32 %v9051_v24, %v8980_v16 }
 0x2d0   : > { %7365 = vmatprep.subr.bf16.mxu1 %v7364_v27  ;;  %v6127_v47 = vld [vmem:[%s9705_s3 + $0x250] sm:$0xff] }
 0x2d2   : > { %7033 = vmatmul.mubr.msk.f32.vlgmr.msra.gmra.mrb[42].mxu1 %vm3089_vm4, %v9173_v43  ;;  %v2914_v43 = vpop.f32.mrb[39].mxu1 }
 0x2d3   : > { %7367 = vmatpush3.bf16.msra.mxu1 %v7364_v27  ;;  %7035 = vmatprep.mubr.msk.f32.mxu1 %vm3089_vm4, %v9272_v53  ;;  %v6897_v4 = vpop.f32.mrb[40].mxu1  ;;  %v6110_v27 = vld [vmem:[%s9705_s3 + $0x208] sm:$0xff]  ;;  %v6128_v43 = vld [vmem:[%s9705_s3 + $0x258] sm:$0xff] }
 0x2d4   : > { %7369 = vmatprep.subr.bf16.mxu1 %v7368_v54  ;;  %v2922_v52 = vpop.f32.mrb[41].mxu1  ;;  %v7412_v39 = vpack.c.bf16 %v6110_v27, %v6109_v28  ;;  %v7432_v16 = vpack.c.bf16 %v6128_v43, %v6127_v47  ;;  %v6134_v4 = vld [vmem:[%s9705_s3 + $0x268] sm:$0xff]  ;;  %v3077_v28 = vadd.f32 %v9051_v24, %v9022_v50  ;;  %v3078_v50 = vadd.f32 %v9051_v24, %v9017_v2 }
 0x2d5   : > { %v6136_v52 = vld [vmem:[%s9705_s3 + $0x278] sm:$0xff]  ;;  %v3079_v2 = vadd.f32 %v9051_v24, %v9028_v10  ;;  %v5551_v10 = vld [vmem:[%s9707_s5 + $0x28] sm:$0xff] }
 0x2d6   : > { %7036 = vmatmul.mubr.msk.f32.gmra.mrb[44].mxu1 %vm3089_vm4, %v9296_v62 }
 0x2d7   : > { %7371 = vmatpush3.bf16.msra.mxu1 %v7368_v54  ;;  %7046 = vmatprep.mubr.msk.f32.mxu1 %vm3089_vm4, %v9186_v26  ;;  %v7380_v26 = vpack.c.bf16 %v6078_v51, %v6077_v18  ;;  %v6117_v54 = vld [vmem:[%s9705_s3 + $0x220] sm:$0xff]  ;;  %v6135_v51 = vld [vmem:[%s9705_s3 + $0x270] sm:$0xff] }
 0x2d8   : > { %7373 = vmatprep.subr.bf16.mxu1 %v7372_v49  ;;  %v7420_v1 = vpack.c.bf16 %v6118_v58, %v6117_v54  ;;  %v7655_v54 = vmov 0.0|0.0   ;;  %v5548_v58 = vld [vmem:[%s9707_s5 + $0x10] sm:$0xff] }
 0x2da   : > { %7047 = vmatmul.mubr.msk.f32.vlgmr.msra.gmra.mrb[42].mxu1 %vm3089_vm4, %v9200_v23 }
 0x2db   : > { %7375 = vmatpush3.bf16.msra.mxu1 %v7372_v49  ;;  %7049 = vmatprep.mubr.msk.f32.mxu1 %vm3089_vm4, %v9310_v44  ;;  %v6126_v49 = vld [vmem:[%s9705_s3 + $0x248] sm:$0xff] }
 0x2dc   : > { %7377 = vmatprep.subr.bf16.mxu1 %v7376_v36 }
 0x2de   : > { %7050 = vmatmul.mubr.msk.f32.gmra.mrb[44].mxu1 %vm3089_vm4, %v9324_v46 }
 0x2df   : > { %7379 = vmatpush3.bf16.msra.mxu1 %v7376_v36  ;;  %7060 = vmatprep.mubr.msk.f32.mxu1 %vm3089_vm4, %v9200_v23  ;;  %v9348_v23 = vadd.f32 %v9051_v24, %v8933_v59  ;;  %v7392_v59 = vpack.c.bf16 %v6088_v30, %v6087_v40  ;;  %v6133_v36 = vld [vmem:[%s9705_s3 + $0x260] sm:$0xff]  ;;  %v6151_v30 = vld [vmem:[%s9705_s3 + $0x2b0] sm:$0xff] }
 0x2e0   : > { %7381 = vmatprep.subr.bf16.mxu1 %v7380_v26  ;;  %v7436_v18 = vpack.c.bf16 %v6134_v4, %v6133_v36 }
 0x2e2   : > { %7061 = vmatmul.mubr.msk.f32.vlgmr.msra.gmra.mrb[42].mxu1 %vm3089_vm4, %v9224_v35 }
 0x2e3   : > { %7383 = vmatpush3.bf16.msra.mxu1 %v7380_v26  ;;  %7063 = vmatprep.mubr.msk.f32.mxu1 %vm3089_vm4, %v9324_v46  ;;  %v6142_v26 = vld [vmem:[%s9705_s3 + $0x288] sm:$0xff] }
 0x2e4   : > { %7385 = vmatprep.subr.bf16.mxu1 %v7384_v63 }
 0x2e6   : > { %7064 = vmatmul.mubr.msk.f32.gmra.mrb[44].mxu1 %vm3089_vm4, %v9348_v23 }
 0x2e7   : > { %7387 = vmatpush3.bf16.msra.mxu1 %v7384_v63  ;;  %7074 = vmatprep.mubr.msk.f32.mxu1 %vm3089_vm4, %v9224_v35  ;;  %v9372_v35 = vadd.f32 %v9051_v24, %v8950_v0  ;;  %v7400_v0 = vpack.c.bf16 %v6096_v55, %v6095_v32  ;;  %v6143_v63 = vld [vmem:[%s9705_s3 + $0x290] sm:$0xff]  ;;  %v6160_v55 = vld [vmem:[%s9705_s3 + $0x2d8] sm:$0xff] }
 0x2e8   : > { %7389 = vmatprep.subr.bf16.mxu1 %v7388_v3  ;;  %v7448_v56 = vpack.c.bf16 %v6144_v33, %v6143_v63  ;;  %v5637_v63 = vld [vmem:[%s9709_s7 + $0x10] sm:$0xff]  ;;  %v5638_v33 = vld [vmem:[%s9709_s7 + $0x18] sm:$0xff] }
 0x2ea   : > { %7075 = vmatmul.mubr.msk.f32.vlgmr.msra.gmra.mrb[42].mxu1 %vm3089_vm4, %v9248_v11 }
 0x2eb   : > { %7391 = vmatpush3.bf16.msra.mxu1 %v7388_v3  ;;  %7077 = vmatprep.mubr.msk.f32.mxu1 %vm3089_vm4, %v9348_v23  ;;  %v9544_v3 = vadd.f32 %v9051_v24, %v8987_v8 }
 0x2ec   : > { %7393 = vmatprep.subr.bf16.mxu1 %v7392_v59 }
 0x2ee   : > { %7078 = vmatmul.mubr.msk.f32.gmra.mrb[44].mxu1 %vm3089_vm4, %v9372_v35 }
 0x2ef   : > { %7395 = vmatpush3.bf16.msra.mxu1 %v7392_v59  ;;  %7088 = vmatprep.mubr.msk.f32.mxu1 %vm3089_vm4, %v9248_v11  ;;  %v9396_v11 = vadd.f32 %v9051_v24, %v8945_v48  ;;  %v7408_v48 = vpack.c.bf16 %v6104_v60, %v6103_v21  ;;  %v6152_v59 = vld [vmem:[%s9705_s3 + $0x2b8] sm:$0xff] }
 0x2f0   : > { %7397 = vmatprep.subr.bf16.mxu1 %v7396_v22  ;;  %v7456_v8 = vpack.c.bf16 %v6152_v59, %v6151_v30  ;;  %v6168_v21 = vld [vmem:[%s9705_s3 + $0x2f8] sm:$0xff]  ;;  %v6184_v59 = vld [vmem:[%s9710_s8] ss:$0 sm:$0xff] }
 0x2f2   : > { %7089 = vmatmul.mubr.msk.f32.vlgmr.msra.gmra.mrb[42].mxu1 %vm3089_vm4, %v9272_v53 }
 0x2f3   : > { %7399 = vmatpush3.bf16.msra.mxu1 %v7396_v22  ;;  %7091 = vmatprep.mubr.msk.f32.mxu1 %vm3089_vm4, %v9372_v35  ;;  %v3075_v22 = vadd.f32 %v9051_v24, %v9010_v14  ;;  %v6165_v14 = vld [vmem:[%s9705_s3 + $0x2e0] sm:$0xff] }
 0x2f4   : > { %7401 = vmatprep.subr.bf16.mxu1 %v7400_v0 }
 0x2f6   : > { %7092 = vmatmul.mubr.msk.f32.gmra.mrb[44].mxu1 %vm3089_vm4, %v9396_v11 }
 0x2f7   : > { %7403 = vmatpush3.bf16.msra.mxu1 %v7400_v0  ;;  %7102 = vmatprep.mubr.msk.f32.mxu1 %vm3089_vm4, %v9272_v53  ;;  %v9420_v53 = vadd.f32 %v9051_v24, %v8956_v61  ;;  %v7416_v61 = vpack.c.bf16 %v6112_v57, %v6111_v25  ;;  %v7464_v0 = vpack.c.bf16 %v6160_v55, %v6159_v31  ;;  %v5546_v57 = vld [vmem:[%s9707_s5] sm:$0xff] }
 0x2f8   : > { %7405 = vmatprep.subr.bf16.mxu1 %v7404_v45 }
 0x2fa   : > { %7103 = vmatmul.mubr.msk.f32.vlgmr.msra.gmra.mrb[42].mxu1 %vm3089_vm4, %v9296_v62  ;;  %v6125_v62 = vld [vmem:[%s9705_s3 + $0x240] sm:$0xff] }
 0x2fb   : > { %7407 = vmatpush3.bf16.msra.mxu1 %v7404_v45  ;;  %7105 = vmatprep.mubr.msk.f32.mxu1 %vm3089_vm4, %v9396_v11  ;;  %v7428_v29 = vpack.c.bf16 %v6126_v49, %v6125_v62  ;;  %v6167_v45 = vld [vmem:[%s9705_s3 + $0x2f0] sm:$0xff]  ;;  %v7657_v49 = vmov 0.0  }
 0x2fc   : > { %7409 = vmatprep.subr.bf16.mxu1 %v7408_v48  ;;  %v7472_v60 = vpack.c.bf16 %v6168_v21, %v6167_v45 }
 0x2fe   : > { %7106 = vmatmul.mubr.msk.f32.gmra.mrb[44].mxu1 %vm3089_vm4, %v9420_v53 }
 0x2ff   : > { %7411 = vmatpush3.bf16.msra.mxu1 %v7408_v48  ;;  %7116 = vmatprep.mubr.msk.f32.mxu1 %vm3089_vm4, %v9310_v44  ;;  %v9496_v44 = vadd.f32 %v9051_v24, %v8975_v7  ;;  %v7440_v7 = vpack.c.bf16 %v6136_v52, %v6135_v51  ;;  %v6174_v48 = vld [vmem:[%s9705_s3 + $0x308] sm:$0xff]  ;;  %v7491_v24 = vpack.c.bf16 %v5551_v10, %v5550_v15  ;;  %v5635_v52 = vld [vmem:[%s9709_s7] sm:$0xff] }
 0x300   : > { %7413 = vmatprep.subr.bf16.mxu1 %v7412_v39  ;;  %v7476_v27 = vpack.c.bf16 %v6174_v48, %v6173_v5 }
 0x302   : > { %7117 = vmatmul.mubr.msk.f32.vlgmr.msra.gmra.mrb[42].mxu1 %vm3089_vm4, %v9324_v46 }
 0x303   : > { %7415 = vmatpush3.bf16.msra.mxu1 %v7412_v39  ;;  %7119 = vmatprep.mubr.msk.f32.mxu1 %vm3089_vm4, %v9434_v12  ;;  %v6176_v39 = vld [vmem:[%s9705_s3 + $0x318] sm:$0xff] }
 0x304   : > { %7417 = vmatprep.subr.bf16.mxu1 %v7416_v61 }
 0x306   : > { %7120 = vmatmul.mubr.msk.f32.gmra.mrb[44].mxu1 %vm3089_vm4, %v9448_v42 }
 0x307   : > { %7419 = vmatpush3.bf16.msra.mxu1 %v7416_v61  ;;  %7130 = vmatprep.mubr.msk.f32.mxu1 %vm3089_vm4, %v9324_v46  ;;  %v6141_v46 = vld [vmem:[%s9705_s3 + $0x280] sm:$0xff]  ;;  %v5547_v61 = vld [vmem:[%s9707_s5 + $0x8] sm:$0xff] }
 0x308   : > { %7421 = vmatprep.subr.bf16.mxu1 %v7420_v1  ;;  %v7444_v37 = vpack.c.bf16 %v6142_v26, %v6141_v46  ;;  %v6181_v46 = vld [vmem:[%s9706_s4] ss:$0 sm:$0xff] }
 0x30a   : > { %7131 = vmatmul.mubr.msk.f32.vlgmr.msra.gmra.mrb[42].mxu1 %vm3089_vm4, %v9348_v23 }
 0x30b   : > { %7423 = vmatpush3.bf16.msra.mxu1 %v7420_v1  ;;  %7133 = vmatprep.mubr.msk.f32.mxu1 %vm3089_vm4, %v9448_v42 }
 0x30c   : > { %7425 = vmatprep.subr.bf16.mxu1 %v7424_v13 }
 0x30e   : > { %7134 = vmatmul.mubr.msk.f32.gmra.mrb[44].mxu1 %vm3089_vm4, %v9472_v19 }
 0x30f   : > { %7427 = vmatpush3.bf16.msra.mxu1 %v7424_v13  ;;  %7144 = vmatprep.mubr.msk.f32.mxu1 %vm3089_vm4, %v9348_v23  ;;  %v6150_v23 = vld [vmem:[%s9705_s3 + $0x2a8] sm:$0xff]  ;;  %v5553_v13 = vld [vmem:[%s9707_s5 + $0x38] sm:$0xff] }
 0x310   : > { %7429 = vmatprep.subr.bf16.mxu1 %v7428_v29  ;;  %v7452_v40 = vpack.c.bf16 %v6150_v23, %v6149_v17  ;;  %v7494_v62 = vpack.c.bf16 %v5553_v13, %v5552_v41  ;;  %v6182_v17 = vld [vmem:[%s9708_s6] ss:$0 sm:$0xff] }
 0x312   : > { %7145 = vmatmul.mubr.msk.f32.vlgmr.msra.gmra.mrb[42].mxu1 %vm3089_vm4, %v9372_v35 }
 0x313   : > { %7431 = vmatpush3.bf16.msra.mxu1 %v7428_v29  ;;  %7147 = vmatprep.mubr.msk.f32.mxu1 %vm3089_vm4, %v9472_v19 }
 0x314   : > { %7433 = vmatprep.subr.bf16.mxu1 %v7432_v16 }
 0x316   : > { %7148 = vmatmul.mubr.msk.f32.gmra.mrb[44].mxu1 %vm3089_vm4, %v9496_v44 }
 0x317   : > { %7435 = vmatpush3.bf16.msra.mxu1 %v7432_v16  ;;  %7158 = vmatprep.mubr.msk.f32.mxu1 %vm3089_vm4, %v9372_v35  ;;  %v6158_v35 = vld [vmem:[%s9705_s3 + $0x2c8] sm:$0xff] }
 0x318   : > { %7437 = vmatprep.subr.bf16.mxu1 %v7436_v18  ;;  %v7460_v32 = vpack.c.bf16 %v6158_v35, %v6157_v6 }
 0x31a   : > { %7159 = vmatmul.mubr.msk.f32.vlgmr.msra.gmra.mrb[42].mxu1 %vm3089_vm4, %v9396_v11 }
 0x31b   : > { %7439 = vmatpush3.bf16.msra.mxu1 %v7436_v18  ;;  %7161 = vmatprep.mubr.msk.f32.mxu1 %vm3089_vm4, %v9496_v44 }
 0x31c   : > { %7441 = vmatprep.subr.bf16.mxu1 %v7440_v7 }
 0x31e   : > { %7162 = vmatmul.mubr.msk.f32.gmra.mrb[44].mxu1 %vm3089_vm4, %v9520_v9 }
 0x31f   : > { %7443 = vmatpush3.bf16.msra.mxu1 %v7440_v7  ;;  %7172 = vmatprep.mubr.msk.f32.mxu1 %vm3089_vm4, %v9396_v11  ;;  %v7468_v11 = vpack.c.bf16 %v6166_v20, %v6165_v14  ;;  %v5636_v7 = vld [vmem:[%s9709_s7 + $0x8] sm:$0xff] }
 0x320   : > { %7445 = vmatprep.subr.bf16.mxu1 %v7444_v37 }
 0x322   : > { %7173 = vmatmul.mubr.msk.f32.vlgmr.msra.gmra.mrb[42].mxu1 %vm3089_vm4, %v9420_v53  ;;  %v6175_v53 = vld [vmem:[%s9705_s3 + $0x310] sm:$0xff] }
 0x323   : > { %7447 = vmatpush3.bf16.msra.mxu1 %v7444_v37  ;;  %7175 = vmatprep.mubr.msk.f32.mxu1 %vm3089_vm4, %v9520_v9  ;;  %v7480_v25 = vpack.c.bf16 %v6176_v39, %v6175_v53 }
 0x324   : > { %7449 = vmatprep.subr.bf16.mxu1 %v7448_v56 }
 0x326   : > { %7176 = vmatmul.mubr.msk.f32.gmra.mrb[44].mxu1 %vm3089_vm4, %v9544_v3 }
 0x327   : > { %7451 = vmatpush3.bf16.msra.mxu1 %v7448_v56  ;;  %7186 = vmatprep.mubr.msk.f32.mxu1 %vm3089_vm4, %v9434_v12  ;;  %v7485_v12 = vpack.c.bf16 %v5547_v61, %v5546_v57  ;;  %v7500_v56 = vpack.c.bf16 %v5638_v33, %v5637_v63 }
 0x328   : > { %7453 = vmatprep.subr.bf16.mxu1 %v7452_v40 }
 0x32a   : > { %7187 = vmatmul.mubr.msk.f32.vlgmr.msra.gmra.mrb[42].mxu1 %vm3089_vm4, %v9448_v42 }
 0x32b   : > { %7455 = vmatpush3.bf16.msra.mxu1 %v7452_v40  ;;  %7189 = vmatprep.mubr.msk.f32.mxu1 %vm3089_vm4, %v3074_v34 }
 0x32c   : > { %7457 = vmatprep.subr.bf16.mxu1 %v7456_v8 }
 0x32e   : > { %7190 = vmatmul.mubr.msk.f32.gmra.mrb[44].mxu1 %vm3089_vm4, %v3075_v22 }
 0x32f   : > { %7459 = vmatpush3.bf16.msra.mxu1 %v7456_v8  ;;  %7200 = vmatprep.mubr.msk.f32.mxu1 %vm3089_vm4, %v9448_v42  ;;  %v5549_v42 = vld [vmem:[%s9707_s5 + $0x18] sm:$0xff] }
 0x330   : > { %7461 = vmatprep.subr.bf16.mxu1 %v7460_v32  ;;  %v7488_v1 = vpack.c.bf16 %v5549_v42, %v5548_v58 }
 0x332   : > { %7201 = vmatmul.mubr.msk.f32.vlgmr.msra.gmra.mrb[42].mxu1 %vm3089_vm4, %v9472_v19 }
 0x333   : > { %7463 = vmatpush3.bf16.msra.mxu1 %v7460_v32  ;;  %7203 = vmatprep.mubr.msk.f32.mxu1 %vm3089_vm4, %v3075_v22 }
 0x334   : > { %7465 = vmatprep.subr.bf16.mxu1 %v7464_v0 }
 0x336   : > { %7204 = vmatmul.mubr.msk.f32.gmra.mrb[44].mxu1 %vm3089_vm4, %v3076_v38 }
 0x337   : > { %7467 = vmatpush3.bf16.msra.mxu1 %v7464_v0  ;;  %7214 = vmatprep.mubr.msk.f32.mxu1 %vm3089_vm4, %v9472_v19 }
 0x338   : > { %7469 = vmatprep.subr.bf16.mxu1 %v7468_v11 }
 0x33a   : > { %7215 = vmatmul.mubr.msk.f32.vlgmr.msra.gmra.mrb[42].mxu1 %vm3089_vm4, %v9496_v44 }
 0x33b   : > { %7471 = vmatpush3.bf16.msra.mxu1 %v7468_v11  ;;  %7217 = vmatprep.mubr.msk.f32.mxu1 %vm3089_vm4, %v3076_v38 }
 0x33c   : > { %7473 = vmatprep.subr.bf16.mxu1 %v7472_v60 }
 0x33e   : > { %7218 = vmatmul.mubr.msk.f32.gmra.mrb[44].mxu1 %vm3089_vm4, %v3077_v28 }
 0x33f   : > { %7475 = vmatpush3.bf16.msra.mxu1 %v7472_v60  ;;  %7228 = vmatprep.mubr.msk.f32.mxu1 %vm3089_vm4, %v9496_v44 }
 0x340   : > { %7477 = vmatprep.subr.bf16.mxu1 %v7476_v27 }
 0x342   : > { %7229 = vmatmul.mubr.msk.f32.vlgmr.msra.gmra.mrb[42].mxu1 %vm3089_vm4, %v9520_v9 }
 0x343   : > { %7479 = vmatpush3.bf16.msra.mxu1 %v7476_v27  ;;  %7231 = vmatprep.mubr.msk.f32.mxu1 %vm3089_vm4, %v3077_v28 }
 0x344   : > { %7481 = vmatprep.subr.bf16.mxu1 %v7480_v25 }
 0x346   : > { %7232 = vmatmul.mubr.msk.f32.gmra.mrb[44].mxu1 %vm3089_vm4, %v3078_v50 }
 0x347   : > { %7483 = vmatpush3.bf16.msra.mxu1 %v7480_v25  ;;  %7242 = vmatprep.mubr.msk.f32.mxu1 %vm3089_vm4, %v9520_v9  ;;  %v7497_v9 = vpack.c.bf16 %v5636_v7, %v5635_v52 }
 0x348   : > { %7484 = vmatprep.subr.bf16.mxu1 %v7655_v54 }
 0x34a   : > { %7243 = vmatmul.mubr.msk.f32.vlgmr.msra.gmra.mrb[42].mxu1 %vm3089_vm4, %v9544_v3 }
 0x34b   : > { %7245 = vmatprep.mubr.msk.f32.mxu1 %vm3089_vm4, %v3078_v50  ;;  %7486 = vmatpush3.bf16.msra.mxu1 %v7485_v12 }
 0x34c   : > { %7487 = vmatprep.subr.bf16.mxu1 %v7655_v54 }
 0x34e   : > { %7246 = vmatmul.mubr.msk.f32.gmra.mrb[44].mxu1 %vm3089_vm4, %v3079_v2 }
 0x34f   : > { %7489 = vmatpush3.bf16.msra.mxu1 %v7488_v1  ;;  %7264 = vmatprep.mubr.msk.f32.mxu1 %vm7656_vm5, %v7657_v49 }
 0x350   : > { %7490 = vmatprep.subr.bf16.mxu1 %v7655_v54 }
 0x353   : > { %7492 = vmatpush3.bf16.msra.mxu1 %v7491_v24 }
 0x354   : > { %7493 = vmatprep.subr.bf16.mxu1 %v7655_v54 }
 0x357   : > { %7495 = vmatpush3.bf16.msra.mxu1 %v7494_v62 }
 0x358   : > { %7496 = vmatprep.subr.bf16.mxu1 %v7655_v54 }
 0x41d   : > { %v7244_v19 = vpop.f32.mrb[42].mxu1 }
 0x41e   : > { %v5532_v29 = vsel %vm5530_vm6, %v7244_v19, -inf  ;;  %v5507_v47 = vpop.f32.mrb[43].mxu1 }
 0x41f   : > { %v5531_v43 = vsel %vm5530_vm6, %v5507_v47, -inf }
 0x420   : > { %v5535_v16 = vmax.f32 %v5531_v43, %v5532_v29 }
 0x421   : > { %v7247_v36 = vpop.f32.mrb[44].mxu1 }
 0x422   : > { %v5534_v4 = vsel %vm5530_vm6, %v7247_v36, -inf  ;;  %v5517_v44 = vpop.f32.mrb[45].mxu1 }
 0x423   : > { %v5533_v18 = vsel %vm5530_vm6, %v5517_v44, -inf }
 0x424   : > { %v5536_v51 = vmax.f32 %v5533_v18, %v5534_v4 }
 0x426   : > { %v5537_v26 = vmax.f32 %v5535_v16, %v5536_v51 }
 0x428   : > { %v5545_v37 = vadd.f32 %v6181_v46, %v5537_v26 }
 0x42a   : > { %7265 = vmatmul.mubr.msk.f32.vlgmr.msra.gmra.mrb[46].mxu1 %vm5530_vm6, %v5545_v37 }
 0x42b   : > { %7498 = vmatpush3.bf16.msra.mxu1 %v7497_v9  ;;  %7275 = vmatprep.mubr.msk.f32.mxu1 %vm7656_vm5, %v7657_v49 }
 0x42c   : > { %7499 = vmatprep.subr.bf16.mxu1 %v7655_v54 }
 0x42f   : > { %7501 = vmatpush3.bf16.msra.mxu1 %v7500_v56 }
 0x4fd   : > { %v5630_v23 = vpop.f32.mrb[46].mxu1 }
 0x4fe   : > { %v5631_v3 = vadd.f32 %v6182_v17, %v5630_v23  ;;  %v7266_v40 = vpop.f32.mrb[47].mxu1 }
 0x500   : > { %v5634_v30 = vmax.f32 %v5631_v3, 0.0 }
 0x502   : > { %7276 = vmatmul.mubr.msk.f32.vlgmr.msra.gmra.mrb[48].mxu1 %vm3089_vm4, %v5634_v30 }
 0x5d5   : > { %v5715_v8 = vpop.f32.mrb[48].mxu1 }
 0x5d6   : > { %v5716_v34 = vadd.f32 %v6184_v59, %v5715_v8  ;;  %v7277_v6 = vpop.f32.mrb[49].mxu1 }
 0x5d8   : > { %5720 = vst.msk [vmem:[%s1144_s26] sm:$0xff] %vm5719_vm7, %v5716_v34 }
 0x5d9 PF: > { %p16_p9 = scmp.ge.s32.totalorder %s7725_s13, 4   ;;  %s9896_s30 = smov %s7648_s10 }
 0x5da   : > { %s9897_s10 = smov %s7734_s16  ;;  %s9898_s11 = smov %s7725_s13 }
 0x5db   :  { %18 = sbr.rel (!%p16_p9) target bundleno = 2 (0x2), region = 153 }

</bundles_post_ra>
